<compile_context>
chip_gen: v6e
topology: v6e:2x2x1
jax: 0.10.0
libtpu: 0.0.40
codegen_flags: <defaults>
</compile_context>

<pallas_src>
import math

import jax
import jax.numpy as jnp
from jax import lax
from jax.experimental import pallas as pl
from jax.experimental.pallas import tpu as pltpu

# Small, shape-consistent hyperparameters (batch must equal latent_dim because of
# the fc_in(z).view(1, latent_dim, 2*hidden) reshape; original 128 == 128).
N_MAX = 10
BATCH = 32
LATENT = 32          # must equal BATCH
HIDDEN = 128
STROKE = 5
INPUT_DIM = LATENT + STROKE
M = 10
OUTPUT_DIM = 6 * M + 3
PROJ_PAD = 128       # lane-dense width for the in-kernel projection intermediate
T = 0.5
SQRT_T = math.sqrt(T)


def _distribution(proj):
    """Reference (slice-based) GMM post-processing on (B, 6M+3), quirks included."""
    pieces = []
    for k in range(M):
        c6 = proj[:, 6 * k:6 * k + 6]
        w = jnp.ones_like(c6[:, 0:1])          # softmax over a size-1 dim == 1
        mx = c6[:, 1:2]
        my = c6[:, 2:3]
        sx = jnp.exp(c6[:, 3:4]) * SQRT_T
        sy = jnp.exp(sx) * SQRT_T              # reproduces the reference bug
        corr = jnp.tanh(c6[:, 5:6])
        pieces.append(jnp.concatenate([w, mx, my, sx, sy, corr], axis=1))
    pen = proj[:, 6 * M:] / T
    pen = pen - jnp.max(pen, axis=1, keepdims=True)
    e = jnp.exp(pen)
    pen = e / jnp.sum(e, axis=1, keepdims=True)
    return jnp.concatenate(pieces + [pen], axis=1)


def decoder_kernel(z_ref, w_in_ref, b_in_ref,
                   w_ihz_ref, w_ihs_ref, b_gates_ref, w_hh_ref,
                   w_eff_ref, b_eff_ref,
                   strokes_out_ref, h_out_ref, c_out_ref, params_out_ref):
    f32 = jnp.float32
    z = z_ref[...]                                                    # (B, L)

    # ---- strokes output: every generated step is sample(.) == [0,0,1,0,0] ----
    col5 = lax.broadcasted_iota(jnp.int32, (BATCH, STROKE), 1)
    row5 = lax.broadcasted_iota(jnp.int32, (BATCH, STROKE), 0)
    sample_b = jnp.where(col5 == 2, 1.0, 0.0).astype(f32)             # (B, 5)
    strokes_out_ref[...] = jnp.broadcast_to(sample_b[None],
                                            (N_MAX, BATCH, STROKE))

    # ---- hidden/cell init: split(tanh(fc_in(z)), H) ----
    hc = jnp.tanh(jnp.dot(z, w_in_ref[...], preferred_element_type=f32)
                  + b_in_ref[...])                                    # (B, 2H)
    h0 = hc[:, :HIDDEN]
    c0 = hc[:, HIDDEN:]

    # ---- loop-invariant gate contributions (hoisted out of the recurrence) ----
    # gates = [z, stroke] @ W_ih + b_ih + h @ W_hh + b_hh
    #       = (z @ W_ih[:L] + (b_ih + b_hh)) + stroke @ W_ih[L:] + h @ W_hh
    g_z = jnp.dot(z, w_ihz_ref[...], preferred_element_type=f32) + b_gates_ref[...]
    w_ihs = w_ihs_ref[...]
    # strokes[0]: only batch row 0 carries [0,0,1,0,0]; all later steps use sample_b.
    stroke0 = jnp.where((row5 == 0) & (col5 == 2), 1.0, 0.0).astype(f32)
    g_first = g_z + jnp.dot(stroke0, w_ihs, preferred_element_type=f32)
    g_rest = g_z + jnp.dot(sample_b, w_ihs, preferred_element_type=f32)

    w_hh = w_hh_ref[...]

    def lstm_cell(g_in, h, c):
        gates = g_in + jnp.dot(h, w_hh, preferred_element_type=f32)   # (B, 4H)
        i_g = jax.nn.sigmoid(gates[:, 0 * HIDDEN:1 * HIDDEN])
        f_g = jax.nn.sigmoid(gates[:, 1 * HIDDEN:2 * HIDDEN])
        g_g = jnp.tanh(gates[:, 2 * HIDDEN:3 * HIDDEN])
        o_g = jax.nn.sigmoid(gates[:, 3 * HIDDEN:4 * HIDDEN])
        c_new = f_g * c + i_g * g_g
        h_new = o_g * jnp.tanh(c_new)
        return h_new, c_new

    # Step 0 uses strokes[0]; steps 1..N_max-1 use the constant sampled stroke.
    h1, c1 = lstm_cell(g_first, h0, c0)

    def body(_, carry):
        h, c = carry
        return lstm_cell(g_rest, h, c)

    h_f, c_f = lax.fori_loop(1, N_MAX, body, (h1, c1), unroll=True)

    h_out_ref[...] = h_f
    c_out_ref[...] = c_f

    # ---- projection + GMM post-processing: runs ONCE, on a lane-dense (B,128) tile.
    # w_eff/b_eff are zero-padded to 128 lanes; std_y lanes (c % 6 == 4) were remapped
    # on the host to hold std_x's raw logit, so no in-kernel lane shuffle is needed.
    pre = jnp.dot(h_f, w_eff_ref[...], preferred_element_type=f32) + b_eff_ref[...]

    lane = lax.broadcasted_iota(jnp.int32, (BATCH, PROJ_PAD), 1)
    mod6 = lane % 6
    is_mix = lane < 6 * M
    is_pen = jnp.logical_and(lane >= 6 * M, lane < OUTPUT_DIM)

    sx = jnp.exp(pre) * SQRT_T         # valid in std_x lanes (mod6 == 3)
    sy = jnp.exp(sx) * SQRT_T          # valid in std_y lanes (pre holds std_x's logit)
    corr = jnp.tanh(pre)               # valid in corr lanes (mod6 == 5)
    mix = jnp.where(mod6 == 0, 1.0,                    # softmax over size-1 dim == 1
          jnp.where(mod6 == 3, sx,
          jnp.where(mod6 == 4, sy,
          jnp.where(mod6 == 5, corr, pre))))           # mean_x / mean_y pass through

    pen_logits = jnp.where(is_pen, pre / T, -jnp.inf)
    pen_logits = pen_logits - jnp.max(pen_logits, axis=1, keepdims=True)
    pen_e = jnp.where(is_pen, jnp.exp(pen_logits), 0.0)
    pen = pen_e / jnp.sum(pen_e, axis=1, keepdims=True)

    out = jnp.where(is_mix, mix, pen)
    params_out_ref[...] = out[:, :OUTPUT_DIM]          # single narrow store at the end


def decoder_forward(z, params):
    """Host wrapper: one-time loop-invariant weight prep + a single pallas_call."""
    (w_in_t, b_in, w_ih_t, b_ih, w_hh_t, b_hh, w_proj_t, b_proj) = params

    # Split W_ih into its z / stroke blocks and fold the two LSTM biases.
    w_ih_z = w_ih_t[:LATENT]                   # (L, 4H)
    w_ih_s = w_ih_t[LATENT:]                   # (5, 4H)
    b_gates = b_ih + b_hh                      # (1, 4H)

    # Lane-dense projection weights: zero-pad to 128 output lanes, and make the
    # std_y lanes (c % 6 == 4, c < 60) read column c-1 (std_x's raw logit) so the
    # kernel reproduces std_y = exp(std_x_processed)*sqrt(T) with pure lane masks.
    w_pad = jnp.zeros((HIDDEN, PROJ_PAD), jnp.float32).at[:, :OUTPUT_DIM].set(w_proj_t)
    b_pad = jnp.zeros((1, PROJ_PAD), jnp.float32).at[:, :OUTPUT_DIM].set(b_proj)
    colv = jnp.arange(PROJ_PAD)
    src = jnp.where((colv % 6 == 4) & (colv < 6 * M), colv - 1, colv)
    w_eff = w_pad[:, src]
    b_eff = b_pad[:, src]

    vmem = pl.BlockSpec(memory_space=pltpu.MemorySpace.VMEM)
    out_shapes = (
        jax.ShapeDtypeStruct((N_MAX, BATCH, STROKE), jnp.float32),   # strokes[1:]
        jax.ShapeDtypeStruct((BATCH, HIDDEN), jnp.float32),          # final h
        jax.ShapeDtypeStruct((BATCH, HIDDEN), jnp.float32),          # final c
        jax.ShapeDtypeStruct((BATCH, OUTPUT_DIM), jnp.float32),      # last-step params
    )
    return pl.pallas_call(
        decoder_kernel,
        out_shape=out_shapes,
        in_specs=[vmem] * 9,
        out_specs=(vmem,) * 4,
    )(z, w_in_t, b_in, w_ih_z, w_ih_s, b_gates, w_hh_t, w_eff, b_eff)


def init_params(key):
    ks = jax.random.split(key, 8)

    def lin(k, fan_in, shape):
        bound = 1.0 / math.sqrt(fan_in)
        return jax.random.uniform(k, shape, jnp.float32, -bound, bound)

    w_in_t = lin(ks[0], LATENT, (LATENT, 2 * HIDDEN))
    b_in = lin(ks[1], LATENT, (1, 2 * HIDDEN))
    w_ih_t = lin(ks[2], HIDDEN, (INPUT_DIM, 4 * HIDDEN))
    b_ih = lin(ks[3], HIDDEN, (1, 4 * HIDDEN))
    w_hh_t = lin(ks[4], HIDDEN, (HIDDEN, 4 * HIDDEN))
    b_hh = lin(ks[5], HIDDEN, (1, 4 * HIDDEN))
    w_proj_t = lin(ks[6], HIDDEN, (HIDDEN, OUTPUT_DIM))
    b_proj = lin(ks[7], HIDDEN, (1, OUTPUT_DIM))
    return (w_in_t, b_in, w_ih_t, b_ih, w_hh_t, b_hh, w_proj_t, b_proj)


def reference_forward(z, params):
    """Pure-JAX replica of Decoder.forward for correctness checking."""
    w_in_t, b_in, w_ih_t, b_ih, w_hh_t, b_hh, w_proj_t, b_proj = params
    hc = jnp.tanh(z @ w_in_t + b_in)
    h, c = hc[:, :HIDDEN], hc[:, HIDDEN:]
    strokes = jnp.zeros((N_MAX + 1, BATCH, STROKE), jnp.float32)
    strokes = strokes.at[:, 0, :].set(jnp.array([0, 0, 1, 0, 0], jnp.float32))
    sample_b = jnp.broadcast_to(jnp.array([0, 0, 1, 0, 0], jnp.float32),
                                (BATCH, STROKE))
    params_last = None
    for i in range(N_MAX):
        x = jnp.concatenate([z, strokes[i]], axis=1)
        gates = x @ w_ih_t + b_ih + h @ w_hh_t + b_hh
        i_g = jax.nn.sigmoid(gates[:, :HIDDEN])
        f_g = jax.nn.sigmoid(gates[:, HIDDEN:2 * HIDDEN])
        g_g = jnp.tanh(gates[:, 2 * HIDDEN:3 * HIDDEN])
        o_g = jax.nn.sigmoid(gates[:, 3 * HIDDEN:])
        c = f_g * c + i_g * g_g
        h = o_g * jnp.tanh(c)
        proj = h @ w_proj_t + b_proj
        params_last = _distribution(proj)
        strokes = strokes.at[i + 1].set(sample_b)
    return strokes[1:], h, c, params_last


if __name__ == "__main__":
    key = jax.random.PRNGKey(0)
    kz, kp = jax.random.split(key)
    z = jax.random.normal(kz, (BATCH, LATENT), jnp.float32)
    params = init_params(kp)

    outs = jax.block_until_ready(decoder_forward(z, params))
    strokes, h_n, c_n, dist = outs
    strokes_r, h_r, c_r, dist_r = reference_forward(z, params)

    assert strokes.shape == (N_MAX, BATCH, STROKE)
    assert jnp.allclose(strokes, strokes_r, atol=1e-5)
    assert jnp.allclose(h_n, h_r, atol=1e-4, rtol=1e-4)
    assert jnp.allclose(c_n, c_r, atol=1e-4, rtol=1e-4)
    # std_y = exp(exp(x)*sqrt(T))*sqrt(T) amplifies matmul rounding; slightly looser.
    assert jnp.allclose(dist, dist_r, atol=1e-3, rtol=1e-3)
    print("KERNEL_OK")
</pallas_src>

<mosaic_0001>
module attributes {stable_mosaic.version = 11 : i64} {
  func.func @decoder_kernel(%arg0: memref<32x32xf32, #tpu.memory_space<vmem>>, %arg1: memref<32x256xf32, #tpu.memory_space<vmem>>, %arg2: memref<1x256xf32, #tpu.memory_space<vmem>>, %arg3: memref<32x512xf32, #tpu.memory_space<vmem>>, %arg4: memref<5x512xf32, #tpu.memory_space<vmem>>, %arg5: memref<1x512xf32, #tpu.memory_space<vmem>>, %arg6: memref<128x512xf32, #tpu.memory_space<vmem>>, %arg7: memref<128x128xf32, #tpu.memory_space<vmem>>, %arg8: memref<1x128xf32, #tpu.memory_space<vmem>>, %arg9: memref<10x32x5xf32, #tpu.memory_space<vmem>>, %arg10: memref<32x128xf32, #tpu.memory_space<vmem>>, %arg11: memref<32x128xf32, #tpu.memory_space<vmem>>, %arg12: memref<32x63xf32, #tpu.memory_space<vmem>>) attributes {dimension_semantics = [], scalar_prefetch = 0 : i64, scratch_operands = 0 : i64, tpu.core_type = #tpu.core_type<tc>} {
    %c0 = arith.constant 0 : index
    %c0_0 = arith.constant 0 : index
    %0 = vector.load %arg0[%c0, %c0_0] : memref<32x32xf32, #tpu.memory_space<vmem>>, vector<32x32xf32>
    %1 = tpu.iota {dimensions = array<i32: 1>} : vector<32x5xi32>
    %2 = tpu.iota {dimensions = array<i32: 0>} : vector<32x5xi32>
    %c2_i32 = arith.constant 2 : i32
    %3 = vector.broadcast %c2_i32 : i32 to vector<32x5xi32>
    %4 = arith.cmpi eq, %1, %3 : vector<32x5xi32>
    %cst = arith.constant 1.000000e+00 : f32
    %cst_1 = arith.constant 0.000000e+00 : f32
    %5 = vector.broadcast %cst : f32 to vector<32x5xf32>
    %6 = vector.broadcast %cst_1 : f32 to vector<32x5xf32>
    %7 = arith.select %4, %5, %6 : vector<32x5xi1>, vector<32x5xf32>
    %8 = vector.shape_cast %7 : vector<32x5xf32> to vector<1x32x5xf32>
    %9 = vector.shape_cast %8 : vector<1x32x5xf32> to vector<1x32x5xf32>
    %10 = vector.broadcast %9 : vector<1x32x5xf32> to vector<10x32x5xf32>
    %c0_2 = arith.constant 0 : index
    %c0_3 = arith.constant 0 : index
    %c0_4 = arith.constant 0 : index
    %11 = vector.load %arg9[%c0_2, %c0_3, %c0_4] : memref<10x32x5xf32, #tpu.memory_space<vmem>>, vector<10x32x5xf32>
    tpu.vector_store %arg9[%c0_2, %c0_3, %c0_4], %10 {strides = array<i32>} : memref<10x32x5xf32, #tpu.memory_space<vmem>>, vector<10x32x5xf32>,
    %c0_5 = arith.constant 0 : index
    %c0_6 = arith.constant 0 : index
    %12 = vector.load %arg1[%c0_5, %c0_6] : memref<32x256xf32, #tpu.memory_space<vmem>>, vector<32x256xf32>
    %cst_7 = arith.constant dense<0.000000e+00> : vector<32x256xf32>
    %13 = tpu.matmul %0, %12, %cst_7 {dimension_numbers = #tpu.dot_dimension_numbers<[1], [0], [0], [1], [0, 0, 1, 1], [], []>} : vector<32x32xf32>, vector<32x256xf32>, vector<32x256xf32> -> vector<32x256xf32>
    %c0_8 = arith.constant 0 : index
    %c0_9 = arith.constant 0 : index
    %14 = vector.load %arg2[%c0_8, %c0_9] : memref<1x256xf32, #tpu.memory_space<vmem>>, vector<1x256xf32>
    %15 = vector.broadcast %14 : vector<1x256xf32> to vector<32x256xf32>
    %16 = arith.addf %13, %15 : vector<32x256xf32>
    %17 = math.tanh %16 : vector<32x256xf32>
    %18 = vector.extract_strided_slice %17 {offsets = [0, 0], sizes = [32, 128], strides = [1, 1]} : vector<32x256xf32> to vector<32x128xf32>
    %19 = vector.extract_strided_slice %17 {offsets = [0, 128], sizes = [32, 128], strides = [1, 1]} : vector<32x256xf32> to vector<32x128xf32>
    %c0_10 = arith.constant 0 : index
    %c0_11 = arith.constant 0 : index
    %20 = vector.load %arg3[%c0_10, %c0_11] : memref<32x512xf32, #tpu.memory_space<vmem>>, vector<32x512xf32>
    %cst_12 = arith.constant dense<0.000000e+00> : vector<32x512xf32>
    %21 = tpu.matmul %0, %20, %cst_12 {dimension_numbers = #tpu.dot_dimension_numbers<[1], [0], [0], [1], [0, 0, 1, 1], [], []>} : vector<32x32xf32>, vector<32x512xf32>, vector<32x512xf32> -> vector<32x512xf32>
    %c0_13 = arith.constant 0 : index
    %c0_14 = arith.constant 0 : index
    %22 = vector.load %arg5[%c0_13, %c0_14] : memref<1x512xf32, #tpu.memory_space<vmem>>, vector<1x512xf32>
    %23 = vector.broadcast %22 : vector<1x512xf32> to vector<32x512xf32>
    %24 = arith.addf %21, %23 : vector<32x512xf32>
    %c0_15 = arith.constant 0 : index
    %c0_16 = arith.constant 0 : index
    %25 = vector.load %arg4[%c0_15, %c0_16] : memref<5x512xf32, #tpu.memory_space<vmem>>, vector<5x512xf32>
    %c0_i32 = arith.constant 0 : i32
    %26 = vector.broadcast %c0_i32 : i32 to vector<32x5xi32>
    %27 = arith.cmpi eq, %2, %26 : vector<32x5xi32>
    %c2_i32_17 = arith.constant 2 : i32
    %28 = vector.broadcast %c2_i32_17 : i32 to vector<32x5xi32>
    %29 = arith.cmpi eq, %1, %28 : vector<32x5xi32>
    %30 = arith.andi %27, %29 : vector<32x5xi1>
    %cst_18 = arith.constant 1.000000e+00 : f32
    %cst_19 = arith.constant 0.000000e+00 : f32
    %31 = vector.broadcast %cst_18 : f32 to vector<32x5xf32>
    %32 = vector.broadcast %cst_19 : f32 to vector<32x5xf32>
    %33 = arith.select %30, %31, %32 : vector<32x5xi1>, vector<32x5xf32>
    %cst_20 = arith.constant dense<0.000000e+00> : vector<32x512xf32>
    %34 = tpu.matmul %33, %25, %cst_20 {dimension_numbers = #tpu.dot_dimension_numbers<[1], [0], [0], [1], [0, 0, 1, 1], [], []>} : vector<32x5xf32>, vector<5x512xf32>, vector<32x512xf32> -> vector<32x512xf32>
    %35 = arith.addf %24, %34 : vector<32x512xf32>
    %cst_21 = arith.constant dense<0.000000e+00> : vector<32x512xf32>
    %36 = tpu.matmul %7, %25, %cst_21 {dimension_numbers = #tpu.dot_dimension_numbers<[1], [0], [0], [1], [0, 0, 1, 1], [], []>} : vector<32x5xf32>, vector<5x512xf32>, vector<32x512xf32> -> vector<32x512xf32>
    %37 = arith.addf %24, %36 : vector<32x512xf32>
    %c0_22 = arith.constant 0 : index
    %c0_23 = arith.constant 0 : index
    %38 = vector.load %arg6[%c0_22, %c0_23] : memref<128x512xf32, #tpu.memory_space<vmem>>, vector<128x512xf32>
    %cst_24 = arith.constant dense<0.000000e+00> : vector<32x512xf32>
    %39 = tpu.matmul %18, %38, %cst_24 {dimension_numbers = #tpu.dot_dimension_numbers<[1], [0], [0], [1], [0, 0, 1, 1], [], []>} : vector<32x128xf32>, vector<128x512xf32>, vector<32x512xf32> -> vector<32x512xf32>
    %40 = arith.addf %35, %39 : vector<32x512xf32>
    %41 = vector.extract_strided_slice %40 {offsets = [0, 0], sizes = [32, 128], strides = [1, 1]} : vector<32x512xf32> to vector<32x128xf32>
    %42 = arith.negf %41 : vector<32x128xf32>
    %43 = math.exp %42 : vector<32x128xf32>
    %cst_25 = arith.constant 1.000000e+00 : f32
    %44 = vector.broadcast %cst_25 : f32 to vector<32x128xf32>
    %45 = arith.addf %44, %43 : vector<32x128xf32>
    %46 = arith.divf %44, %45 : vector<32x128xf32>
    %47 = vector.extract_strided_slice %40 {offsets = [0, 128], sizes = [32, 128], strides = [1, 1]} : vector<32x512xf32> to vector<32x128xf32>
    %48 = arith.negf %47 : vector<32x128xf32>
    %49 = math.exp %48 : vector<32x128xf32>
    %cst_26 = arith.constant 1.000000e+00 : f32
    %50 = vector.broadcast %cst_26 : f32 to vector<32x128xf32>
    %51 = arith.addf %50, %49 : vector<32x128xf32>
    %52 = arith.divf %50, %51 : vector<32x128xf32>
    %53 = vector.extract_strided_slice %40 {offsets = [0, 256], sizes = [32, 128], strides = [1, 1]} : vector<32x512xf32> to vector<32x128xf32>
    %54 = math.tanh %53 : vector<32x128xf32>
    %55 = vector.extract_strided_slice %40 {offsets = [0, 384], sizes = [32, 128], strides = [1, 1]} : vector<32x512xf32> to vector<32x128xf32>
    %56 = arith.negf %55 : vector<32x128xf32>
    %57 = math.exp %56 : vector<32x128xf32>
    %cst_27 = arith.constant 1.000000e+00 : f32
    %58 = vector.broadcast %cst_27 : f32 to vector<32x128xf32>
    %59 = arith.addf %58, %57 : vector<32x128xf32>
    %60 = arith.divf %58, %59 : vector<32x128xf32>
    %61 = arith.mulf %52, %19 : vector<32x128xf32>
    %62 = arith.mulf %46, %54 : vector<32x128xf32>
    %63 = arith.addf %61, %62 : vector<32x128xf32>
    %64 = math.tanh %63 : vector<32x128xf32>
    %65 = arith.mulf %60, %64 : vector<32x128xf32>
    %c0_i32_28 = arith.constant 0 : i32
    %cst_29 = arith.constant dense<0.000000e+00> : vector<32x512xf32>
    %66 = tpu.matmul %65, %38, %cst_29 {dimension_numbers = #tpu.dot_dimension_numbers<[1], [0], [0], [1], [0, 0, 1, 1], [], []>} : vector<32x128xf32>, vector<128x512xf32>, vector<32x512xf32> -> vector<32x512xf32>
    %67 = arith.addf %37, %66 : vector<32x512xf32>
    %68 = vector.extract_strided_slice %67 {offsets = [0, 0], sizes = [32, 128], strides = [1, 1]} : vector<32x512xf32> to vector<32x128xf32>
    %69 = arith.negf %68 : vector<32x128xf32>
    %70 = math.exp %69 : vector<32x128xf32>
    %cst_30 = arith.constant 1.000000e+00 : f32
    %71 = vector.broadcast %cst_30 : f32 to vector<32x128xf32>
    %72 = arith.addf %71, %70 : vector<32x128xf32>
    %73 = arith.divf %71, %72 : vector<32x128xf32>
    %74 = vector.extract_strided_slice %67 {offsets = [0, 128], sizes = [32, 128], strides = [1, 1]} : vector<32x512xf32> to vector<32x128xf32>
    %75 = arith.negf %74 : vector<32x128xf32>
    %76 = math.exp %75 : vector<32x128xf32>
    %cst_31 = arith.constant 1.000000e+00 : f32
    %77 = vector.broadcast %cst_31 : f32 to vector<32x128xf32>
    %78 = arith.addf %77, %76 : vector<32x128xf32>
    %79 = arith.divf %77, %78 : vector<32x128xf32>
    %80 = vector.extract_strided_slice %67 {offsets = [0, 256], sizes = [32, 128], strides = [1, 1]} : vector<32x512xf32> to vector<32x128xf32>
    %81 = math.tanh %80 : vector<32x128xf32>
    %82 = vector.extract_strided_slice %67 {offsets = [0, 384], sizes = [32, 128], strides = [1, 1]} : vector<32x512xf32> to vector<32x128xf32>
    %83 = arith.negf %82 : vector<32x128xf32>
    %84 = math.exp %83 : vector<32x128xf32>
    %cst_32 = arith.constant 1.000000e+00 : f32
    %85 = vector.broadcast %cst_32 : f32 to vector<32x128xf32>
    %86 = arith.addf %85, %84 : vector<32x128xf32>
    %87 = arith.divf %85, %86 : vector<32x128xf32>
    %88 = arith.mulf %79, %63 : vector<32x128xf32>
    %89 = arith.mulf %73, %81 : vector<32x128xf32>
    %90 = arith.addf %88, %89 : vector<32x128xf32>
    %91 = math.tanh %90 : vector<32x128xf32>
    %92 = arith.mulf %87, %91 : vector<32x128xf32>
    %c1_i32 = arith.constant 1 : i32
    %cst_33 = arith.constant dense<0.000000e+00> : vector<32x512xf32>
    %93 = tpu.matmul %92, %38, %cst_33 {dimension_numbers = #tpu.dot_dimension_numbers<[1], [0], [0], [1], [0, 0, 1, 1], [], []>} : vector<32x128xf32>, vector<128x512xf32>, vector<32x512xf32> -> vector<32x512xf32>
    %94 = arith.addf %37, %93 : vector<32x512xf32>
    %95 = vector.extract_strided_slice %94 {offsets = [0, 0], sizes = [32, 128], strides = [1, 1]} : vector<32x512xf32> to vector<32x128xf32>
    %96 = arith.negf %95 : vector<32x128xf32>
    %97 = math.exp %96 : vector<32x128xf32>
    %cst_34 = arith.constant 1.000000e+00 : f32
    %98 = vector.broadcast %cst_34 : f32 to vector<32x128xf32>
    %99 = arith.addf %98, %97 : vector<32x128xf32>
    %100 = arith.divf %98, %99 : vector<32x128xf32>
    %101 = vector.extract_strided_slice %94 {offsets = [0, 128], sizes = [32, 128], strides = [1, 1]} : vector<32x512xf32> to vector<32x128xf32>
    %102 = arith.negf %101 : vector<32x128xf32>
    %103 = math.exp %102 : vector<32x128xf32>
    %cst_35 = arith.constant 1.000000e+00 : f32
    %104 = vector.broadcast %cst_35 : f32 to vector<32x128xf32>
    %105 = arith.addf %104, %103 : vector<32x128xf32>
    %106 = arith.divf %104, %105 : vector<32x128xf32>
    %107 = vector.extract_strided_slice %94 {offsets = [0, 256], sizes = [32, 128], strides = [1, 1]} : vector<32x512xf32> to vector<32x128xf32>
    %108 = math.tanh %107 : vector<32x128xf32>
    %109 = vector.extract_strided_slice %94 {offsets = [0, 384], sizes = [32, 128], strides = [1, 1]} : vector<32x512xf32> to vector<32x128xf32>
    %110 = arith.negf %109 : vector<32x128xf32>
    %111 = math.exp %110 : vector<32x128xf32>
    %cst_36 = arith.constant 1.000000e+00 : f32
    %112 = vector.broadcast %cst_36 : f32 to vector<32x128xf32>
    %113 = arith.addf %112, %111 : vector<32x128xf32>
    %114 = arith.divf %112, %113 : vector<32x128xf32>
    %115 = arith.mulf %106, %90 : vector<32x128xf32>
    %116 = arith.mulf %100, %108 : vector<32x128xf32>
    %117 = arith.addf %115, %116 : vector<32x128xf32>
    %118 = math.tanh %117 : vector<32x128xf32>
    %119 = arith.mulf %114, %118 : vector<32x128xf32>
    %c2_i32_37 = arith.constant 2 : i32
    %cst_38 = arith.constant dense<0.000000e+00> : vector<32x512xf32>
    %120 = tpu.matmul %119, %38, %cst_38 {dimension_numbers = #tpu.dot_dimension_numbers<[1], [0], [0], [1], [0, 0, 1, 1], [], []>} : vector<32x128xf32>, vector<128x512xf32>, vector<32x512xf32> -> vector<32x512xf32>
    %121 = arith.addf %37, %120 : vector<32x512xf32>
    %122 = vector.extract_strided_slice %121 {offsets = [0, 0], sizes = [32, 128], strides = [1, 1]} : vector<32x512xf32> to vector<32x128xf32>
    %123 = arith.negf %122 : vector<32x128xf32>
    %124 = math.exp %123 : vector<32x128xf32>
    %cst_39 = arith.constant 1.000000e+00 : f32
    %125 = vector.broadcast %cst_39 : f32 to vector<32x128xf32>
    %126 = arith.addf %125, %124 : vector<32x128xf32>
    %127 = arith.divf %125, %126 : vector<32x128xf32>
    %128 = vector.extract_strided_slice %121 {offsets = [0, 128], sizes = [32, 128], strides = [1, 1]} : vector<32x512xf32> to vector<32x128xf32>
    %129 = arith.negf %128 : vector<32x128xf32>
    %130 = math.exp %129 : vector<32x128xf32>
    %cst_40 = arith.constant 1.000000e+00 : f32
    %131 = vector.broadcast %cst_40 : f32 to vector<32x128xf32>
    %132 = arith.addf %131, %130 : vector<32x128xf32>
    %133 = arith.divf %131, %132 : vector<32x128xf32>
    %134 = vector.extract_strided_slice %121 {offsets = [0, 256], sizes = [32, 128], strides = [1, 1]} : vector<32x512xf32> to vector<32x128xf32>
    %135 = math.tanh %134 : vector<32x128xf32>
    %136 = vector.extract_strided_slice %121 {offsets = [0, 384], sizes = [32, 128], strides = [1, 1]} : vector<32x512xf32> to vector<32x128xf32>
    %137 = arith.negf %136 : vector<32x128xf32>
    %138 = math.exp %137 : vector<32x128xf32>
    %cst_41 = arith.constant 1.000000e+00 : f32
    %139 = vector.broadcast %cst_41 : f32 to vector<32x128xf32>
    %140 = arith.addf %139, %138 : vector<32x128xf32>
    %141 = arith.divf %139, %140 : vector<32x128xf32>
    %142 = arith.mulf %133, %117 : vector<32x128xf32>
    %143 = arith.mulf %127, %135 : vector<32x128xf32>
    %144 = arith.addf %142, %143 : vector<32x128xf32>
    %145 = math.tanh %144 : vector<32x128xf32>
    %146 = arith.mulf %141, %145 : vector<32x128xf32>
    %c3_i32 = arith.constant 3 : i32
    %cst_42 = arith.constant dense<0.000000e+00> : vector<32x512xf32>
    %147 = tpu.matmul %146, %38, %cst_42 {dimension_numbers = #tpu.dot_dimension_numbers<[1], [0], [0], [1], [0, 0, 1, 1], [], []>} : vector<32x128xf32>, vector<128x512xf32>, vector<32x512xf32> -> vector<32x512xf32>
    %148 = arith.addf %37, %147 : vector<32x512xf32>
    %149 = vector.extract_strided_slice %148 {offsets = [0, 0], sizes = [32, 128], strides = [1, 1]} : vector<32x512xf32> to vector<32x128xf32>
    %150 = arith.negf %149 : vector<32x128xf32>
    %151 = math.exp %150 : vector<32x128xf32>
    %cst_43 = arith.constant 1.000000e+00 : f32
    %152 = vector.broadcast %cst_43 : f32 to vector<32x128xf32>
    %153 = arith.addf %152, %151 : vector<32x128xf32>
    %154 = arith.divf %152, %153 : vector<32x128xf32>
    %155 = vector.extract_strided_slice %148 {offsets = [0, 128], sizes = [32, 128], strides = [1, 1]} : vector<32x512xf32> to vector<32x128xf32>
    %156 = arith.negf %155 : vector<32x128xf32>
    %157 = math.exp %156 : vector<32x128xf32>
    %cst_44 = arith.constant 1.000000e+00 : f32
    %158 = vector.broadcast %cst_44 : f32 to vector<32x128xf32>
    %159 = arith.addf %158, %157 : vector<32x128xf32>
    %160 = arith.divf %158, %159 : vector<32x128xf32>
    %161 = vector.extract_strided_slice %148 {offsets = [0, 256], sizes = [32, 128], strides = [1, 1]} : vector<32x512xf32> to vector<32x128xf32>
    %162 = math.tanh %161 : vector<32x128xf32>
    %163 = vector.extract_strided_slice %148 {offsets = [0, 384], sizes = [32, 128], strides = [1, 1]} : vector<32x512xf32> to vector<32x128xf32>
    %164 = arith.negf %163 : vector<32x128xf32>
    %165 = math.exp %164 : vector<32x128xf32>
    %cst_45 = arith.constant 1.000000e+00 : f32
    %166 = vector.broadcast %cst_45 : f32 to vector<32x128xf32>
    %167 = arith.addf %166, %165 : vector<32x128xf32>
    %168 = arith.divf %166, %167 : vector<32x128xf32>
    %169 = arith.mulf %160, %144 : vector<32x128xf32>
    %170 = arith.mulf %154, %162 : vector<32x128xf32>
    %171 = arith.addf %169, %170 : vector<32x128xf32>
    %172 = math.tanh %171 : vector<32x128xf32>
    %173 = arith.mulf %168, %172 : vector<32x128xf32>
    %c4_i32 = arith.constant 4 : i32
    %cst_46 = arith.constant dense<0.000000e+00> : vector<32x512xf32>
    %174 = tpu.matmul %173, %38, %cst_46 {dimension_numbers = #tpu.dot_dimension_numbers<[1], [0], [0], [1], [0, 0, 1, 1], [], []>} : vector<32x128xf32>, vector<128x512xf32>, vector<32x512xf32> -> vector<32x512xf32>
    %175 = arith.addf %37, %174 : vector<32x512xf32>
    %176 = vector.extract_strided_slice %175 {offsets = [0, 0], sizes = [32, 128], strides = [1, 1]} : vector<32x512xf32> to vector<32x128xf32>
    %177 = arith.negf %176 : vector<32x128xf32>
    %178 = math.exp %177 : vector<32x128xf32>
    %cst_47 = arith.constant 1.000000e+00 : f32
    %179 = vector.broadcast %cst_47 : f32 to vector<32x128xf32>
    %180 = arith.addf %179, %178 : vector<32x128xf32>
    %181 = arith.divf %179, %180 : vector<32x128xf32>
    %182 = vector.extract_strided_slice %175 {offsets = [0, 128], sizes = [32, 128], strides = [1, 1]} : vector<32x512xf32> to vector<32x128xf32>
    %183 = arith.negf %182 : vector<32x128xf32>
    %184 = math.exp %183 : vector<32x128xf32>
    %cst_48 = arith.constant 1.000000e+00 : f32
    %185 = vector.broadcast %cst_48 : f32 to vector<32x128xf32>
    %186 = arith.addf %185, %184 : vector<32x128xf32>
    %187 = arith.divf %185, %186 : vector<32x128xf32>
    %188 = vector.extract_strided_slice %175 {offsets = [0, 256], sizes = [32, 128], strides = [1, 1]} : vector<32x512xf32> to vector<32x128xf32>
    %189 = math.tanh %188 : vector<32x128xf32>
    %190 = vector.extract_strided_slice %175 {offsets = [0, 384], sizes = [32, 128], strides = [1, 1]} : vector<32x512xf32> to vector<32x128xf32>
    %191 = arith.negf %190 : vector<32x128xf32>
    %192 = math.exp %191 : vector<32x128xf32>
    %cst_49 = arith.constant 1.000000e+00 : f32
    %193 = vector.broadcast %cst_49 : f32 to vector<32x128xf32>
    %194 = arith.addf %193, %192 : vector<32x128xf32>
    %195 = arith.divf %193, %194 : vector<32x128xf32>
    %196 = arith.mulf %187, %171 : vector<32x128xf32>
    %197 = arith.mulf %181, %189 : vector<32x128xf32>
    %198 = arith.addf %196, %197 : vector<32x128xf32>
    %199 = math.tanh %198 : vector<32x128xf32>
    %200 = arith.mulf %195, %199 : vector<32x128xf32>
    %c5_i32 = arith.constant 5 : i32
    %cst_50 = arith.constant dense<0.000000e+00> : vector<32x512xf32>
    %201 = tpu.matmul %200, %38, %cst_50 {dimension_numbers = #tpu.dot_dimension_numbers<[1], [0], [0], [1], [0, 0, 1, 1], [], []>} : vector<32x128xf32>, vector<128x512xf32>, vector<32x512xf32> -> vector<32x512xf32>
    %202 = arith.addf %37, %201 : vector<32x512xf32>
    %203 = vector.extract_strided_slice %202 {offsets = [0, 0], sizes = [32, 128], strides = [1, 1]} : vector<32x512xf32> to vector<32x128xf32>
    %204 = arith.negf %203 : vector<32x128xf32>
    %205 = math.exp %204 : vector<32x128xf32>
    %cst_51 = arith.constant 1.000000e+00 : f32
    %206 = vector.broadcast %cst_51 : f32 to vector<32x128xf32>
    %207 = arith.addf %206, %205 : vector<32x128xf32>
    %208 = arith.divf %206, %207 : vector<32x128xf32>
    %209 = vector.extract_strided_slice %202 {offsets = [0, 128], sizes = [32, 128], strides = [1, 1]} : vector<32x512xf32> to vector<32x128xf32>
    %210 = arith.negf %209 : vector<32x128xf32>
    %211 = math.exp %210 : vector<32x128xf32>
    %cst_52 = arith.constant 1.000000e+00 : f32
    %212 = vector.broadcast %cst_52 : f32 to vector<32x128xf32>
    %213 = arith.addf %212, %211 : vector<32x128xf32>
    %214 = arith.divf %212, %213 : vector<32x128xf32>
    %215 = vector.extract_strided_slice %202 {offsets = [0, 256], sizes = [32, 128], strides = [1, 1]} : vector<32x512xf32> to vector<32x128xf32>
    %216 = math.tanh %215 : vector<32x128xf32>
    %217 = vector.extract_strided_slice %202 {offsets = [0, 384], sizes = [32, 128], strides = [1, 1]} : vector<32x512xf32> to vector<32x128xf32>
    %218 = arith.negf %217 : vector<32x128xf32>
    %219 = math.exp %218 : vector<32x128xf32>
    %cst_53 = arith.constant 1.000000e+00 : f32
    %220 = vector.broadcast %cst_53 : f32 to vector<32x128xf32>
    %221 = arith.addf %220, %219 : vector<32x128xf32>
    %222 = arith.divf %220, %221 : vector<32x128xf32>
    %223 = arith.mulf %214, %198 : vector<32x128xf32>
    %224 = arith.mulf %208, %216 : vector<32x128xf32>
    %225 = arith.addf %223, %224 : vector<32x128xf32>
    %226 = math.tanh %225 : vector<32x128xf32>
    %227 = arith.mulf %222, %226 : vector<32x128xf32>
    %c6_i32 = arith.constant 6 : i32
    %cst_54 = arith.constant dense<0.000000e+00> : vector<32x512xf32>
    %228 = tpu.matmul %227, %38, %cst_54 {dimension_numbers = #tpu.dot_dimension_numbers<[1], [0], [0], [1], [0, 0, 1, 1], [], []>} : vector<32x128xf32>, vector<128x512xf32>, vector<32x512xf32> -> vector<32x512xf32>
    %229 = arith.addf %37, %228 : vector<32x512xf32>
    %230 = vector.extract_strided_slice %229 {offsets = [0, 0], sizes = [32, 128], strides = [1, 1]} : vector<32x512xf32> to vector<32x128xf32>
    %231 = arith.negf %230 : vector<32x128xf32>
    %232 = math.exp %231 : vector<32x128xf32>
    %cst_55 = arith.constant 1.000000e+00 : f32
    %233 = vector.broadcast %cst_55 : f32 to vector<32x128xf32>
    %234 = arith.addf %233, %232 : vector<32x128xf32>
    %235 = arith.divf %233, %234 : vector<32x128xf32>
    %236 = vector.extract_strided_slice %229 {offsets = [0, 128], sizes = [32, 128], strides = [1, 1]} : vector<32x512xf32> to vector<32x128xf32>
    %237 = arith.negf %236 : vector<32x128xf32>
    %238 = math.exp %237 : vector<32x128xf32>
    %cst_56 = arith.constant 1.000000e+00 : f32
    %239 = vector.broadcast %cst_56 : f32 to vector<32x128xf32>
    %240 = arith.addf %239, %238 : vector<32x128xf32>
    %241 = arith.divf %239, %240 : vector<32x128xf32>
    %242 = vector.extract_strided_slice %229 {offsets = [0, 256], sizes = [32, 128], strides = [1, 1]} : vector<32x512xf32> to vector<32x128xf32>
    %243 = math.tanh %242 : vector<32x128xf32>
    %244 = vector.extract_strided_slice %229 {offsets = [0, 384], sizes = [32, 128], strides = [1, 1]} : vector<32x512xf32> to vector<32x128xf32>
    %245 = arith.negf %244 : vector<32x128xf32>
    %246 = math.exp %245 : vector<32x128xf32>
    %cst_57 = arith.constant 1.000000e+00 : f32
    %247 = vector.broadcast %cst_57 : f32 to vector<32x128xf32>
    %248 = arith.addf %247, %246 : vector<32x128xf32>
    %249 = arith.divf %247, %248 : vector<32x128xf32>
    %250 = arith.mulf %241, %225 : vector<32x128xf32>
    %251 = arith.mulf %235, %243 : vector<32x128xf32>
    %252 = arith.addf %250, %251 : vector<32x128xf32>
    %253 = math.tanh %252 : vector<32x128xf32>
    %254 = arith.mulf %249, %253 : vector<32x128xf32>
    %c7_i32 = arith.constant 7 : i32
    %cst_58 = arith.constant dense<0.000000e+00> : vector<32x512xf32>
    %255 = tpu.matmul %254, %38, %cst_58 {dimension_numbers = #tpu.dot_dimension_numbers<[1], [0], [0], [1], [0, 0, 1, 1], [], []>} : vector<32x128xf32>, vector<128x512xf32>, vector<32x512xf32> -> vector<32x512xf32>
    %256 = arith.addf %37, %255 : vector<32x512xf32>
    %257 = vector.extract_strided_slice %256 {offsets = [0, 0], sizes = [32, 128], strides = [1, 1]} : vector<32x512xf32> to vector<32x128xf32>
    %258 = arith.negf %257 : vector<32x128xf32>
    %259 = math.exp %258 : vector<32x128xf32>
    %cst_59 = arith.constant 1.000000e+00 : f32
    %260 = vector.broadcast %cst_59 : f32 to vector<32x128xf32>
    %261 = arith.addf %260, %259 : vector<32x128xf32>
    %262 = arith.divf %260, %261 : vector<32x128xf32>
    %263 = vector.extract_strided_slice %256 {offsets = [0, 128], sizes = [32, 128], strides = [1, 1]} : vector<32x512xf32> to vector<32x128xf32>
    %264 = arith.negf %263 : vector<32x128xf32>
    %265 = math.exp %264 : vector<32x128xf32>
    %cst_60 = arith.constant 1.000000e+00 : f32
    %266 = vector.broadcast %cst_60 : f32 to vector<32x128xf32>
    %267 = arith.addf %266, %265 : vector<32x128xf32>
    %268 = arith.divf %266, %267 : vector<32x128xf32>
    %269 = vector.extract_strided_slice %256 {offsets = [0, 256], sizes = [32, 128], strides = [1, 1]} : vector<32x512xf32> to vector<32x128xf32>
    %270 = math.tanh %269 : vector<32x128xf32>
    %271 = vector.extract_strided_slice %256 {offsets = [0, 384], sizes = [32, 128], strides = [1, 1]} : vector<32x512xf32> to vector<32x128xf32>
    %272 = arith.negf %271 : vector<32x128xf32>
    %273 = math.exp %272 : vector<32x128xf32>
    %cst_61 = arith.constant 1.000000e+00 : f32
    %274 = vector.broadcast %cst_61 : f32 to vector<32x128xf32>
    %275 = arith.addf %274, %273 : vector<32x128xf32>
    %276 = arith.divf %274, %275 : vector<32x128xf32>
    %277 = arith.mulf %268, %252 : vector<32x128xf32>
    %278 = arith.mulf %262, %270 : vector<32x128xf32>
    %279 = arith.addf %277, %278 : vector<32x128xf32>
    %280 = math.tanh %279 : vector<32x128xf32>
    %281 = arith.mulf %276, %280 : vector<32x128xf32>
    %c8_i32 = arith.constant 8 : i32
    %cst_62 = arith.constant dense<0.000000e+00> : vector<32x512xf32>
    %282 = tpu.matmul %281, %38, %cst_62 {dimension_numbers = #tpu.dot_dimension_numbers<[1], [0], [0], [1], [0, 0, 1, 1], [], []>} : vector<32x128xf32>, vector<128x512xf32>, vector<32x512xf32> -> vector<32x512xf32>
    %283 = arith.addf %37, %282 : vector<32x512xf32>
    %284 = vector.extract_strided_slice %283 {offsets = [0, 0], sizes = [32, 128], strides = [1, 1]} : vector<32x512xf32> to vector<32x128xf32>
    %285 = arith.negf %284 : vector<32x128xf32>
    %286 = math.exp %285 : vector<32x128xf32>
    %cst_63 = arith.constant 1.000000e+00 : f32
    %287 = vector.broadcast %cst_63 : f32 to vector<32x128xf32>
    %288 = arith.addf %287, %286 : vector<32x128xf32>
    %289 = arith.divf %287, %288 : vector<32x128xf32>
    %290 = vector.extract_strided_slice %283 {offsets = [0, 128], sizes = [32, 128], strides = [1, 1]} : vector<32x512xf32> to vector<32x128xf32>
    %291 = arith.negf %290 : vector<32x128xf32>
    %292 = math.exp %291 : vector<32x128xf32>
    %cst_64 = arith.constant 1.000000e+00 : f32
    %293 = vector.broadcast %cst_64 : f32 to vector<32x128xf32>
    %294 = arith.addf %293, %292 : vector<32x128xf32>
    %295 = arith.divf %293, %294 : vector<32x128xf32>
    %296 = vector.extract_strided_slice %283 {offsets = [0, 256], sizes = [32, 128], strides = [1, 1]} : vector<32x512xf32> to vector<32x128xf32>
    %297 = math.tanh %296 : vector<32x128xf32>
    %298 = vector.extract_strided_slice %283 {offsets = [0, 384], sizes = [32, 128], strides = [1, 1]} : vector<32x512xf32> to vector<32x128xf32>
    %299 = arith.negf %298 : vector<32x128xf32>
    %300 = math.exp %299 : vector<32x128xf32>
    %cst_65 = arith.constant 1.000000e+00 : f32
    %301 = vector.broadcast %cst_65 : f32 to vector<32x128xf32>
    %302 = arith.addf %301, %300 : vector<32x128xf32>
    %303 = arith.divf %301, %302 : vector<32x128xf32>
    %304 = arith.mulf %295, %279 : vector<32x128xf32>
    %305 = arith.mulf %289, %297 : vector<32x128xf32>
    %306 = arith.addf %304, %305 : vector<32x128xf32>
    %307 = math.tanh %306 : vector<32x128xf32>
    %308 = arith.mulf %303, %307 : vector<32x128xf32>
    %c0_66 = arith.constant 0 : index
    %c0_67 = arith.constant 0 : index
    %309 = vector.load %arg10[%c0_66, %c0_67] : memref<32x128xf32, #tpu.memory_space<vmem>>, vector<32x128xf32>
    tpu.vector_store %arg10[%c0_66, %c0_67], %308 {strides = array<i32>} : memref<32x128xf32, #tpu.memory_space<vmem>>, vector<32x128xf32>,
    %c0_68 = arith.constant 0 : index
    %c0_69 = arith.constant 0 : index
    %310 = vector.load %arg11[%c0_68, %c0_69] : memref<32x128xf32, #tpu.memory_space<vmem>>, vector<32x128xf32>
    tpu.vector_store %arg11[%c0_68, %c0_69], %306 {strides = array<i32>} : memref<32x128xf32, #tpu.memory_space<vmem>>, vector<32x128xf32>,
    %c0_70 = arith.constant 0 : index
    %c0_71 = arith.constant 0 : index
    %311 = vector.load %arg7[%c0_70, %c0_71] : memref<128x128xf32, #tpu.memory_space<vmem>>, vector<128x128xf32>
    %cst_72 = arith.constant dense<0.000000e+00> : vector<32x128xf32>
    %312 = tpu.matmul %308, %311, %cst_72 {dimension_numbers = #tpu.dot_dimension_numbers<[1], [0], [0], [1], [0, 0, 1, 1], [], []>} : vector<32x128xf32>, vector<128x128xf32>, vector<32x128xf32> -> vector<32x128xf32>
    %c0_73 = arith.constant 0 : index
    %c0_74 = arith.constant 0 : index
    %313 = vector.load %arg8[%c0_73, %c0_74] : memref<1x128xf32, #tpu.memory_space<vmem>>, vector<1x128xf32>
    %314 = vector.broadcast %313 : vector<1x128xf32> to vector<32x128xf32>
    %315 = arith.addf %312, %314 : vector<32x128xf32>
    %316 = tpu.iota {dimensions = array<i32: 1>} : vector<32x128xi32>
    %c6_i32_75 = arith.constant 6 : i32
    %c0_i32_76 = arith.constant 0 : i32
    %317 = arith.cmpi eq, %c6_i32_75, %c0_i32_76 : i32
    %c1_i32_77 = arith.constant 1 : i32
    %318 = arith.select %317, %c1_i32_77, %c6_i32_75 : i32
    %319 = vector.broadcast %318 : i32 to vector<32x128xi32>
    %320 = arith.remsi %316, %319 : vector<32x128xi32>
    %c0_i32_78 = arith.constant 0 : i32
    %321 = vector.broadcast %c0_i32_78 : i32 to vector<32x128xi32>
    %322 = arith.cmpi ne, %320, %321 : vector<32x128xi32>
    %c0_i32_79 = arith.constant 0 : i32
    %323 = vector.broadcast %c0_i32_79 : i32 to vector<32x128xi32>
    %324 = arith.cmpi slt, %320, %323 : vector<32x128xi32>
    %c0_i32_80 = arith.constant 0 : i32
    %325 = arith.cmpi slt, %318, %c0_i32_80 : i32
    %326 = vector.broadcast %325 : i1 to vector<32x128xi1>
    %327 = vector.broadcast %326 : vector<32x128xi1> to vector<32x128xi1>
    %328 = arith.xori %324, %327 : vector<32x128xi1>
    %329 = arith.andi %328, %322 : vector<32x128xi1>
    %330 = vector.broadcast %318 : i32 to vector<32x128xi32>
    %331 = arith.addi %320, %330 : vector<32x128xi32>
    %332 = arith.select %329, %331, %320 : vector<32x128xi1>, vector<32x128xi32>
    %c60_i32 = arith.constant 60 : i32
    %333 = vector.broadcast %c60_i32 : i32 to vector<32x128xi32>
    %334 = arith.cmpi slt, %316, %333 : vector<32x128xi32>
    %c60_i32_81 = arith.constant 60 : i32
    %335 = vector.broadcast %c60_i32_81 : i32 to vector<32x128xi32>
    %336 = arith.cmpi sge, %316, %335 : vector<32x128xi32>
    %c63_i32 = arith.constant 63 : i32
    %337 = vector.broadcast %c63_i32 : i32 to vector<32x128xi32>
    %338 = arith.cmpi slt, %316, %337 : vector<32x128xi32>
    %339 = arith.andi %336, %338 : vector<32x128xi1>
    %340 = math.exp %315 : vector<32x128xf32>
    %cst_82 = arith.constant 0.707106769 : f32
    %341 = vector.broadcast %cst_82 : f32 to vector<32x128xf32>
    %342 = arith.mulf %340, %341 : vector<32x128xf32>
    %343 = math.exp %342 : vector<32x128xf32>
    %cst_83 = arith.constant 0.707106769 : f32
    %344 = vector.broadcast %cst_83 : f32 to vector<32x128xf32>
    %345 = arith.mulf %343, %344 : vector<32x128xf32>
    %346 = math.tanh %315 : vector<32x128xf32>
    %c0_i32_84 = arith.constant 0 : i32
    %347 = vector.broadcast %c0_i32_84 : i32 to vector<32x128xi32>
    %348 = arith.cmpi eq, %332, %347 : vector<32x128xi32>
    %c3_i32_85 = arith.constant 3 : i32
    %349 = vector.broadcast %c3_i32_85 : i32 to vector<32x128xi32>
    %350 = arith.cmpi eq, %332, %349 : vector<32x128xi32>
    %c4_i32_86 = arith.constant 4 : i32
    %351 = vector.broadcast %c4_i32_86 : i32 to vector<32x128xi32>
    %352 = arith.cmpi eq, %332, %351 : vector<32x128xi32>
    %c5_i32_87 = arith.constant 5 : i32
    %353 = vector.broadcast %c5_i32_87 : i32 to vector<32x128xi32>
    %354 = arith.cmpi eq, %332, %353 : vector<32x128xi32>
    %355 = arith.select %354, %346, %315 : vector<32x128xi1>, vector<32x128xf32>
    %356 = arith.select %352, %345, %355 : vector<32x128xi1>, vector<32x128xf32>
    %357 = arith.select %350, %342, %356 : vector<32x128xi1>, vector<32x128xf32>
    %cst_88 = arith.constant 1.000000e+00 : f32
    %358 = vector.broadcast %cst_88 : f32 to vector<32x128xf32>
    %359 = arith.select %348, %358, %357 : vector<32x128xi1>, vector<32x128xf32>
    %cst_89 = arith.constant 5.000000e-01 : f32
    %360 = vector.broadcast %cst_89 : f32 to vector<32x128xf32>
    %361 = arith.divf %315, %360 : vector<32x128xf32>
    %cst_90 = arith.constant 0xFF800000 : f32
    %362 = vector.broadcast %cst_90 : f32 to vector<32x128xf32>
    %363 = arith.select %339, %361, %362 : vector<32x128xi1>, vector<32x128xf32>
    %cst_91 = arith.constant dense<0xFF800000> : vector<32xf32>
    %364 = vector.multi_reduction <maximumf>, %363, %cst_91 [1] : vector<32x128xf32> to vector<32xf32>
    %365 = vector.shape_cast %364 : vector<32xf32> to vector<32x1xf32>
    %366 = vector.broadcast %365 : vector<32x1xf32> to vector<32x128xf32>
    %367 = arith.subf %363, %366 : vector<32x128xf32>
    %368 = math.exp %367 : vector<32x128xf32>
    %cst_92 = arith.constant 0.000000e+00 : f32
    %369 = vector.broadcast %cst_92 : f32 to vector<32x128xf32>
    %370 = arith.select %339, %368, %369 : vector<32x128xi1>, vector<32x128xf32>
    %cst_93 = arith.constant dense<0.000000e+00> : vector<32xf32>
    %371 = vector.multi_reduction <add>, %370, %cst_93 [1] : vector<32x128xf32> to vector<32xf32>
    %372 = vector.shape_cast %371 : vector<32xf32> to vector<32x1xf32>
    %373 = vector.broadcast %372 : vector<32x1xf32> to vector<32x128xf32>
    %374 = arith.divf %370, %373 : vector<32x128xf32>
    %375 = arith.select %334, %359, %374 : vector<32x128xi1>, vector<32x128xf32>
    %376 = vector.extract_strided_slice %375 {offsets = [0, 0], sizes = [32, 63], strides = [1, 1]} : vector<32x128xf32> to vector<32x63xf32>
    %c0_94 = arith.constant 0 : index
    %c0_95 = arith.constant 0 : index
    %377 = vector.load %arg12[%c0_94, %c0_95] : memref<32x63xf32, #tpu.memory_space<vmem>>, vector<32x63xf32>
    tpu.vector_store %arg12[%c0_94, %c0_95], %376 {strides = array<i32>} : memref<32x63xf32, #tpu.memory_space<vmem>>, vector<32x63xf32>,
    return
  }
}

</mosaic_0001>

<bundles_post_ra>
// kernel: tpu_custom_call.1
= control target key start
LH: loop header
LB: loop body
LE: loop exit
PB: predicated region body
PF: predicated region fallthrough
CT: control target
= control target key end

     0   :  { %18 = vsyncpa [#allocation3], 0  ;;  %s7624_s0 = inlined_call_operand.hbm [shape: f32[32,32], index: 0, kind: input, shape index: {}]   ;;  %s7625_s1 = inlined_call_operand.hbm [shape: f32[32,256], index: 1, kind: input, shape index: {}]   ;;  %s7626_s2 = inlined_call_operand.vmem [shape: f32[1,256], index: 2, kind: input, shape index: {}]   ;;  %s7627_s3 = inlined_call_operand.hbm [shape: f32[32,512], index: 3, kind: input, shape index: {}]   ;;  %s7628_s4 = inlined_call_operand.hbm [shape: f32[5,512], index: 4, kind: input, shape index: {}]   ;;  %s7629_s5 = inlined_call_operand.vmem [shape: f32[1,512], index: 5, kind: input, shape index: {}]   ;;  %s7630_s6 = inlined_call_operand.hbm [shape: f32[128,512], index: 6, kind: input, shape index: {}]   ;;  %s7631_s7 = inlined_call_operand.hbm [shape: f32[128,128], index: 7, kind: input, shape index: {}]   ;;  %s7632_s8 = inlined_call_operand.vmem [shape: f32[1,128], index: 8, kind: input, shape index: {}]   ;;  %s7633_s9 = inlined_call_operand.vmem [shape: f32[10,32,5], index: 9, kind: output, shape index: {0}]   ;;  %s7634_s10 = inlined_call_operand.hbm [shape: f32[32,128], index: 10, kind: output, shape index: {1}]   ;;  %s7635_s11 = inlined_call_operand.hbm [shape: f32[32,128], index: 11, kind: output, shape index: {2}]   ;;  %s7636_s12 = inlined_call_operand.hbm [shape: f32[32,63], index: 12, kind: output, shape index: {3}]  }
   0x1   :  { %19 = vsyncpa [#allocation6], 0 }
   0x2   :  { %20 = vsyncpa [#allocation9], 0 }
   0x3   :  { %21 = vsyncpa [#allocation12], 0 }
   0x4   :  { %22 = vsyncpa [#allocation4], 0 }
   0x5   :  { %23 = vsyncpa [#allocation15], 0  ;;  %s5520_s21 = smov [#allocation5]  }
   0x6   :  { %s41_s22 = sshll.u32 %s5520_s21, 4  ;;  %s42_s22 = int_to_ptr.vmem [resolvable:$true] %s41_s22 }
   0x7   :  { %s5336_s23 = scalar_lea.vmem %s42_s22, 1024  ;;  %p5341_p1 = scmp.lt.s32.totalorder %s42_s22, %s42_s22 }
   0x8   :  { %p5337_p0 = scmp.ne.s32.totalorder %s42_s22, %s5336_s23  ;;  %p5342_p2 = scmp.lt.s32.totalorder %s5336_s23, %s5336_s23 }
   0xa   :  { %p5343_p3 = por %p5342_p2, %p5341_p1 }
   0xc   :  { %p5344_p4 = pnand %p5343_p3, %p5337_p0 }
   0xe   :  { %5347 = shalt.err (!%p5344_p4)
}
   0xf   :  { %s5521_s24 = smov 256   ;;  %s5522_s25 = smov 16  }
  0x10   :  { %47 = dma.hbm_to_vmem [thread:$0]  %s7625_s1, 1024, %s42_s22, [#allocation6], %s5521_s24, %s5521_s24, %s5522_s25  }
  0x11   :  { %s5523_s28 = smov [#allocation8]   ;;  %s5524_s30 = smov [#allocation2]  }
  0x12   :  { %s68_s29 = sshll.u32 %s5523_s28, 4  ;;  %s29_s13 = sshll.u32 %s5524_s30, 4  ;;  %s69_s29 = int_to_ptr.vmem [resolvable:$true] %s68_s29  ;;  %s30_s13 = int_to_ptr.vmem [resolvable:$true] %s29_s13 }
  0x13   :  { %s5356_s14 = scalar_lea.vmem %s69_s29, 512  ;;  %p5361_p6 = scmp.lt.s32.totalorder %s69_s29, %s69_s29 }
  0x14   :  { %p5357_p5 = scmp.ne.s32.totalorder %s69_s29, %s5356_s14  ;;  %p5362_p7 = scmp.lt.s32.totalorder %s5356_s14, %s5356_s14 }
  0x16   :  { %p5363_p8 = por %p5362_p7, %p5361_p6 }
  0x18   :  { %p5364_p9 = pnand %p5363_p8, %p5357_p5 }
  0x1a   :  { %5367 = shalt.err (!%p5364_p9)
}
  0x1b   :  { %71 = dma.hbm_to_vmem [thread:$0]  %s7628_s4, 512, %s69_s29, [#allocation9]  }
  0x1c   :  { %s5376_s17 = scalar_lea.vmem %s30_s13, 512  ;;  %p5381_p11 = scmp.lt.s32.totalorder %s30_s13, %s30_s13 }
  0x1d   :  { %p5377_p10 = scmp.ne.s32.totalorder %s30_s13, %s5376_s17  ;;  %p5382_p12 = scmp.lt.s32.totalorder %s5376_s17, %s5376_s17 }
  0x1f   :  { %p5383_p13 = por %p5382_p12, %p5381_p11 }
  0x21   :  { %p5384_p0 = pnand %p5383_p13, %p5377_p10 }
  0x23   :  { %5387 = shalt.err (!%p5384_p0)
}
  0x24   :  { %s5525_s1 = smov 128   ;;  %s5526_s18 = smov 8  }
  0x25   :  { %35 = dma.hbm_to_vmem [thread:$0]  %s7624_s0, 512, %s30_s13, [#allocation3], %s5525_s1, %s5525_s1, %s5526_s18  }
  0x26   :  { %s5527_s21 = smov [#allocation7]  }
  0x27   :  { %s55_s22 = sshll.u32 %s5527_s21, 4  ;;  %s56_s22 = int_to_ptr.vmem [resolvable:$true] %s55_s22 }
  0x28   :  { %s5396_s4 = scalar_lea.vmem %s56_s22, 2048  ;;  %p5401_p2 = scmp.lt.s32.totalorder %s56_s22, %s56_s22 }
  0x29   :  { %p5397_p1 = scmp.ne.s32.totalorder %s56_s22, %s5396_s4  ;;  %p5402_p3 = scmp.lt.s32.totalorder %s5396_s4, %s5396_s4 }
  0x2b   :  { %p5403_p4 = por %p5402_p3, %p5401_p2 }
  0x2d   :  { %p5404_p5 = pnand %p5403_p4, %p5397_p1 }
  0x2f   :  { %5407 = shalt.err (!%p5404_p5)
}
  0x30   :  { %s5528_s23 = smov 512   ;;  %s5529_s24 = smov 32  }
  0x31   :  { %61 = dma.hbm_to_vmem [thread:$0]  %s7627_s3, 2048, %s56_s22, [#allocation6], %s5528_s23, %s5528_s23, %s5529_s24  }
  0x32   :  { %s5530_s27 = smov [#allocation10]   ;;  %s5531_s29 = smov [#allocation11]  }
  0x33   :  { %s79_s28 = sshll.u32 %s5530_s27, 4  ;;  %s91_s0 = sshll.u32 %s5531_s29, 4  ;;  %s80_s28 = int_to_ptr.vmem [resolvable:$true] %s79_s28  ;;  %s92_s0 = int_to_ptr.vmem [resolvable:$true] %s91_s0 }
  0x34   :  { %s5416_s30 = scalar_lea.vmem %s80_s28, 8192  ;;  %p5421_p7 = scmp.lt.s32.totalorder %s80_s28, %s80_s28 }
  0x35   :  { %p5417_p6 = scmp.ne.s32.totalorder %s80_s28, %s5416_s30  ;;  %p5422_p8 = scmp.lt.s32.totalorder %s5416_s30, %s5416_s30 }
  0x37   :  { %p5423_p9 = por %p5422_p8, %p5421_p7 }
  0x39   :  { %p5424_p10 = pnand %p5423_p9, %p5417_p6 }
  0x3b   :  { %5427 = shalt.err (!%p5424_p10)
}
  0x3c   :  { %85 = dma.hbm_to_vmem [thread:$0]  %s7630_s6, 8192, %s80_s28, [#allocation9], %s5528_s23, %s5528_s23, %s5529_s24  }
  0x3d   :  { %s5436_s15 = scalar_lea.vmem %s92_s0, 2048  ;;  %p5441_p12 = scmp.lt.s32.totalorder %s92_s0, %s92_s0 }
  0x3e   :  { %p5437_p11 = scmp.ne.s32.totalorder %s92_s0, %s5436_s15  ;;  %p5442_p13 = scmp.lt.s32.totalorder %s5436_s15, %s5436_s15 }
  0x40   :  { %p5443_p0 = por %p5442_p13, %p5441_p12 }
  0x42   :  { %p5444_p1 = pnand %p5443_p0, %p5437_p11 }
  0x44   :  { %5447 = shalt.err (!%p5444_p1)
}
  0x45   :  { %97 = dma.hbm_to_vmem [thread:$0]  %s7631_s7, 2048, %s92_s0, [#allocation12], %s5525_s1, %s5525_s1, %s5526_s18  }
  0x46   :  { %5508 = dma.done.wait [#allocation3], 512  }
  0x47   :  { %5509 = vsyncadd [#allocation3], 4294966784 }
  0x48   :  { %5510 = dma.done.wait [#allocation6], 3072  }
  0x49   :  { %5511 = vsyncadd [#allocation6], 4294964224 }
  0x4a   :  { %5512 = dma.done.wait [#allocation9], 8704  }
  0x4b   :  { %5513 = vsyncadd [#allocation9], 4294958592 }
  0x4c   :  { %5514 = dma.done.wait [#allocation12], 2048  }
  0x4d   :  { %5515 = vsyncadd [#allocation12], 4294965248  ;;  %v122_v0 = vlaneseq  ;;  %v7637_v1 = vmov 0.0   ;;  %vm131_vm1 = vcmask 39936   ;;  %v179_v4 = vld [vmem:[#allocation5 + $0x38] sm:$0xff]  ;;  %v178_v5 = vld [vmem:[#allocation5 + $0x30] sm:$0xff] }
  0x4e   :  { %269 = vmatprep.mubr.f32.mxu0 %v7637_v1  ;;  %404 = vmatprep.mubr.f32.mxu1 %v7637_v1  ;;  %v177_v6 = vld [vmem:[#allocation5 + $0x28] sm:$0xff]  ;;  %v176_v7 = vld [vmem:[#allocation5 + $0x20] sm:$0xff]  ;;  %v175_v8 = vld [vmem:[#allocation5 + $0x18] sm:$0xff]  ;;  %vm192_vm2 = vcmask 261120   ;;  %vm546_vm3 = vcmask 1044480   ;;  %s5534_s14 = smov [#allocation13]  }
  0x4f   :  { %v5628_v2 = vand.u32 127, %v122_v0  ;;  %229 = vmatprep.subr.mxu0 %v179_v4  ;;  %v174_v9 = vld [vmem:[#allocation5 + $0x10] sm:$0xff]  ;;  %v173_v10 = vld [vmem:[#allocation5 + $0x8] sm:$0xff]  ;;  %v314_v12 = vld [vmem:[#allocation7 + $0x60] sm:$0xff]  ;;  %v5860_v35 = vshrl.u32 %v122_v0, 7  ;;  %s4163_s15 = sshll.u32 %s5534_s14, 4  ;;  %s4164_s15 = int_to_ptr.vmem [resolvable:$true] %s4163_s15 }
  0x50   :  { %230 = vmatpush1.msra.mxu0 %v178_v5  ;;  %v315_v11 = vld [vmem:[#allocation7 + $0x68] sm:$0xff]  ;;  %v172_v14 = vld [vmem:[#allocation5] sm:$0xff]  ;;  %v317_v17 = vld [vmem:[#allocation7 + $0x78] sm:$0xff] }
  0x51   :  { %7881 = vst [vmem:[#allocation23_spill] sm:$0xff] %v5628_v2  ;;  %vm129_vm0 = vcmp.eq.s32.totalorder %v5628_v2, 2  ;;  %231 = vmatprep.subr.mxu0 %v177_v6  ;;  %v311_v13 = vld [vmem:[#allocation7 + $0x48] sm:$0xff]  ;;  %364 = vmatprep.subr.mxu1 %v315_v11  ;;  %v310_v15 = vld [vmem:[#allocation7 + $0x40] sm:$0xff]  ;;  %v316_v18 = vld [vmem:[#allocation7 + $0x70] sm:$0xff]  ;;  %vm522_vm4 = vcmp.eq.s32.totalorder %v5860_v35, 0 }
  0x52   :  { %v5634_v3 = vsel %vm129_vm0, 1.0, %v7637_v1  ;;  %232 = vmatpush1.msra.mxu0 %v176_v7  ;;  %v118_v16 = vld [vmem:[#allocation2] sm:$0xff]  ;;  %365 = vmatpush1.msra.mxu1 %v314_v12  ;;  %v307_v19 = vld [vmem:[#allocation7 + $0x28] sm:$0xff]  ;;  %v313_v20 = vld [vmem:[#allocation7 + $0x58] sm:$0xff] }
  0x53   :  { %132 = vst.msk [vmem:[%s7633_s9] sm:$0xff] %vm131_vm1, %v5634_v3  ;;  %133 = vst.msk [vmem:[%s7633_s9 + $0x8] sm:$0xff] %vm131_vm1, %v5634_v3  ;;  %233 = vmatprep.subr.mxu0 %v175_v8  ;;  %366 = vmatprep.subr.mxu1 %v311_v13  ;;  %v306_v21 = vld [vmem:[#allocation7 + $0x20] sm:$0xff]  ;;  %v312_v22 = vld [vmem:[#allocation7 + $0x50] sm:$0xff] }
  0x54   :  { %134 = vst.msk [vmem:[%s7633_s9 + $0x10] sm:$0xff] %vm131_vm1, %v5634_v3  ;;  %135 = vst.msk [vmem:[%s7633_s9 + $0x18] sm:$0xff] %vm131_vm1, %v5634_v3  ;;  %234 = vmatpush1.msra.mxu0 %v174_v9  ;;  %367 = vmatpush1.msra.mxu1 %v310_v15  ;;  %v119_v23 = vld [vmem:[#allocation2 + $0x8] sm:$0xff]  ;;  %v309_v25 = vld [vmem:[#allocation7 + $0x38] sm:$0xff] }
  0x55   :  { %136 = vst.msk [vmem:[%s7633_s9 + $0x20] sm:$0xff] %vm131_vm1, %v5634_v3  ;;  %137 = vst.msk [vmem:[%s7633_s9 + $0x28] sm:$0xff] %vm131_vm1, %v5634_v3  ;;  %235 = vmatprep.subr.mxu0 %v173_v10  ;;  %v303_v24 = vld [vmem:[#allocation7 + $0x8] sm:$0xff]  ;;  %368 = vmatprep.subr.mxu1 %v307_v19  ;;  %v302_v26 = vld [vmem:[#allocation7] sm:$0xff] }
  0x56   :  { %138 = vst.msk [vmem:[%s7633_s9 + $0x30] sm:$0xff] %vm131_vm1, %v5634_v3  ;;  %139 = vst.msk [vmem:[%s7633_s9 + $0x38] sm:$0xff] %vm131_vm1, %v5634_v3  ;;  %236 = vmatpush1.msra.mxu0 %v172_v14  ;;  %369 = vmatpush1.msra.mxu1 %v306_v21  ;;  %v308_v27 = vld [vmem:[#allocation7 + $0x30] sm:$0xff]  ;;  %v305_v28 = vld [vmem:[#allocation7 + $0x18] sm:$0xff] }
  0x57   :  { %140 = vst.msk [vmem:[%s7633_s9 + $0x40] sm:$0xff] %vm131_vm1, %v5634_v3  ;;  %141 = vst.msk [vmem:[%s7633_s9 + $0x48] sm:$0xff] %vm131_vm1, %v5634_v3  ;;  %4211 = vmatmul.mubr.msk.f32.vlgmr.msra.gmra.mxu0 %vm192_vm2, %v118_v16  ;;  %453 = vmatprep.subr.mxu0 %v317_v17  ;;  %v120_v29 = vld [vmem:[#allocation2 + $0x10] sm:$0xff]  ;;  %v519_v31 = vld [vmem:[#allocation8 + $0x8] sm:$0x1f] }
  0x58   :  { %142 = vst.msk [vmem:[%s7633_s9 + $0x50] sm:$0xff] %vm131_vm1, %v5634_v3  ;;  %143 = vst.msk [vmem:[%s7633_s9 + $0x58] sm:$0xff] %vm131_vm1, %v5634_v3  ;;  %275 = vmatprep.mubr.f32.mxu0 %v7637_v1  ;;  %454 = vmatpush1.msra.mxu0 %v316_v18  ;;  %v304_v30 = vld [vmem:[#allocation7 + $0x10] sm:$0xff]  ;;  %v121_v32 = vld [vmem:[#allocation2 + $0x18] sm:$0xff] }
  0x59   :  { %144 = vst.msk [vmem:[%s7633_s9 + $0x60] sm:$0xff] %vm131_vm1, %v5634_v3  ;;  %145 = vst.msk [vmem:[%s7633_s9 + $0x68] sm:$0xff] %vm131_vm1, %v5634_v3  ;;  %455 = vmatprep.subr.mxu0 %v313_v20  ;;  %370 = vmatprep.subr.mxu1 %v303_v24  ;;  %v518_v33 = vld [vmem:[#allocation8] sm:$0x1f]  ;;  %v521_v34 = vld [vmem:[#allocation8 + $0x18] sm:$0x1f] }
  0x5a   :  { %146 = vst.msk [vmem:[%s7633_s9 + $0x70] sm:$0xff] %vm131_vm1, %v5634_v3  ;;  %147 = vst.msk [vmem:[%s7633_s9 + $0x78] sm:$0xff] %vm131_vm1, %v5634_v3  ;;  %456 = vmatpush1.msra.mxu0 %v312_v22  ;;  %371 = vmatpush1.msra.mxu1 %v302_v26  ;;  %v5867_v36 = vld [vmem:[#allocation10 + $0x1e8] sm:$0xff]  ;;  %v520_v38 = vld [vmem:[#allocation8 + $0x10] sm:$0x1f] }
  0x5b   :  { %148 = vst.msk [vmem:[%s7633_s9 + $0x80] sm:$0xff] %vm131_vm1, %v5634_v3  ;;  %149 = vst.msk [vmem:[%s7633_s9 + $0x88] sm:$0xff] %vm131_vm1, %v5634_v3  ;;  %4212 = vmatmul.mubr.msk.f32.gmra.mxu0 %vm192_vm2, %v119_v23  ;;  %457 = vmatprep.subr.mxu0 %v309_v25  ;;  %v5889_v39 = vld [vmem:[#allocation10 + $0x1f8] sm:$0xff]  ;;  %v5891_v40 = vld [vmem:[#allocation10 + $0x1e0] sm:$0xff] }
  0x5c   :  { %150 = vst.msk [vmem:[%s7633_s9 + $0x90] sm:$0xff] %vm131_vm1, %v5634_v3  ;;  %151 = vst.msk [vmem:[%s7633_s9 + $0x98] sm:$0xff] %vm131_vm1, %v5634_v3  ;;  %281 = vmatprep.mubr.f32.mxu0 %v7637_v1  ;;  %458 = vmatpush1.msra.mxu0 %v308_v27  ;;  %v5895_v41 = vld [vmem:[#allocation10 + $0x1c8] sm:$0xff]  ;;  %v5901_v42 = vld [vmem:[#allocation10 + $0x1c0] sm:$0xff] }
  0x5d   :  { %152 = vst.msk [vmem:[%s7633_s9 + $0xa0] sm:$0xff] %vm131_vm1, %v5634_v3  ;;  %153 = vst.msk [vmem:[%s7633_s9 + $0xa8] sm:$0xff] %vm131_vm1, %v5634_v3  ;;  %4215 = vmatmul.mubr.msk.f32.vlgmr.msra.gmra.mxu1 %vm192_vm2, %v118_v16  ;;  %459 = vmatprep.subr.mxu0 %v305_v28  ;;  %v5906_v43 = vld [vmem:[#allocation10 + $0x1a8] sm:$0xff]  ;;  %v5913_v44 = vld [vmem:[#allocation10 + $0x1a0] sm:$0xff] }
  0x5e   :  { %154 = vst.msk [vmem:[%s7633_s9 + $0xb0] sm:$0xff] %vm131_vm1, %v5634_v3  ;;  %155 = vst.msk [vmem:[%s7633_s9 + $0xb8] sm:$0xff] %vm131_vm1, %v5634_v3  ;;  %410 = vmatprep.mubr.f32.mxu1 %v7637_v1  ;;  %460 = vmatpush1.msra.mxu0 %v304_v30  ;;  %v5917_v45 = vld [vmem:[#allocation10 + $0x188] sm:$0xff]  ;;  %v5923_v46 = vld [vmem:[#allocation10 + $0x180] sm:$0xff] }
  0x5f   :  { %156 = vst.msk [vmem:[%s7633_s9 + $0xc0] sm:$0xff] %vm131_vm1, %v5634_v3  ;;  %157 = vst.msk [vmem:[%s7633_s9 + $0xc8] sm:$0xff] %vm131_vm1, %v5634_v3  ;;  %4213 = vmatmul.mubr.msk.f32.gmra.mxu0 %vm192_vm2, %v120_v29  ;;  %4420 = vmatprep.subr.msk.mxu1 %vm546_vm3, %v519_v31  ;;  %v5926_v47 = vld [vmem:[#allocation10 + $0x168] sm:$0xff]  ;;  %v5930_v48 = vld [vmem:[#allocation10 + $0x160] sm:$0xff] }
  0x60   :  { %158 = vst.msk [vmem:[%s7633_s9 + $0xd0] sm:$0xff] %vm131_vm1, %v5634_v3  ;;  %159 = vst.msk [vmem:[%s7633_s9 + $0xd8] sm:$0xff] %vm131_vm1, %v5634_v3  ;;  %287 = vmatprep.mubr.f32.mxu0 %v7637_v1  ;;  %4223 = vmatprep.subr.msk.mxu0 %vm546_vm3, %v519_v31  ;;  %v5934_v49 = vld [vmem:[#allocation10 + $0x148] sm:$0xff]  ;;  %v5938_v50 = vld [vmem:[#allocation10 + $0x140] sm:$0xff] }
  0x61   :  { %160 = vst.msk [vmem:[%s7633_s9 + $0xe0] sm:$0xff] %vm131_vm1, %v5634_v3  ;;  %161 = vst.msk [vmem:[%s7633_s9 + $0xe8] sm:$0xff] %vm131_vm1, %v5634_v3  ;;  %4216 = vmatmul.mubr.msk.f32.gmra.mxu1 %vm192_vm2, %v119_v23  ;;  %v5940_v51 = vld [vmem:[#allocation10 + $0x1f0] sm:$0xff]  ;;  %v5944_v52 = vld [vmem:[#allocation10 + $0x1d8] sm:$0xff] }
  0x62   :  { %162 = vst.msk [vmem:[%s7633_s9 + $0xf0] sm:$0xff] %vm131_vm1, %v5634_v3  ;;  %163 = vst.msk [vmem:[%s7633_s9 + $0xf8] sm:$0xff] %vm131_vm1, %v5634_v3  ;;  %416 = vmatprep.mubr.f32.mxu1 %v7637_v1  ;;  %4421 = vmatpush1.msk.msra.mxu1 %vm546_vm3, %v518_v33  ;;  %v5947_v53 = vld [vmem:[#allocation10 + $0x128] sm:$0xff]  ;;  %v5951_v54 = vld [vmem:[#allocation10 + $0x1d0] sm:$0xff] }
  0x63   :  { %164 = vst.msk [vmem:[%s7633_s9 + $0x100] sm:$0xff] %vm131_vm1, %v5634_v3  ;;  %165 = vst.msk [vmem:[%s7633_s9 + $0x108] sm:$0xff] %vm131_vm1, %v5634_v3  ;;  %4214 = vmatmul.mubr.msk.f32.gmra.mxu0 %vm192_vm2, %v121_v32  ;;  %4229 = vmatprep.subr.msk.mxu1 %vm546_vm3, %v519_v31  ;;  %v5954_v55 = vld [vmem:[#allocation10 + $0x120] sm:$0xff]  ;;  %v5958_v56 = vld [vmem:[#allocation10 + $0x1b8] sm:$0xff] }
  0x64   :  { %166 = vst.msk [vmem:[%s7633_s9 + $0x110] sm:$0xff] %vm131_vm1, %v5634_v3  ;;  %167 = vst.msk [vmem:[%s7633_s9 + $0x118] sm:$0xff] %vm131_vm1, %v5634_v3  ;;  %493 = vmatprep.mubr.f32.mxu0 %v7637_v1  ;;  %v5961_v57 = vld [vmem:[#allocation10 + $0x1b0] sm:$0xff]  ;;  %v5965_v58 = vld [vmem:[#allocation10 + $0x198] sm:$0xff] }
  0x65   :  { %168 = vst.msk [vmem:[%s7633_s9 + $0x120] sm:$0xff] %vm131_vm1, %v5634_v3  ;;  %169 = vst.msk [vmem:[%s7633_s9 + $0x128] sm:$0xff] %vm131_vm1, %v5634_v3  ;;  %4217 = vmatmul.mubr.msk.f32.gmra.mxu1 %vm192_vm2, %v120_v29  ;;  %v5968_v59 = vld [vmem:[#allocation10 + $0x108] sm:$0xff]  ;;  %v5973_v60 = vld [vmem:[#allocation10 + $0x190] sm:$0xff] }
  0x66   :  { %170 = vst.msk [vmem:[%s7633_s9 + $0x130] sm:$0xff] %vm131_vm1, %v5634_v3  ;;  %171 = vst.msk [vmem:[%s7633_s9 + $0x138] sm:$0xff] %vm131_vm1, %v5634_v3  ;;  %422 = vmatprep.mubr.f32.mxu1 %v7637_v1  ;;  %v5977_v61 = vld [vmem:[#allocation10 + $0x178] sm:$0xff]  ;;  %v5980_v62 = vld [vmem:[#allocation10 + $0x170] sm:$0xff] }
  0x67   :  { %4219 = vmatmul.mubr.msk.f32.vlgmr.msra.gmra.mxu0 %vm192_vm2, %v118_v16  ;;  %7882 = vst [vmem:[#allocation24_spill] sm:$0xff] %v5867_v36  ;;  %vm526_vm5 = vmand %vm522_vm4, %vm129_vm0  ;;  %v5984_v63 = vld [vmem:[#allocation10 + $0x158] sm:$0xff]  ;;  %v5989_v0 = vld [vmem:[#allocation10 + $0x150] sm:$0xff] }
  0x68   :  { %499 = vmatprep.mubr.f32.mxu0 %v7637_v1  ;;  %4224 = vmatpush1.msk.msra.mxu0 %vm546_vm3, %v518_v33  ;;  %v530_v37 = vsel %vm526_vm5, 1.0, %v7637_v1  ;;  %7883 = vst [vmem:[#allocation25_spill] sm:$0xff] %v5889_v39  ;;  %7884 = vst [vmem:[#allocation26_spill] sm:$0xff] %v5891_v40  ;;  %v5993_v4 = vld [vmem:[#allocation10 + $0x138] sm:$0xff]  ;;  %v5996_v5 = vld [vmem:[#allocation10 + $0x130] sm:$0xff] }
  0x69   :  { %4226 = vmatprep.subr.msk.mxu0 %vm546_vm3, %v521_v34  ;;  %4218 = vmatmul.mubr.msk.f32.gmra.mxu1 %vm192_vm2, %v121_v32  ;;  %7885 = vst [vmem:[#allocation27_spill] sm:$0xff] %v5895_v41  ;;  %7886 = vst [vmem:[#allocation28_spill] sm:$0xff] %v5901_v42  ;;  %v5999_v6 = vld [vmem:[#allocation10 + $0x118] sm:$0xff]  ;;  %v6001_v7 = vld [vmem:[#allocation10 + $0x100] sm:$0xff] }
  0x6a   :  { %629 = vmatprep.mubr.f32.mxu1 %v7637_v1  ;;  %7887 = vst [vmem:[#allocation29_spill] sm:$0xff] %v5906_v43  ;;  %7888 = vst [vmem:[#allocation30_spill] sm:$0xff] %v5913_v44  ;;  %v6006_v8 = vld [vmem:[#allocation10 + $0x110] sm:$0xff]  ;;  %v6008_v9 = vld [vmem:[#allocation10 + $0xe8] sm:$0xff] }
  0x6b   :  { %4220 = vmatmul.mubr.msk.f32.gmra.mxu0 %vm192_vm2, %v119_v23  ;;  %7889 = vst [vmem:[#allocation31_spill] sm:$0xff] %v5926_v47  ;;  %7890 = vst [vmem:[#allocation32_spill] sm:$0xff] %v5934_v49  ;;  %v6012_v10 = vld [vmem:[#allocation10 + $0xf8] sm:$0xff]  ;;  %v6014_v11 = vld [vmem:[#allocation10 + $0xe0] sm:$0xff] }
  0x6c   :  { %505 = vmatprep.mubr.f32.mxu0 %v7637_v1  ;;  %7891 = vst [vmem:[#allocation33_spill] sm:$0xff] %v5940_v51  ;;  %7892 = vst [vmem:[#allocation34_spill] sm:$0xff] %v5944_v52  ;;  %v6018_v12 = vld [vmem:[#allocation10 + $0xf0] sm:$0xff]  ;;  %v6024_v13 = vld [vmem:[#allocation10 + $0xd8] sm:$0xff] }
  0x6d   :  { %630 = vmatmul.mubr.f32.vlgmr.msra.gmra.mxu1 %v7637_v1  ;;  %7893 = vst [vmem:[#allocation35_spill] sm:$0xff] %v5947_v53  ;;  %7894 = vst [vmem:[#allocation36_spill] sm:$0xff] %v5951_v54  ;;  %v6026_v14 = vld [vmem:[#allocation10 + $0xc0] sm:$0xff]  ;;  %v6030_v15 = vld [vmem:[#allocation10 + $0xd0] sm:$0xff] }
  0x6e   :  { %635 = vmatprep.mubr.f32.mxu1 %v7637_v1  ;;  %4230 = vmatpush1.msk.msra.mxu1 %vm546_vm3, %v518_v33  ;;  %7895 = vst [vmem:[#allocation37_spill] sm:$0xff] %v5958_v56  ;;  %7896 = vst [vmem:[#allocation38_spill] sm:$0xff] %v5961_v57  ;;  %v6032_v16 = vld [vmem:[#allocation10 + $0xa8] sm:$0xff]  ;;  %v6036_v17 = vld [vmem:[#allocation10 + $0xb8] sm:$0xff] }
  0x6f   :  { %4221 = vmatmul.mubr.msk.f32.gmra.mxu0 %vm192_vm2, %v120_v29  ;;  %1014 = vmatprep.subr.mxu1 %v5867_v36  ;;  %7897 = vst [vmem:[#allocation39_spill] sm:$0xff] %v5965_v58  ;;  %7898 = vst [vmem:[#allocation40_spill] sm:$0xff] %v5977_v61  ;;  %v6038_v18 = vld [vmem:[#allocation10 + $0xa0] sm:$0xff]  ;;  %v6042_v19 = vld [vmem:[#allocation10 + $0xb0] sm:$0xff] }
  0x70   :  { %511 = vmatprep.mubr.f32.mxu0 %v7637_v1  ;;  %7899 = vst [vmem:[#allocation41_spill] sm:$0xff] %v5980_v62  ;;  %7900 = vst [vmem:[#allocation42_spill] sm:$0xff] %v5984_v63  ;;  %v6044_v20 = vld [vmem:[#allocation10 + $0x88] sm:$0xff]  ;;  %v6048_v21 = vld [vmem:[#allocation10 + $0x98] sm:$0xff] }
  0x71   :  { %636 = vmatmul.mubr.f32.gmra.mxu1 %v7637_v1  ;;  %7901 = vst [vmem:[#allocation43_spill] sm:$0xff] %v5993_v4  ;;  %7902 = vst [vmem:[#allocation44_spill] sm:$0xff] %v5999_v6  ;;  %v6050_v22 = vld [vmem:[#allocation10 + $0x80] sm:$0xff]  ;;  %v6054_v23 = vld [vmem:[#allocation10 + $0x90] sm:$0xff] }
  0x72   :  { %641 = vmatprep.mubr.f32.mxu1 %v7637_v1  ;;  %7903 = vst [vmem:[#allocation45_spill] sm:$0xff] %v6012_v10  ;;  %7904 = vst [vmem:[#allocation46_spill] sm:$0xff] %v6018_v12  ;;  %v6056_v24 = vld [vmem:[#allocation10 + $0x68] sm:$0xff]  ;;  %v6060_v25 = vld [vmem:[#allocation10 + $0x78] sm:$0xff] }
  0x73   :  { %4222 = vmatmul.mubr.msk.f32.gmra.mxu0 %vm192_vm2, %v121_v32  ;;  %7906 = vst [vmem:[#allocation48_spill] sm:$0xff] %v6024_v13  ;;  %7907 = vst [vmem:[#allocation49_spill] sm:$0xff] %v6030_v15  ;;  %v6062_v26 = vld [vmem:[#allocation10 + $0x60] sm:$0xff]  ;;  %v6066_v27 = vld [vmem:[#allocation10 + $0x70] sm:$0xff] }
  0x74   :  { %623 = vmatprep.mubr.f32.mxu0 %v7637_v1  ;;  %7908 = vst [vmem:[#allocation50_spill] sm:$0xff] %v6032_v16  ;;  %7909 = vst [vmem:[#allocation51_spill] sm:$0xff] %v6036_v17  ;;  %v6068_v28 = vld [vmem:[#allocation10 + $0x48] sm:$0xff]  ;;  %v6072_v29 = vld [vmem:[#allocation10 + $0x58] sm:$0xff] }
  0x75   :  { %642 = vmatmul.mubr.f32.gmra.mxu1 %v7637_v1  ;;  %7910 = vst [vmem:[#allocation52_spill] sm:$0xff] %v6038_v18  ;;  %7911 = vst [vmem:[#allocation53_spill] sm:$0xff] %v6042_v19  ;;  %v6074_v30 = vld [vmem:[#allocation10 + $0x40] sm:$0xff]  ;;  %v6078_v31 = vld [vmem:[#allocation10 + $0x50] sm:$0xff] }
  0x76   :  { %820 = vmatprep.mubr.f32.mxu1 %v7637_v1  ;;  %7912 = vst [vmem:[#allocation54_spill] sm:$0xff] %v6044_v20  ;;  %7913 = vst [vmem:[#allocation55_spill] sm:$0xff] %v6048_v21  ;;  %v6080_v32 = vld [vmem:[#allocation10 + $0x28] sm:$0xff]  ;;  %v6084_v33 = vld [vmem:[#allocation10 + $0x38] sm:$0xff] }
  0x77   :  { %4225 = vmatmul.mubr.msk.f32.vlgmr.msra.gmra.mxu0 %vm131_vm1, %v530_v37  ;;  %7914 = vst [vmem:[#allocation56_spill] sm:$0xff] %v6050_v22  ;;  %7915 = vst [vmem:[#allocation57_spill] sm:$0xff] %v6054_v23  ;;  %v6098_v2 = vld [vmem:[#allocation10] sm:$0xff] }
  0x78   :  { %4227 = vmatpush1.msk.msra.mxu0 %vm546_vm3, %v520_v38  ;;  %712 = vmatprep.mubr.f32.mxu0 %v7637_v1  ;;  %7916 = vst [vmem:[#allocation58_spill] sm:$0xff] %v6056_v24  ;;  %7917 = vst [vmem:[#allocation59_spill] sm:$0xff] %v6060_v25 }
  0x79   :  { %4235 = vmatprep.subr.msk.mxu0 %vm546_vm3, %v521_v34  ;;  %4231 = vmatmul.mubr.msk.f32.vlgmr.msra.gmra.mxu1 %vm131_vm1, %v5634_v3  ;;  %7918 = vst [vmem:[#allocation60_spill] sm:$0xff] %v6062_v26  ;;  %7919 = vst [vmem:[#allocation61_spill] sm:$0xff] %v6066_v27  ;;  %v6086_v34 = vld [vmem:[#allocation10 + $0x20] sm:$0xff] }
  0x7a   :  { %826 = vmatprep.mubr.f32.mxu1 %v7637_v1  ;;  %1015 = vmatpush1.msra.mxu1 %v5891_v40  ;;  %7920 = vst [vmem:[#allocation62_spill] sm:$0xff] %v6068_v28  ;;  %7921 = vst [vmem:[#allocation63_spill] sm:$0xff] %v6072_v29 }
  0x7b   :  { %4228 = vmatmul.mubr.msk.f32.vlgmr.msra.gmra.mxu0 %vm131_vm1, %v530_v37  ;;  %1016 = vmatprep.subr.mxu1 %v5895_v41  ;;  %7922 = vst [vmem:[#allocation64_spill] sm:$0xff] %v6074_v30  ;;  %7923 = vst [vmem:[#allocation65_spill] sm:$0xff] %v6078_v31  ;;  %v6090_v37 = vld [vmem:[#allocation10 + $0x30] sm:$0xff] }
  0x7c   :  { %718 = vmatprep.mubr.f32.mxu0 %v7637_v1  ;;  %4236 = vmatpush1.msk.msra.mxu0 %vm546_vm3, %v520_v38  ;;  %7924 = vst [vmem:[#allocation66_spill] sm:$0xff] %v6080_v32  ;;  %7925 = vst [vmem:[#allocation67_spill] sm:$0xff] %v6084_v33  ;;  %v6092_v38 = vld [vmem:[#allocation10 + $0x8] sm:$0xff] }
  0x7d   :  { %1103 = vmatprep.subr.mxu0 %v5889_v39  ;;  %4232 = vmatmul.mubr.msk.f32.gmra.mxu1 %vm131_vm1, %v5634_v3  ;;  %7926 = vst [vmem:[#allocation68_spill] sm:$0xff] %v6086_v34  ;;  %7927 = vst [vmem:[#allocation69_spill] sm:$0xff] %v6090_v37 }
  0x7e   :  { %832 = vmatprep.mubr.f32.mxu1 %v7637_v1  ;;  %1017 = vmatpush1.msra.mxu1 %v5901_v42  ;;  %7928 = vst [vmem:[#allocation70_spill] sm:$0xff] %v6092_v38  ;;  %7930 = vst [vmem:[#allocation72_spill] sm:$0xff] %v6098_v2 }
  0x7f   :  { %719 = vmatmul.mubr.f32.gmra.mxu0 %v7637_v1  ;;  %1018 = vmatprep.subr.mxu1 %v5906_v43 }
  0x80   :  { %724 = vmatprep.mubr.f32.mxu0 %v7637_v1  ;;  %1019 = vmatpush1.msra.mxu1 %v5913_v44 }
  0x81   :  { %4233 = vmatmul.mubr.msk.f32.gmra.mxu1 %vm131_vm1, %v5634_v3  ;;  %1020 = vmatprep.subr.mxu1 %v5917_v45 }
  0x82   :  { %838 = vmatprep.mubr.f32.mxu1 %v7637_v1  ;;  %1021 = vmatpush1.msra.mxu1 %v5923_v46 }
  0x83   :  { %725 = vmatmul.mubr.f32.gmra.mxu0 %v7637_v1  ;;  %1022 = vmatprep.subr.mxu1 %v5926_v47 }
  0x84   :  { %730 = vmatprep.mubr.f32.mxu0 %v7637_v1  ;;  %1023 = vmatpush1.msra.mxu1 %v5930_v48 }
  0x85   :  { %4234 = vmatmul.mubr.msk.f32.gmra.mxu1 %vm131_vm1, %v5634_v3  ;;  %1024 = vmatprep.subr.mxu1 %v5934_v49 }
  0x86   :  { %1078 = vmatprep.mubr.f32.mxu1 %v7637_v1  ;;  %1025 = vmatpush1.msra.mxu1 %v5938_v50 }
  0x87   :  { %731 = vmatmul.mubr.f32.gmra.mxu0 %v7637_v1  ;;  %1026 = vmatprep.subr.mxu1 %v5947_v53 }
  0x88   :  { %909 = vmatprep.mubr.f32.mxu0 %v7637_v1  ;;  %1027 = vmatpush1.msra.mxu1 %v5954_v55 }
  0x89   :  { %1028 = vmatprep.subr.mxu1 %v5968_v59 }
  0x8a   :  { %1029 = vmatpush1.msra.mxu1 %v6001_v7 }
  0x8b   :  { %4237 = vmatmul.mubr.msk.f32.vlgmr.msra.gmra.mxu0 %vm131_vm1, %v5634_v3  ;;  %1030 = vmatprep.subr.mxu1 %v6008_v9 }
  0x8c   :  { %915 = vmatprep.mubr.f32.mxu0 %v7637_v1  ;;  %1104 = vmatpush1.msra.mxu0 %v5940_v51 }
  0x8d   :  { %1105 = vmatprep.subr.mxu0 %v5944_v52  ;;  %1031 = vmatpush1.msra.mxu1 %v6014_v11 }
  0x8e   :  { %1106 = vmatpush1.msra.mxu0 %v5951_v54 }
  0x8f   :  { %4238 = vmatmul.mubr.msk.f32.gmra.mxu0 %vm131_vm1, %v5634_v3  ;;  %1107 = vmatprep.subr.mxu0 %v5958_v56 }
  0x90   :  { %921 = vmatprep.mubr.f32.mxu0 %v7637_v1  ;;  %1108 = vmatpush1.msra.mxu0 %v5961_v57 }
  0x91   :  { %1109 = vmatprep.subr.mxu0 %v5965_v58 }
  0x92   :  { %1110 = vmatpush1.msra.mxu0 %v5973_v60 }
  0x93   :  { %4239 = vmatmul.mubr.msk.f32.gmra.mxu0 %vm131_vm1, %v5634_v3  ;;  %1111 = vmatprep.subr.mxu0 %v5977_v61 }
  0x94   :  { %927 = vmatprep.mubr.f32.mxu0 %v7637_v1  ;;  %1112 = vmatpush1.msra.mxu0 %v5980_v62  ;;  %v6096_v1 = vld [vmem:[#allocation10 + $0x18] sm:$0xff] }
  0x95   :  { %1113 = vmatprep.subr.mxu0 %v5984_v63  ;;  %7929 = vst [vmem:[#allocation71_spill] sm:$0xff] %v6096_v1 }
  0x96   :  { %1114 = vmatpush1.msra.mxu0 %v5989_v0 }
  0x97   :  { %4240 = vmatmul.mubr.msk.f32.gmra.mxu0 %vm131_vm1, %v5634_v3  ;;  %1115 = vmatprep.subr.mxu0 %v5993_v4  ;;  %v6020_v3 = vld [vmem:[#allocation10 + $0xc8] sm:$0xff] }
  0x98   :  { %1116 = vmatpush1.msra.mxu0 %v5996_v5  ;;  %7905 = vst [vmem:[#allocation47_spill] sm:$0xff] %v6020_v3  ;;  %1032 = vmatprep.subr.mxu1 %v6020_v3 }
  0x99   :  { %1117 = vmatprep.subr.mxu0 %v5999_v6  ;;  %1033 = vmatpush1.msra.mxu1 %v6026_v14 }
  0x9a   :  { %1118 = vmatpush1.msra.mxu0 %v6006_v8  ;;  %1034 = vmatprep.subr.mxu1 %v6032_v16 }
  0x9b   :  { %1119 = vmatprep.subr.mxu0 %v6012_v10  ;;  %1035 = vmatpush1.msra.mxu1 %v6038_v18 }
  0x9c   :  { %1120 = vmatpush1.msra.mxu0 %v6018_v12  ;;  %1036 = vmatprep.subr.mxu1 %v6044_v20 }
  0x9d   :  { %1121 = vmatprep.subr.mxu0 %v6024_v13  ;;  %1037 = vmatpush1.msra.mxu1 %v6050_v22 }
  0x9e   :  { %1122 = vmatpush1.msra.mxu0 %v6030_v15  ;;  %1038 = vmatprep.subr.mxu1 %v6056_v24 }
  0x9f   :  { %1123 = vmatprep.subr.mxu0 %v6036_v17  ;;  %1039 = vmatpush1.msra.mxu1 %v6062_v26 }
  0xa0   :  { %1124 = vmatpush1.msra.mxu0 %v6042_v19  ;;  %1040 = vmatprep.subr.mxu1 %v6068_v28 }
  0xa1   :  { %1125 = vmatprep.subr.mxu0 %v6048_v21  ;;  %1041 = vmatpush1.msra.mxu1 %v6074_v30  ;;  %v6102_v30 = vld [vmem:[#allocation10 + $0x10] sm:$0xff] }
  0xa2   :  { %1126 = vmatpush1.msra.mxu0 %v6054_v23  ;;  %1042 = vmatprep.subr.mxu1 %v6080_v32  ;;  %7931 = vst [vmem:[#allocation73_spill] sm:$0xff] %v6102_v30  ;;  %v7932_v32 = vmov 0.0  }
  0xa3   :  { %1127 = vmatprep.subr.mxu0 %v6060_v25  ;;  %1043 = vmatpush1.msra.mxu1 %v6086_v34  ;;  %v7669_v34 = vsub.s32 0, %v5860_v35 }
  0xa4   :  { %1128 = vmatpush1.msra.mxu0 %v6066_v27  ;;  %1044 = vmatprep.subr.mxu1 %v6092_v38  ;;  %v180_v38 = vld [vmem:[%s7626_s2] sm:$0x3] }
  0xa5   :  { %1129 = vmatprep.subr.mxu0 %v6072_v29  ;;  %1045 = vmatpush1.msra.mxu1 %v6098_v2 }
  0xa6   :  { %1130 = vmatpush1.msra.mxu0 %v6078_v31  ;;  %1167 = vmatprep.mubr.f32.mxu0 %v7932_v32 }
  0xa7   :  { %1131 = vmatprep.subr.mxu0 %v6084_v33  ;;  %1304 = vmatprep.subr.mxu1 %v5867_v36 }
  0xa8   :  { %1132 = vmatpush1.msra.mxu0 %v6090_v37  ;;  %v185_v37 = vrot.slane %v180_v38, %v7669_v34 }
  0xa9   :  { %1133 = vmatprep.subr.mxu0 %v6096_v1  ;;  %v7674_v1 = vsub.s32 1, %v5860_v35 }
  0xaa   :  { %1134 = vmatpush1.msra.mxu0 %v6102_v30 }
  0xab   :  { %1393 = vmatprep.subr.mxu0 %v5889_v39  ;;  %v6122_v39 = vrot.slane %v180_v38, %v7674_v1 }
 0x117   :  { %v271_v2 = vpop.f32.mrf.mxu0 }
 0x118   :  { %v272_v33 = vadd.f32 %v271_v2, %v185_v37 }
 0x119   :  { %v6118_v31 = vpop.f32.mrf.mxu0 }
 0x11a   :  { %7933 = vst [vmem:[#allocation74_spill] sm:$0xff] %v6118_v31  ;;  %4440 = vtanh.f32 %v272_v33 }
 0x11b   :  { %v277_v30 = vpop.f32.mrf.mxu0 }
 0x11c   :  { %v278_v36 = vadd.f32 %v277_v30, %v185_v37 }
 0x11d   :  { %v279_v29 = vpop.f32.mrf.mxu0  ;;  %v6127_v27 = vpop.f32.mrf.mxu1 }
 0x11e   :  { %4442 = vtanh.f32 %v278_v36  ;;  %v6125_v28 = vadd.f32 %v279_v29, %v6122_v39 }
 0x11f   :  { %v283_v34 = vpop.f32.mrf.mxu0  ;;  %v6129_v26 = vpop.f32.mrf.mxu1 }
 0x120   :  { %7934 = vst [vmem:[#allocation75_spill] sm:$0xff] %v6125_v28  ;;  %v284_v2 = vadd.f32 %v283_v34, %v185_v37 }
 0x121   :  { %v285_v25 = vpop.f32.mrf.mxu0  ;;  %v6134_v31 = vpop.f32.mrf.mxu1 }
 0x122   :  { %4444 = vtanh.f32 %v284_v2  ;;  %v6132_v33 = vadd.f32 %v285_v25, %v6122_v39 }
 0x123   :  { %v289_v38 = vpop.f32.mrf.mxu0  ;;  %v6136_v1 = vpop.f32.mrf.mxu1 }
 0x124   :  { %7935 = vst [vmem:[#allocation76_spill] sm:$0xff] %v6132_v33  ;;  %v290_v30 = vadd.f32 %v289_v38, %v185_v37 }
 0x125   :  { %v291_v36 = vpop.f32.mrf.mxu0  ;;  %v6141_v28 = vpop.f32.mrf.mxu1 }
 0x126   :  { %4446 = vtanh.f32 %v290_v30  ;;  %v6139_v29 = vadd.f32 %v291_v36, %v6122_v39 }
 0x127   :  { %v4441_v34 = vpop.eup %4440  ;;  %v6143_v24 = vpop.f32.mrf.mxu0 }
 0x128   :  { %7936 = vst [vmem:[#allocation77_spill] sm:$0xff] %v6139_v29  ;;  %1079 = vmatmul.mubr.f32.vlgmr.msra.gmra.mxu1 %v4441_v34  ;;  %1168 = vmatmul.mubr.f32.vlgmr.msra.gmra.mxu0 %v4441_v34  ;;  %v6145_v25 = vpop.f32.mrf.mxu1 }
 0x129   :  { %1084 = vmatprep.mubr.f32.mxu1 %v7932_v32  ;;  %1173 = vmatprep.mubr.f32.mxu0 %v7932_v32  ;;  %v6149_v37 = vpop.f32.mrf.mxu0 }
 0x12a   :  { %v6151_v2 = vpop.f32.mrf.mxu1  ;;  %1305 = vmatpush1.msra.mxu1 %v5891_v40  ;;  %1394 = vmatpush1.msra.mxu0 %v5940_v51 }
 0x12b   :  { %v4443_v38 = vpop.eup %4442  ;;  %v6155_v30 = vpop.f32.mrf.mxu0  ;;  %1306 = vmatprep.subr.mxu1 %v5895_v41  ;;  %1395 = vmatprep.subr.mxu0 %v5944_v52 }
 0x12c   :  { %1085 = vmatmul.mubr.f32.gmra.mxu1 %v4443_v38  ;;  %1174 = vmatmul.mubr.f32.gmra.mxu0 %v4443_v38  ;;  %v6159_v36 = vpop.f32.mrf.mxu1  ;;  %v6176_v38 = vld [vmem:[%s7629_s5] sm:$0xf] }
 0x12d   :  { %7937 = vst [vmem:[#allocation78_spill] sm:$0xff] %v6159_v36  ;;  %1090 = vmatprep.mubr.f32.mxu1 %v7932_v32  ;;  %1179 = vmatprep.mubr.f32.mxu0 %v7932_v32  ;;  %v6163_v34 = vpop.f32.mrf.mxu0  ;;  %v7939_v36 = vsub.s32 1, %v5860_v35 }
 0x12e   :  { %v6165_v40 = vpop.f32.mrf.mxu1  ;;  %1307 = vmatpush1.msra.mxu1 %v5901_v42  ;;  %1396 = vmatpush1.msra.mxu0 %v5951_v54 }
 0x12f   :  { %v4445_v51 = vpop.eup %4444  ;;  %v6169_v41 = vpop.f32.mrf.mxu0  ;;  %1308 = vmatprep.subr.mxu1 %v5906_v43  ;;  %1397 = vmatprep.subr.mxu0 %v5958_v56  ;;  %v7938_v56 = vsub.s32 0, %v5860_v35 }
 0x130   :  { %1091 = vmatmul.mubr.f32.gmra.mxu1 %v4445_v51  ;;  %1180 = vmatmul.mubr.f32.gmra.mxu0 %v4445_v51  ;;  %v6178_v52 = vpop.f32.mrf.mxu1 }
 0x131   :  { %1096 = vmatprep.mubr.f32.mxu1 %v7932_v32  ;;  %1185 = vmatprep.mubr.f32.mxu0 %v7932_v32  ;;  %v6182_v54 = vpop.f32.mrf.mxu0  ;;  %v323_v43 = vrot.slane %v6176_v38, %v7938_v56 }
 0x132   :  { %v6184_v42 = vpop.f32.mrf.mxu1  ;;  %1309 = vmatpush1.msra.mxu1 %v5913_v44  ;;  %1398 = vmatpush1.msra.mxu0 %v5961_v57  ;;  %v6200_v44 = vrot.slane %v6176_v38, %v7939_v36 }
 0x133   :  { %v4447_v51 = vpop.eup %4446  ;;  %v6191_v29 = vpop.f32.mrf.mxu0  ;;  %1310 = vmatprep.subr.mxu1 %v5917_v45  ;;  %1399 = vmatprep.subr.mxu0 %v5965_v58 }
 0x134   :  { %1097 = vmatmul.mubr.f32.gmra.mxu1 %v4447_v51  ;;  %1186 = vmatmul.mubr.f32.gmra.mxu0 %v4447_v51  ;;  %v6195_v33 = vpop.f32.mrf.mxu1  ;;  %v6211_v51 = vadd.f32 %v6127_v27, %v323_v43 }
 0x135   :  { %v6202_v57 = vpop.f32.mrf.mxu0  ;;  %1311 = vmatpush1.msra.mxu1 %v5923_v46  ;;  %1400 = vmatpush1.msra.mxu0 %v5973_v60 }
 0x136   :  { %v6206_v56 = vpop.f32.mrf.mxu1  ;;  %1312 = vmatprep.subr.mxu1 %v5926_v47  ;;  %1401 = vmatprep.subr.mxu0 %v5977_v61  ;;  %v6223_v47 = vadd.f32 %v6129_v26, %v6200_v44 }
 0x137   :  { %v6213_v58 = vpop.f32.mrf.mxu0  ;;  %1313 = vmatpush1.msra.mxu1 %v5930_v48  ;;  %1402 = vmatpush1.msra.mxu0 %v5980_v62  ;;  %v6232_v62 = vadd.f32 %v6134_v31, %v323_v43 }
 0x138   :  { %v6217_v36 = vpop.f32.mrf.mxu1  ;;  %1314 = vmatprep.subr.mxu1 %v5934_v49  ;;  %1403 = vmatprep.subr.mxu0 %v5984_v63 }
 0x139   :  { %v6225_v61 = vpop.f32.mrf.mxu0  ;;  %1315 = vmatpush1.msra.mxu1 %v5938_v50  ;;  %1404 = vmatpush1.msra.mxu0 %v5989_v0 }
 0x13a   :  { %v822_v27 = vpop.f32.mrf.mxu1  ;;  %1316 = vmatprep.subr.mxu1 %v5947_v53  ;;  %1405 = vmatprep.subr.mxu0 %v5993_v4  ;;  %v6245_v4 = vadd.f32 %v6136_v1, %v6200_v44 }
 0x13b   :  { %v6234_v49 = vpop.f32.mrf.mxu0  ;;  %v6237_v63 = vadd.f32 %v822_v27, %v6211_v51  ;;  %1317 = vmatpush1.msra.mxu1 %v5954_v55  ;;  %1406 = vmatpush1.msra.mxu0 %v5996_v5 }
 0x13c   :  { %v824_v26 = vpop.f32.mrf.mxu1  ;;  %1318 = vmatprep.subr.mxu1 %v5968_v59  ;;  %1407 = vmatprep.subr.mxu0 %v5999_v6 }
 0x13d   :  { %7940 = vst [vmem:[#allocation79_spill] sm:$0xff] %v6237_v63  ;;  %v6247_v31 = vpop.f32.mrf.mxu0  ;;  %v6250_v53 = vadd.f32 %v824_v26, %v6223_v47  ;;  %1319 = vmatpush1.msra.mxu1 %v6001_v7  ;;  %1408 = vmatpush1.msra.mxu0 %v6006_v8  ;;  %v6257_v63 = vadd.f32 %v6141_v28, %v323_v43  ;;  %v330_v26 = vsub.s32 2, %v5860_v35 }
 0x13e   :  { %v828_v27 = vpop.f32.mrf.mxu1  ;;  %1320 = vmatprep.subr.mxu1 %v6008_v9  ;;  %1409 = vmatprep.subr.mxu0 %v6012_v10  ;;  %v6271_v28 = vadd.f32 %v6145_v25, %v6200_v44 }
 0x13f   :  { %7941 = vst [vmem:[#allocation80_spill] sm:$0xff] %v6250_v53  ;;  %v6259_v6 = vpop.f32.mrf.mxu0  ;;  %v6262_v1 = vadd.f32 %v828_v27, %v6232_v62  ;;  %1321 = vmatpush1.msra.mxu1 %v6014_v11  ;;  %1410 = vmatpush1.msra.mxu0 %v6018_v12 }
 0x140   :  { %v830_v53 = vpop.f32.mrf.mxu1  ;;  %1322 = vmatprep.subr.mxu1 %v6020_v3  ;;  %1411 = vmatprep.subr.mxu0 %v6024_v13  ;;  %v6284_v13 = vadd.f32 %v6151_v2, %v323_v43 }
 0x141   :  { %7942 = vst [vmem:[#allocation81_spill] sm:$0xff] %v6262_v1  ;;  %v6273_v10 = vpop.f32.mrf.mxu0  ;;  %v6276_v27 = vadd.f32 %v830_v53, %v6245_v4  ;;  %1323 = vmatpush1.msra.mxu1 %v6026_v14  ;;  %1412 = vmatpush1.msra.mxu0 %v6030_v15  ;;  %v334_v1 = vsub.s32 3, %v5860_v35  ;;  %v331_v53 = vrot.slane %v6176_v38, %v330_v26  ;;  %v7947_v26 = vld [vmem:[#allocation59_spill] sm:$0xff] }
 0x142   :  { %v834_v12 = vpop.f32.mrf.mxu1  ;;  %1324 = vmatprep.subr.mxu1 %v6032_v16  ;;  %1413 = vmatprep.subr.mxu0 %v6036_v17 }
 0x143   :  { %7943 = vst [vmem:[#allocation82_spill] sm:$0xff] %v6276_v27  ;;  %v6286_v25 = vpop.f32.mrf.mxu0  ;;  %v6289_v3 = vadd.f32 %v834_v12, %v6257_v63  ;;  %1325 = vmatpush1.msra.mxu1 %v6038_v18  ;;  %1414 = vmatpush1.msra.mxu0 %v6042_v19  ;;  %v6304_v12 = vrot.slane %v6176_v38, %v334_v1  ;;  %v7949_v19 = vld [vmem:[#allocation60_spill] sm:$0xff]  ;;  %v7952_v38 = vld [vmem:[#allocation63_spill] sm:$0xff] }
 0x144   :  { %v836_v35 = vpop.f32.mrf.mxu1  ;;  %1326 = vmatprep.subr.mxu1 %v6044_v20  ;;  %1415 = vmatprep.subr.mxu0 %v6048_v21  ;;  %v7962_v18 = vld [vmem:[#allocation72_spill] sm:$0xff] }
 0x145   :  { %7944 = vst [vmem:[#allocation83_spill] sm:$0xff] %v6289_v3  ;;  %v6296_v27 = vpop.f32.mrf.mxu0  ;;  %v6299_v43 = vadd.f32 %v836_v35, %v6271_v28  ;;  %1327 = vmatpush1.msra.mxu1 %v6050_v22  ;;  %1416 = vmatpush1.msra.mxu0 %v6054_v23  ;;  %v7946_v3 = vld [vmem:[#allocation58_spill] sm:$0xff]  ;;  %v7950_v35 = vld [vmem:[#allocation61_spill] sm:$0xff]  ;;  %v7961_v22 = vld [vmem:[#allocation71_spill] sm:$0xff] }
 0x146   :  { %v840_v2 = vpop.f32.mrf.mxu1  ;;  %1328 = vmatprep.subr.mxu1 %v7946_v3  ;;  %1417 = vmatprep.subr.mxu0 %v7947_v26  ;;  %v7951_v23 = vld [vmem:[#allocation62_spill] sm:$0xff]  ;;  %v7953_v3 = vld [vmem:[#allocation64_spill] sm:$0xff]  ;;  %v7954_v26 = vld [vmem:[#allocation65_spill] sm:$0xff] }
 0x147   :  { %7945 = vst [vmem:[#allocation84_spill] sm:$0xff] %v6299_v43  ;;  %v6308_v20 = vpop.f32.mrf.mxu0  ;;  %v6311_v21 = vadd.f32 %v840_v2, %v6284_v13  ;;  %1329 = vmatpush1.msra.mxu1 %v7949_v19  ;;  %1418 = vmatpush1.msra.mxu0 %v7950_v35  ;;  %v6316_v43 = vadd.f32 %v6143_v24, %v331_v53  ;;  %v7956_v35 = vld [vmem:[#allocation67_spill] sm:$0xff]  ;;  %v7957_v19 = vld [vmem:[#allocation68_spill] sm:$0xff] }
 0x148   :  { %1330 = vmatprep.subr.mxu1 %v7951_v23  ;;  %1419 = vmatprep.subr.mxu0 %v7952_v38  ;;  %v6326_v2 = vadd.f32 %v6149_v37, %v6304_v12  ;;  %v7958_v23 = vld [vmem:[#allocation69_spill] sm:$0xff]  ;;  %v6333_v38 = vadd.f32 %v6155_v30, %v331_v53 }
 0x149   :  { %7948 = vst [vmem:[#allocation85_spill] sm:$0xff] %v6311_v21  ;;  %v6320_v1 = vpop.f32.mrf.mxu0  ;;  %1331 = vmatpush1.msra.mxu1 %v7953_v3  ;;  %1420 = vmatpush1.msra.mxu0 %v7954_v26  ;;  %v7955_v21 = vld [vmem:[#allocation66_spill] sm:$0xff]  ;;  %v7964_v30 = vld [vmem:[#allocation73_spill] sm:$0xff] }
 0x14a   :  { %1332 = vmatprep.subr.mxu1 %v7955_v21  ;;  %1421 = vmatprep.subr.mxu0 %v7956_v35  ;;  %v7960_v26 = vld [vmem:[#allocation70_spill] sm:$0xff]  ;;  %v6367_v35 = vadd.f32 %v6191_v29, %v331_v53 }
 0x14b   :  { %v911_v24 = vpop.f32.mrf.mxu0  ;;  %1333 = vmatpush1.msra.mxu1 %v7957_v19  ;;  %1422 = vmatpush1.msra.mxu0 %v7958_v23  ;;  %v6344_v19 = vadd.f32 %v6163_v34, %v6304_v12 }
 0x14c   :  { %v6336_v3 = vadd.f32 %v911_v24, %v6316_v43  ;;  %1334 = vmatprep.subr.mxu1 %v7960_v26  ;;  %1423 = vmatprep.subr.mxu0 %v7961_v22  ;;  %v7966_v22 = vld [vmem:[#allocation25_spill] sm:$0xff] }
 0x14d   :  { %v913_v37 = vpop.f32.mrf.mxu0  ;;  %1335 = vmatpush1.msra.mxu1 %v7962_v18  ;;  %1368 = vmatprep.mubr.f32.mxu1 %v7932_v32  ;;  %v6354_v18 = vadd.f32 %v6169_v41, %v331_v53 }
 0x14e   :  { %7959 = vst [vmem:[#allocation86_spill] sm:$0xff] %v6336_v3  ;;  %v6347_v23 = vadd.f32 %v913_v37, %v6326_v2  ;;  %1424 = vmatpush1.msra.mxu0 %v7964_v30  ;;  %1457 = vmatprep.mubr.f32.mxu0 %v7932_v32  ;;  %v7965_v3 = vld [vmem:[#allocation24_spill] sm:$0xff]  ;;  %v6361_v37 = vadd.f32 %v6182_v54, %v6304_v12  ;;  %v6378_v54 = vpop.f32.mrf.mxu1 }
 0x14f   :  { %v917_v24 = vpop.f32.mrf.mxu0  ;;  %1594 = vmatprep.subr.mxu1 %v7965_v3  ;;  %1683 = vmatprep.subr.mxu0 %v7966_v22  ;;  %7972 = vst [vmem:[#allocation91_spill] sm:$0xff] %v6378_v54 }
 0x150   :  { %7963 = vst [vmem:[#allocation87_spill] sm:$0xff] %v6347_v23  ;;  %v6357_v26 = vadd.f32 %v917_v24, %v6333_v38 }
 0x151   :  { %v919_v34 = vpop.f32.mrf.mxu0 }
 0x152   :  { %7967 = vst [vmem:[#allocation24_spill] sm:$0xff] %v6357_v26  ;;  %v6364_v23 = vadd.f32 %v919_v34, %v6344_v19  ;;  %v737_v34 = vadd.f32 %v6213_v58, %v6211_v51 }
 0x153   :  { %v923_v30 = vpop.f32.mrf.mxu0 }
 0x154   :  { %7968 = vst [vmem:[#allocation25_spill] sm:$0xff] %v6364_v23  ;;  %v6370_v3 = vadd.f32 %v923_v30, %v6354_v18  ;;  %v738_v30 = vadd.f32 %v6225_v61, %v6223_v47  ;;  %v745_v47 = vadd.f32 %v6184_v42, %v6257_v63  ;;  %v740_v42 = vadd.f32 %v6247_v31, %v6326_v2 }
 0x155   :  { %v925_v41 = vpop.f32.mrf.mxu0  ;;  %v744_v31 = vadd.f32 %v6273_v10, %v6344_v19  ;;  %v6417_v10 = vadd.f32 %v6202_v57, %v6304_v12  ;;  %v748_v19 = vadd.f32 %v6296_v27, %v6361_v37 }
 0x156   :  { %7969 = vst [vmem:[#allocation88_spill] sm:$0xff] %v6370_v3  ;;  %v6373_v22 = vadd.f32 %v925_v41, %v6361_v37 }
 0x157   :  { %v929_v24 = vpop.f32.mrf.mxu0  ;;  %v752_v57 = vadd.f32 %v6320_v1, %v6417_v10 }
 0x158   :  { %7970 = vst [vmem:[#allocation89_spill] sm:$0xff] %v6373_v22  ;;  %v6376_v26 = vadd.f32 %v929_v24, %v6367_v35  ;;  %v741_v22 = vadd.f32 %v6165_v40, %v6232_v62  ;;  %v7974_v40 = vld [vmem:[#allocation74_spill] sm:$0xff] }
 0x159   :  { %v6380_v21 = vpop.f32.mrf.mxu0  ;;  %v274_v62 = vadd.f32 %v7974_v40, %v6122_v39 }
 0x15a   :  { %7971 = vst [vmem:[#allocation90_spill] sm:$0xff] %v6376_v26  ;;  %7973 = vst [vmem:[#allocation92_spill] sm:$0xff] %v6380_v21  ;;  %v742_v21 = vadd.f32 %v6178_v52, %v6245_v4  ;;  %v746_v52 = vadd.f32 %v6195_v33, %v6271_v28 }
 0x1e8   :  { %v1080_v29 = vpop.f32.mrf.mxu1  ;;  %v1169_v53 = vpop.f32.mrf.mxu0 }
 0x1e9   :  { %v1192_v3 = vadd.f32 %v1080_v29, %v737_v34 }
 0x1ea   :  { %v1082_v23 = vpop.f32.mrf.mxu1  ;;  %v1171_v41 = vpop.f32.mrf.mxu0 }
 0x1eb   :  { %v4241_v24 = vmul.f32 -1.442695, %v1192_v3  ;;  %v1193_v26 = vadd.f32 %v1082_v23, %v738_v30  ;;  %v7975_v23 = vld [vmem:[#allocation78_spill] sm:$0xff] }
 0x1ec   :  { %v1086_v17 = vpop.f32.mrf.mxu1  ;;  %v6388_v54 = vpop.f32.mrf.mxu0  ;;  %v6398_v3 = vadd.f32 %v7975_v23, %v6200_v44  ;;  %v1195_v44 = vadd.f32 %v1171_v41, %v740_v42  ;;  %v739_v41 = vadd.f32 %v6234_v49, %v6316_v43  ;;  %v743_v49 = vadd.f32 %v6259_v6, %v6333_v38 }
 0x1ed   :  { %4448 = vpow2.f32 %v4241_v24  ;;  %v4245_v58 = vmul.f32 -1.442695, %v1193_v26  ;;  %v1196_v51 = vadd.f32 %v1086_v17, %v741_v22 }
 0x1ee   :  { %v1088_v16 = vpop.f32.mrf.mxu1  ;;  %v1177_v15 = vpop.f32.mrf.mxu0  ;;  %v750_v33 = vadd.f32 %v6217_v36, %v6398_v3  ;;  %v1194_v23 = vadd.f32 %v1169_v53, %v739_v41  ;;  %v1198_v27 = vadd.f32 %v6388_v54, %v743_v49  ;;  %v747_v53 = vadd.f32 %v6286_v25, %v6354_v18 }
 0x1ef   :  { %4450 = vpow2.f32 %v4245_v58  ;;  %v4242_v61 = vmul.f32 -1.442695, %v1196_v51  ;;  %v1197_v34 = vadd.f32 %v1088_v16, %v742_v21  ;;  %v749_v16 = vadd.f32 %v6206_v56, %v6284_v13  ;;  %v7976_v58 = vld [vmem:[#allocation75_spill] sm:$0xff]  ;;  %v7977_v51 = vld [vmem:[#allocation76_spill] sm:$0xff] }
 0x1f0   :  { %v1092_v29 = vpop.f32.mrf.mxu1  ;;  %v1181_v26 = vpop.f32.mrf.mxu0  ;;  %v1199_v36 = vadd.f32 %v1177_v15, %v744_v31  ;;  %v751_v54 = vadd.f32 %v6308_v20, %v6367_v35 }
 0x1f1   :  { %4452 = vpow2.f32 %v4242_v61  ;;  %v4246_v4 = vmul.f32 -1.442695, %v1197_v34  ;;  %v1200_v17 = vadd.f32 %v1092_v29, %v745_v47  ;;  %v4249_v47 = vmul.f32 -1.442695, %v1195_v44 }
 0x1f2   :  { %v1094_v63 = vpop.f32.mrf.mxu1  ;;  %v1183_v30 = vpop.f32.mrf.mxu0  ;;  %v4250_v15 = vmul.f32 -1.442695, %v1199_v36 }
 0x1f3   :  { %4454 = vpow2.f32 %v4246_v4  ;;  %v4243_v39 = vmul.f32 -1.442695, %v1200_v17  ;;  %v1201_v21 = vadd.f32 %v1094_v63, %v746_v52  ;;  %v1203_v43 = vadd.f32 %v1183_v30, %v748_v19 }
 0x1f4   :  { %4456 = vtanh.f32 %v274_v62  ;;  %v1098_v22 = vpop.f32.mrf.mxu1  ;;  %v1187_v61 = vpop.f32.mrf.mxu0  ;;  %v7978_v62 = vld [vmem:[#allocation77_spill] sm:$0xff] }
 0x1f5   :  { %4458 = vpow2.f32 %v4243_v39  ;;  %v4247_v28 = vmul.f32 -1.442695, %v1201_v21  ;;  %v1204_v24 = vadd.f32 %v1098_v22, %v749_v16  ;;  %v4251_v6 = vmul.f32 -1.442695, %v1203_v43 }
 0x1f6   :  { %4460 = vtanh.f32 %v7976_v58  ;;  %v1100_v2 = vpop.f32.mrf.mxu1  ;;  %v1189_v17 = vpop.f32.mrf.mxu0  ;;  %v1202_v21 = vadd.f32 %v1181_v26, %v747_v53  ;;  %v1206_v30 = vadd.f32 %v1187_v61, %v751_v54 }
 0x1f7   :  { %4462 = vpow2.f32 %v4247_v28  ;;  %v4244_v13 = vmul.f32 -1.442695, %v1204_v24  ;;  %v1205_v56 = vadd.f32 %v1100_v2, %v750_v33  ;;  %v1207_v38 = vadd.f32 %v1189_v17, %v752_v57 }
 0x1f8   :  { %4464 = vtanh.f32 %v7977_v51 }
 0x1f9   :  { %4466 = vpow2.f32 %v4244_v13  ;;  %v4248_v34 = vmul.f32 -1.442695, %v1205_v56  ;;  %v4252_v33 = vmul.f32 -1.442695, %v1207_v38 }
 0x1fa   :  { %v4449_v40 = vpop.eup %4448  ;;  %4468 = vtanh.f32 %v7978_v62 }
 0x1fb   :  { %v1220_v29 = vadd.f32 1.0, %v4449_v40  ;;  %4470 = vpow2.f32 %v4248_v34 }
 0x1fc   :  { %v4451_v52 = vpop.eup %4450  ;;  %4472 = vpow2.f32 %v4249_v47 }
 0x1fd   :  { %4474 = vrcp.f32 %v1220_v29  ;;  %v1244_v4 = vadd.f32 1.0, %v4451_v52 }
 0x1fe   :  { %v4453_v42 = vpop.eup %4452  ;;  %4476 = vtanh.f32 %v1194_v23 }
 0x1ff   :  { %4478 = vrcp.f32 %v1244_v4  ;;  %v1221_v12 = vadd.f32 1.0, %v4453_v42 }
 0x200   :  { %v4455_v37 = vpop.eup %4454  ;;  %4480 = vpow2.f32 %v4250_v15 }
 0x201   :  { %v4457_v63 = vpop.eup %4456  ;;  %4482 = vrcp.f32 %v1221_v12  ;;  %v1245_v16 = vadd.f32 1.0, %v4455_v37 }
 0x202   :  { %v4459_v39 = vpop.eup %4458  ;;  %4484 = vtanh.f32 %v1198_v27 }
 0x203   :  { %v4461_v44 = vpop.eup %4460  ;;  %4486 = vrcp.f32 %v1245_v16  ;;  %v1222_v1 = vadd.f32 1.0, %v4459_v39 }
 0x204   :  { %v4463_v22 = vpop.eup %4462  ;;  %4488 = vpow2.f32 %v4251_v6 }
 0x205   :  { %v4465_v28 = vpop.eup %4464  ;;  %4490 = vrcp.f32 %v1222_v1  ;;  %v1246_v18 = vadd.f32 1.0, %v4463_v22 }
 0x206   :  { %v4467_v25 = vpop.eup %4466  ;;  %4492 = vtanh.f32 %v1202_v21 }
 0x207   :  { %v4469_v24 = vpop.eup %4468  ;;  %4494 = vrcp.f32 %v1246_v18  ;;  %v1223_v58 = vadd.f32 1.0, %v4467_v25  ;;  %v7981_v18 = vld [vmem:[#allocation27_spill] sm:$0xff]  ;;  %v7982_v25 = vld [vmem:[#allocation34_spill] sm:$0xff] }
 0x208   :  { %v4471_v31 = vpop.eup %4470  ;;  %4496 = vpow2.f32 %v4252_v33  ;;  %v7979_v33 = vld [vmem:[#allocation26_spill] sm:$0xff] }
 0x209   :  { %v4473_v26 = vpop.eup %4472  ;;  %4498 = vrcp.f32 %v1223_v58  ;;  %v1247_v2 = vadd.f32 1.0, %v4471_v31  ;;  %v7983_v31 = vld [vmem:[#allocation28_spill] sm:$0xff] }
 0x20a   :  { %v4475_v13 = vpop.eup %4474  ;;  %4500 = vtanh.f32 %v1206_v30  ;;  %v1272_v35 = vadd.f32 1.0, %v4473_v26  ;;  %v7984_v26 = vld [vmem:[#allocation36_spill] sm:$0xff] }
 0x20b   :  { %v4477_v56 = vpop.eup %4476  ;;  %4502 = vrcp.f32 %v1247_v2  ;;  %v7985_v2 = vld [vmem:[#allocation29_spill] sm:$0xff] }
 0x20c   :  { %v4479_v20 = vpop.eup %4478  ;;  %v1288_v41 = vmul.f32 %v4477_v56, %v4475_v13  ;;  %4504 = vrcp.f32 %v1272_v35  ;;  %v7986_v13 = vld [vmem:[#allocation37_spill] sm:$0xff] }
 0x20d   :  { %v4481_v51 = vpop.eup %4480  ;;  %v1284_v47 = vmul.f32 %v4479_v20, %v4457_v63 }
 0x20e   :  { %v4483_v36 = vpop.eup %4482  ;;  %v1273_v62 = vadd.f32 1.0, %v4481_v51  ;;  %v7987_v51 = vld [vmem:[#allocation30_spill] sm:$0xff] }
 0x20f   :  { %v4485_v34 = vpop.eup %4484  ;;  %v6430_v61 = vadd.f32 %v1288_v41, %v1284_v47  ;;  %v7988_v41 = vld [vmem:[#allocation38_spill] sm:$0xff]  ;;  %v7989_v47 = vld [vmem:[#allocation39_spill] sm:$0xff] }
 0x210   :  { %v4487_v40 = vpop.eup %4486  ;;  %v1289_v23 = vmul.f32 %v4485_v34, %v4483_v36  ;;  %v7990_v36 = vld [vmem:[#allocation31_spill] sm:$0xff]  ;;  %v7991_v34 = vld [vmem:[#allocation40_spill] sm:$0xff] }
 0x211   :  { %v4489_v19 = vpop.eup %4488  ;;  %4506 = vtanh.f32 %v6430_v61  ;;  %v1285_v29 = vmul.f32 %v4487_v40, %v4461_v44  ;;  %v7992_v40 = vld [vmem:[#allocation41_spill] sm:$0xff] }
 0x212   :  { %v4491_v52 = vpop.eup %4490  ;;  %4508 = vrcp.f32 %v1273_v62  ;;  %v1274_v4 = vadd.f32 1.0, %v4489_v19  ;;  %v7993_v62 = vld [vmem:[#allocation32_spill] sm:$0xff]  ;;  %v7994_v19 = vld [vmem:[#allocation42_spill] sm:$0xff] }
 0x213   :  { %v4493_v49 = vpop.eup %4492  ;;  %v6433_v15 = vadd.f32 %v1289_v23, %v1285_v29  ;;  %v8007_v23 = vld [vmem:[#allocation54_spill] sm:$0xff]  ;;  %v8009_v29 = vld [vmem:[#allocation56_spill] sm:$0xff] }
 0x214   :  { %v4495_v43 = vpop.eup %4494  ;;  %v1290_v42 = vmul.f32 %v4493_v49, %v4491_v52  ;;  %v8010_v52 = vld [vmem:[#allocation57_spill] sm:$0xff]  ;;  %v8011_v49 = vld [vmem:[#allocation58_spill] sm:$0xff] }
 0x215   :  { %v4497_v17 = vpop.eup %4496  ;;  %v1286_v57 = vmul.f32 %v4495_v43, %v4465_v28  ;;  %4510 = vtanh.f32 %v6433_v15  ;;  %v7980_v28 = vld [vmem:[#allocation33_spill] sm:$0xff]  ;;  %v8013_v43 = vld [vmem:[#allocation60_spill] sm:$0xff] }
 0x216   :  { %v4499_v27 = vpop.eup %4498  ;;  %4512 = vrcp.f32 %v1274_v4  ;;  %v1275_v6 = vadd.f32 1.0, %v4497_v17  ;;  %v8014_v4 = vld [vmem:[#allocation61_spill] sm:$0xff]  ;;  %v8015_v17 = vld [vmem:[#allocation62_spill] sm:$0xff] }
 0x217   :  { %v4501_v12 = vpop.eup %4500  ;;  %v6436_v37 = vadd.f32 %v1290_v42, %v1286_v57  ;;  %v8016_v42 = vld [vmem:[#allocation63_spill] sm:$0xff]  ;;  %v8017_v57 = vld [vmem:[#allocation64_spill] sm:$0xff] }
 0x218   :  { %v4503_v53 = vpop.eup %4502  ;;  %v1291_v38 = vmul.f32 %v4501_v12, %v4499_v27  ;;  %v8018_v27 = vld [vmem:[#allocation65_spill] sm:$0xff]  ;;  %v8019_v12 = vld [vmem:[#allocation66_spill] sm:$0xff] }
 0x219   :  { %v1287_v63 = vmul.f32 %v4503_v53, %v4469_v24  ;;  %4514 = vtanh.f32 %v6436_v37  ;;  %v4505_v39 = vpop.eup %4504  ;;  %v8020_v53 = vld [vmem:[#allocation67_spill] sm:$0xff] }
 0x21a   :  { %4516 = vrcp.f32 %v1275_v6  ;;  %v8021_v6 = vld [vmem:[#allocation68_spill] sm:$0xff] }
 0x21b   :  { %v6439_v16 = vadd.f32 %v1291_v38, %v1287_v63  ;;  %v8022_v38 = vld [vmem:[#allocation69_spill] sm:$0xff]  ;;  %v8023_v63 = vld [vmem:[#allocation70_spill] sm:$0xff] }
 0x21d   :  { %4518 = vtanh.f32 %v6439_v16 }
 0x21e   :  { %v4507_v21 = vpop.eup %4506 }
 0x21f   :  { %v1300_v44 = vmul.f32 %v4507_v21, %v4505_v39  ;;  %v4509_v1 = vpop.eup %4508  ;;  %v8024_v39 = vld [vmem:[#allocation71_spill] sm:$0xff]  ;;  %v8025_v21 = vld [vmem:[#allocation72_spill] sm:$0xff] }
 0x221   :  { %1369 = vmatmul.mubr.f32.vlgmr.msra.gmra.mxu1 %v1300_v44  ;;  %1458 = vmatmul.mubr.f32.vlgmr.msra.gmra.mxu0 %v1300_v44  ;;  %v8026_v44 = vld [vmem:[#allocation73_spill] sm:$0xff] }
 0x222   :  { %v4511_v22 = vpop.eup %4510  ;;  %1374 = vmatprep.mubr.f32.mxu1 %v7932_v32  ;;  %1463 = vmatprep.mubr.f32.mxu0 %v7932_v32 }
 0x223   :  { %v1301_v54 = vmul.f32 %v4511_v22, %v4509_v1  ;;  %1595 = vmatpush1.msra.mxu1 %v7979_v33  ;;  %1684 = vmatpush1.msra.mxu0 %v7980_v28  ;;  %v4513_v30 = vpop.eup %4512  ;;  %v6512_v1 = vld [vmem:[#allocation10 + $0x1e8] sm:$0xff]  ;;  %v6515_v22 = vld [vmem:[#allocation10 + $0x1f8] sm:$0xff]  ;;  %v8029_v28 = vld [vmem:[#allocation79_spill] sm:$0xff] }
 0x224   :  { %1596 = vmatprep.subr.mxu1 %v7981_v18  ;;  %1685 = vmatprep.subr.mxu0 %v7982_v25  ;;  %8027 = vst [vmem:[#allocation74_spill] sm:$0xff] %v6512_v1  ;;  %8028 = vst [vmem:[#allocation78_spill] sm:$0xff] %v6515_v22 }
 0x225   :  { %1375 = vmatmul.mubr.f32.gmra.mxu1 %v1301_v54  ;;  %1464 = vmatmul.mubr.f32.gmra.mxu0 %v1301_v54 }
 0x226   :  { %v4515_v24 = vpop.eup %4514  ;;  %1380 = vmatprep.mubr.f32.mxu1 %v7932_v32  ;;  %1469 = vmatprep.mubr.f32.mxu0 %v7932_v32 }
 0x227   :  { %v1302_v58 = vmul.f32 %v4515_v24, %v4513_v30  ;;  %1597 = vmatpush1.msra.mxu1 %v7983_v31  ;;  %1686 = vmatpush1.msra.mxu0 %v7984_v26  ;;  %v4517_v56 = vpop.eup %4516 }
 0x228   :  { %1598 = vmatprep.subr.mxu1 %v7985_v2  ;;  %1687 = vmatprep.subr.mxu0 %v7986_v13 }
 0x229   :  { %1381 = vmatmul.mubr.f32.gmra.mxu1 %v1302_v58  ;;  %1470 = vmatmul.mubr.f32.gmra.mxu0 %v1302_v58  ;;  %v8030_v58 = vld [vmem:[#allocation80_spill] sm:$0xff] }
 0x22a   :  { %v4519_v20 = vpop.eup %4518  ;;  %1386 = vmatprep.mubr.f32.mxu1 %v7932_v32  ;;  %1475 = vmatprep.mubr.f32.mxu0 %v7932_v32 }
 0x22b   :  { %v1303_v35 = vmul.f32 %v4519_v20, %v4517_v56  ;;  %1599 = vmatpush1.msra.mxu1 %v7987_v51  ;;  %1688 = vmatpush1.msra.mxu0 %v7988_v41  ;;  %v8031_v56 = vld [vmem:[#allocation81_spill] sm:$0xff] }
 0x22c   :  { %1600 = vmatprep.subr.mxu1 %v5917_v45  ;;  %1689 = vmatprep.subr.mxu0 %v7989_v47  ;;  %v7995_v45 = vld [vmem:[#allocation35_spill] sm:$0xff]  ;;  %v8032_v47 = vld [vmem:[#allocation82_spill] sm:$0xff] }
 0x22d   :  { %1387 = vmatmul.mubr.f32.gmra.mxu1 %v1303_v35  ;;  %1476 = vmatmul.mubr.f32.gmra.mxu0 %v1303_v35 }
 0x22e   :  { %1601 = vmatpush1.msra.mxu1 %v5923_v46  ;;  %1690 = vmatpush1.msra.mxu0 %v5973_v60  ;;  %v7996_v46 = vld [vmem:[#allocation43_spill] sm:$0xff]  ;;  %v7999_v60 = vld [vmem:[#allocation46_spill] sm:$0xff] }
 0x22f   :  { %1602 = vmatprep.subr.mxu1 %v7990_v36  ;;  %1691 = vmatprep.subr.mxu0 %v7991_v34 }
 0x230   :  { %1603 = vmatpush1.msra.mxu1 %v5930_v48  ;;  %1692 = vmatpush1.msra.mxu0 %v7992_v40  ;;  %v7997_v48 = vld [vmem:[#allocation44_spill] sm:$0xff] }
 0x231   :  { %1604 = vmatprep.subr.mxu1 %v7993_v62  ;;  %1693 = vmatprep.subr.mxu0 %v7994_v19  ;;  %v8033_v62 = vld [vmem:[#allocation83_spill] sm:$0xff] }
 0x232   :  { %1605 = vmatpush1.msra.mxu1 %v5938_v50  ;;  %1694 = vmatpush1.msra.mxu0 %v5989_v0  ;;  %v7998_v50 = vld [vmem:[#allocation45_spill] sm:$0xff]  ;;  %v8000_v0 = vld [vmem:[#allocation47_spill] sm:$0xff] }
 0x233   :  { %1606 = vmatprep.subr.mxu1 %v7995_v45  ;;  %1695 = vmatprep.subr.mxu0 %v7996_v46 }
 0x234   :  { %1607 = vmatpush1.msra.mxu1 %v5954_v55  ;;  %1696 = vmatpush1.msra.mxu0 %v5996_v5  ;;  %v8001_v55 = vld [vmem:[#allocation48_spill] sm:$0xff]  ;;  %v8003_v5 = vld [vmem:[#allocation50_spill] sm:$0xff] }
 0x235   :  { %1608 = vmatprep.subr.mxu1 %v5968_v59  ;;  %1697 = vmatprep.subr.mxu0 %v7997_v48  ;;  %v8002_v59 = vld [vmem:[#allocation49_spill] sm:$0xff] }
 0x236   :  { %1609 = vmatpush1.msra.mxu1 %v6001_v7  ;;  %1698 = vmatpush1.msra.mxu0 %v6006_v8  ;;  %v8004_v7 = vld [vmem:[#allocation51_spill] sm:$0xff]  ;;  %v8005_v8 = vld [vmem:[#allocation52_spill] sm:$0xff] }
 0x237   :  { %1610 = vmatprep.subr.mxu1 %v6008_v9  ;;  %1699 = vmatprep.subr.mxu0 %v7998_v50  ;;  %v8006_v9 = vld [vmem:[#allocation53_spill] sm:$0xff]  ;;  %v8034_v50 = vld [vmem:[#allocation84_spill] sm:$0xff] }
 0x238   :  { %1611 = vmatpush1.msra.mxu1 %v6014_v11  ;;  %1700 = vmatpush1.msra.mxu0 %v7999_v60  ;;  %v8008_v11 = vld [vmem:[#allocation55_spill] sm:$0xff] }
 0x239   :  { %1612 = vmatprep.subr.mxu1 %v8000_v0  ;;  %1701 = vmatprep.subr.mxu0 %v8001_v55  ;;  %v8035_v0 = vld [vmem:[#allocation87_spill] sm:$0xff] }
 0x23a   :  { %1613 = vmatpush1.msra.mxu1 %v6026_v14  ;;  %1702 = vmatpush1.msra.mxu0 %v8002_v59  ;;  %v8012_v14 = vld [vmem:[#allocation59_spill] sm:$0xff] }
 0x23b   :  { %1614 = vmatprep.subr.mxu1 %v8003_v5  ;;  %1703 = vmatprep.subr.mxu0 %v8004_v7  ;;  %v8036_v5 = vld [vmem:[#allocation91_spill] sm:$0xff] }
 0x23c   :  { %1615 = vmatpush1.msra.mxu1 %v8005_v8  ;;  %1704 = vmatpush1.msra.mxu0 %v8006_v9  ;;  %v6527_v7 = vadd.f32 %v8036_v5, %v6398_v3 }
 0x23d   :  { %1616 = vmatprep.subr.mxu1 %v8007_v23  ;;  %1705 = vmatprep.subr.mxu0 %v8008_v11  ;;  %v8037_v23 = vld [vmem:[#allocation85_spill] sm:$0xff] }
 0x23e   :  { %1617 = vmatpush1.msra.mxu1 %v8009_v29  ;;  %1706 = vmatpush1.msra.mxu0 %v8010_v52 }
 0x23f   :  { %1618 = vmatprep.subr.mxu1 %v8011_v49  ;;  %1707 = vmatprep.subr.mxu0 %v8012_v14 }
 0x240   :  { %1619 = vmatpush1.msra.mxu1 %v8013_v43  ;;  %1708 = vmatpush1.msra.mxu0 %v8014_v4  ;;  %v8038_v43 = vld [vmem:[#allocation25_spill] sm:$0xff] }
 0x241   :  { %1620 = vmatprep.subr.mxu1 %v8015_v17  ;;  %1709 = vmatprep.subr.mxu0 %v8016_v42 }
 0x242   :  { %1621 = vmatpush1.msra.mxu1 %v8017_v57  ;;  %1710 = vmatpush1.msra.mxu0 %v8018_v27  ;;  %v8039_v27 = vld [vmem:[#allocation86_spill] sm:$0xff] }
 0x243   :  { %1622 = vmatprep.subr.mxu1 %v8019_v12  ;;  %1711 = vmatprep.subr.mxu0 %v8020_v53 }
 0x244   :  { %1623 = vmatpush1.msra.mxu1 %v8021_v6  ;;  %1712 = vmatpush1.msra.mxu0 %v8022_v38  ;;  %v8040_v38 = vld [vmem:[#allocation89_spill] sm:$0xff] }
 0x245   :  { %1624 = vmatprep.subr.mxu1 %v8023_v63  ;;  %1713 = vmatprep.subr.mxu0 %v8024_v39 }
 0x246   :  { %1625 = vmatpush1.msra.mxu1 %v8025_v21  ;;  %1658 = vmatprep.mubr.f32.mxu1 %v7932_v32 }
 0x247   :  { %1714 = vmatpush1.msra.mxu0 %v8026_v44  ;;  %1747 = vmatprep.mubr.f32.mxu0 %v7932_v32 }
 0x248   :  { %1884 = vmatprep.subr.mxu1 %v6512_v1  ;;  %1973 = vmatprep.subr.mxu0 %v6515_v22 }
 0x2e1   :  { %v1370_v54 = vpop.f32.mrf.mxu1  ;;  %v1459_v33 = vpop.f32.mrf.mxu0 }
 0x2e2   :  { %v1482_v18 = vadd.f32 %v1370_v54, %v8029_v28  ;;  %v1484_v3 = vadd.f32 %v1459_v33, %v8039_v27  ;;  %v8041_v54 = vld [vmem:[#allocation92_spill] sm:$0xff] }
 0x2e3   :  { %v1372_v25 = vpop.f32.mrf.mxu1  ;;  %v1461_v30 = vpop.f32.mrf.mxu0 }
 0x2e4   :  { %v4253_v24 = vmul.f32 -1.442695, %v1482_v18  ;;  %v1483_v31 = vadd.f32 %v1372_v25, %v8030_v58  ;;  %v1485_v55 = vadd.f32 %v1461_v30, %v8035_v0  ;;  %v6536_v18 = vadd.f32 %v8041_v54, %v6417_v10  ;;  %v8042_v25 = vld [vmem:[#allocation24_spill] sm:$0xff] }
 0x2e5   :  { %v1376_v26 = vpop.f32.mrf.mxu1  ;;  %v1465_v2 = vpop.f32.mrf.mxu0 }
 0x2e6   :  { %4520 = vpow2.f32 %v4253_v24  ;;  %v4257_v13 = vmul.f32 -1.442695, %v1483_v31  ;;  %v1486_v20 = vadd.f32 %v1376_v26, %v8031_v56  ;;  %v4261_v14 = vmul.f32 -1.442695, %v1485_v55 }
 0x2e7   :  { %v1378_v35 = vpop.f32.mrf.mxu1  ;;  %v1467_v51 = vpop.f32.mrf.mxu0  ;;  %v1488_v30 = vadd.f32 %v1465_v2, %v8042_v25 }
 0x2e8   :  { %4522 = vpow2.f32 %v4257_v13  ;;  %v4254_v41 = vmul.f32 -1.442695, %v1486_v20  ;;  %v1487_v36 = vadd.f32 %v1378_v35, %v8032_v47  ;;  %v1489_v4 = vadd.f32 %v1467_v51, %v8038_v43  ;;  %v8043_v35 = vld [vmem:[#allocation88_spill] sm:$0xff] }
 0x2e9   :  { %v1382_v34 = vpop.f32.mrf.mxu1  ;;  %v1471_v45 = vpop.f32.mrf.mxu0 }
 0x2ea   :  { %4524 = vpow2.f32 %v4254_v41  ;;  %v4258_v40 = vmul.f32 -1.442695, %v1487_v36  ;;  %v1490_v19 = vadd.f32 %v1382_v34, %v8033_v62  ;;  %v4262_v6 = vmul.f32 -1.442695, %v1489_v4 }
 0x2eb   :  { %v1384_v46 = vpop.f32.mrf.mxu1  ;;  %v1473_v9 = vpop.f32.mrf.mxu0  ;;  %v1492_v51 = vadd.f32 %v1471_v45, %v8043_v35 }
 0x2ec   :  { %4526 = vpow2.f32 %v4258_v40  ;;  %v4255_v48 = vmul.f32 -1.442695, %v1490_v19  ;;  %v1491_v60 = vadd.f32 %v1384_v46, %v8034_v50  ;;  %v1493_v63 = vadd.f32 %v1473_v9, %v8040_v38  ;;  %v8044_v40 = vld [vmem:[#allocation90_spill] sm:$0xff] }
 0x2ed   :  { %v1388_v59 = vpop.f32.mrf.mxu1  ;;  %v1477_v17 = vpop.f32.mrf.mxu0 }
 0x2ee   :  { %4528 = vpow2.f32 %v4255_v48  ;;  %v4259_v8 = vmul.f32 -1.442695, %v1491_v60  ;;  %v1494_v11 = vadd.f32 %v1388_v59, %v8037_v23  ;;  %v4263_v31 = vmul.f32 -1.442695, %v1493_v63 }
 0x2ef   :  { %v1390_v29 = vpop.f32.mrf.mxu1  ;;  %v1479_v21 = vpop.f32.mrf.mxu0  ;;  %v1496_v19 = vadd.f32 %v1477_v17, %v8044_v40 }
 0x2f0   :  { %4530 = vpow2.f32 %v4259_v8  ;;  %v4256_v52 = vmul.f32 -1.442695, %v1494_v11  ;;  %v1495_v49 = vadd.f32 %v1390_v29, %v6527_v7  ;;  %v1497_v26 = vadd.f32 %v1479_v21, %v6536_v18 }
 0x2f2   :  { %4532 = vpow2.f32 %v4256_v52  ;;  %v4260_v42 = vmul.f32 -1.442695, %v1495_v49  ;;  %v4264_v36 = vmul.f32 -1.442695, %v1497_v26 }
 0x2f3   :  { %v4521_v57 = vpop.eup %4520 }
 0x2f4   :  { %v1510_v12 = vadd.f32 1.0, %v4521_v57  ;;  %4534 = vpow2.f32 %v4260_v42 }
 0x2f5   :  { %v4523_v53 = vpop.eup %4522  ;;  %4536 = vpow2.f32 %v4261_v14 }
 0x2f6   :  { %4538 = vrcp.f32 %v1510_v12  ;;  %v1534_v39 = vadd.f32 1.0, %v4523_v53 }
 0x2f7   :  { %v4525_v44 = vpop.eup %4524  ;;  %4540 = vtanh.f32 %v1484_v3 }
 0x2f8   :  { %4542 = vrcp.f32 %v1534_v39  ;;  %v1511_v33 = vadd.f32 1.0, %v4525_v44 }
 0x2f9   :  { %v4527_v24 = vpop.eup %4526  ;;  %4544 = vpow2.f32 %v4262_v6 }
 0x2fa   :  { %4546 = vrcp.f32 %v1511_v33  ;;  %v1535_v13 = vadd.f32 1.0, %v4527_v24 }
 0x2fb   :  { %v4529_v20 = vpop.eup %4528  ;;  %4548 = vtanh.f32 %v1488_v30 }
 0x2fc   :  { %4550 = vrcp.f32 %v1535_v13  ;;  %v1512_v41 = vadd.f32 1.0, %v4529_v20 }
 0x2fd   :  { %v4531_v10 = vpop.eup %4530  ;;  %4552 = vpow2.f32 %v4263_v31 }
 0x2fe   :  { %4554 = vrcp.f32 %v1512_v41  ;;  %v1536_v2 = vadd.f32 1.0, %v4531_v10 }
 0x2ff   :  { %v4533_v34 = vpop.eup %4532  ;;  %4556 = vtanh.f32 %v1492_v51 }
 0x300   :  { %4558 = vrcp.f32 %v1536_v2  ;;  %v1513_v46 = vadd.f32 1.0, %v4533_v34  ;;  %v6563_v2 = vld [vmem:[#allocation10 + $0x1f0] sm:$0xff]  ;;  %v6566_v34 = vld [vmem:[#allocation10 + $0x1c8] sm:$0xff] }
 0x301   :  { %v4535_v48 = vpop.eup %4534  ;;  %4560 = vpow2.f32 %v4264_v36 }
 0x302   :  { %v4537_v60 = vpop.eup %4536  ;;  %4562 = vrcp.f32 %v1513_v46  ;;  %v1537_v55 = vadd.f32 1.0, %v4535_v48 }
 0x303   :  { %v4539_v59 = vpop.eup %4538  ;;  %4564 = vtanh.f32 %v1496_v19  ;;  %v1562_v8 = vadd.f32 1.0, %v4537_v60  ;;  %v6569_v19 = vld [vmem:[#allocation10 + $0x1d8] sm:$0xff] }
 0x304   :  { %v4541_v45 = vpop.eup %4540  ;;  %4566 = vrcp.f32 %v1537_v55  ;;  %v6574_v55 = vld [vmem:[#allocation10 + $0x1c0] sm:$0xff] }
 0x305   :  { %v4543_v5 = vpop.eup %4542  ;;  %v1578_v11 = vmul.f32 %v4541_v45, %v4539_v59  ;;  %4568 = vrcp.f32 %v1562_v8  ;;  %v6577_v59 = vld [vmem:[#allocation10 + $0x1d0] sm:$0xff]  ;;  %v6580_v45 = vld [vmem:[#allocation10 + $0x1a8] sm:$0xff] }
 0x306   :  { %v4545_v9 = vpop.eup %4544  ;;  %v1574_v29 = vmul.f32 %v4543_v5, %v6430_v61  ;;  %v6583_v5 = vld [vmem:[#allocation10 + $0x1b8] sm:$0xff] }
 0x307   :  { %v4547_v52 = vpop.eup %4546  ;;  %v1563_v17 = vadd.f32 1.0, %v4545_v9 }
 0x308   :  { %v4549_v49 = vpop.eup %4548  ;;  %v6543_v14 = vadd.f32 %v1578_v11, %v1574_v29  ;;  %v6588_v29 = vld [vmem:[#allocation10 + $0x1a0] sm:$0xff] }
 0x309   :  { %v4551_v4 = vpop.eup %4550  ;;  %v1579_v57 = vmul.f32 %v4549_v49, %v4547_v52  ;;  %v6591_v52 = vld [vmem:[#allocation10 + $0x1b0] sm:$0xff]  ;;  %v6594_v49 = vld [vmem:[#allocation10 + $0x188] sm:$0xff] }
 0x30a   :  { %v4553_v42 = vpop.eup %4552  ;;  %4570 = vtanh.f32 %v6543_v14  ;;  %v1575_v3 = vmul.f32 %v4551_v4, %v6433_v15  ;;  %v6597_v4 = vld [vmem:[#allocation10 + $0x198] sm:$0xff] }
 0x30b   :  { %v4555_v12 = vpop.eup %4554  ;;  %4572 = vrcp.f32 %v1563_v17  ;;  %v1564_v61 = vadd.f32 1.0, %v4553_v42  ;;  %v6600_v17 = vld [vmem:[#allocation10 + $0x180] sm:$0xff]  ;;  %v6603_v42 = vld [vmem:[#allocation10 + $0x190] sm:$0xff] }
 0x30c   :  { %v4557_v53 = vpop.eup %4556  ;;  %v6547_v6 = vadd.f32 %v1579_v57, %v1575_v3  ;;  %v6606_v57 = vld [vmem:[#allocation10 + $0x168] sm:$0xff]  ;;  %v6609_v3 = vld [vmem:[#allocation10 + $0x178] sm:$0xff] }
 0x30d   :  { %v4559_v63 = vpop.eup %4558  ;;  %v1580_v21 = vmul.f32 %v4557_v53, %v4555_v12  ;;  %v6612_v12 = vld [vmem:[#allocation10 + $0x160] sm:$0xff]  ;;  %v6615_v53 = vld [vmem:[#allocation10 + $0x170] sm:$0xff] }
 0x30e   :  { %v4561_v39 = vpop.eup %4560  ;;  %v1576_v44 = vmul.f32 %v4559_v63, %v6436_v37  ;;  %4574 = vtanh.f32 %v6547_v6  ;;  %v6618_v63 = vld [vmem:[#allocation10 + $0x148] sm:$0xff] }
 0x30f   :  { %v4563_v54 = vpop.eup %4562  ;;  %4576 = vrcp.f32 %v1564_v61  ;;  %v1565_v15 = vadd.f32 1.0, %v4561_v39  ;;  %v6621_v61 = vld [vmem:[#allocation10 + $0x158] sm:$0xff]  ;;  %v6624_v39 = vld [vmem:[#allocation10 + $0x140] sm:$0xff] }
 0x310   :  { %v4565_v30 = vpop.eup %4564  ;;  %v6551_v33 = vadd.f32 %v1580_v21, %v1576_v44  ;;  %v6627_v21 = vld [vmem:[#allocation10 + $0x150] sm:$0xff]  ;;  %v6630_v44 = vld [vmem:[#allocation10 + $0x128] sm:$0xff] }
 0x311   :  { %v4567_v24 = vpop.eup %4566  ;;  %v1581_v31 = vmul.f32 %v4565_v30, %v4563_v54  ;;  %v6633_v54 = vld [vmem:[#allocation10 + $0x138] sm:$0xff]  ;;  %v6636_v30 = vld [vmem:[#allocation10 + $0x120] sm:$0xff] }
 0x312   :  { %v1577_v26 = vmul.f32 %v4567_v24, %v6439_v16  ;;  %4578 = vtanh.f32 %v6551_v33  ;;  %v4569_v20 = vpop.eup %4568  ;;  %v6560_v16 = vld [vmem:[#allocation10 + $0x1e0] sm:$0xff]  ;;  %v6639_v24 = vld [vmem:[#allocation10 + $0x130] sm:$0xff] }
 0x313   :  { %4580 = vrcp.f32 %v1565_v15  ;;  %v6642_v15 = vld [vmem:[#allocation10 + $0x108] sm:$0xff] }
 0x314   :  { %v6555_v13 = vadd.f32 %v1581_v31, %v1577_v26  ;;  %8045 = vst [vmem:[#allocation75_spill] sm:$0xff] %v6642_v15  ;;  %v6645_v31 = vld [vmem:[#allocation10 + $0x118] sm:$0xff]  ;;  %v6648_v26 = vld [vmem:[#allocation10 + $0x100] sm:$0xff] }
 0x315   :  { %8046 = vst [vmem:[#allocation76_spill] sm:$0xff] %v6645_v31  ;;  %8047 = vst [vmem:[#allocation77_spill] sm:$0xff] %v6648_v26 }
 0x316   :  { %4582 = vtanh.f32 %v6555_v13 }
 0x317   :  { %v4571_v37 = vpop.eup %4570 }
 0x318   :  { %v1590_v51 = vmul.f32 %v4571_v37, %v4569_v20  ;;  %v4573_v41 = vpop.eup %4572  ;;  %v6651_v20 = vld [vmem:[#allocation10 + $0x110] sm:$0xff]  ;;  %v6654_v37 = vld [vmem:[#allocation10 + $0xe8] sm:$0xff] }
 0x319   :  { %8048 = vst [vmem:[#allocation26_spill] sm:$0xff] %v6651_v20  ;;  %8049 = vst [vmem:[#allocation33_spill] sm:$0xff] %v6654_v37 }
 0x31a   :  { %1659 = vmatmul.mubr.f32.vlgmr.msra.gmra.mxu1 %v1590_v51  ;;  %1748 = vmatmul.mubr.f32.vlgmr.msra.gmra.mxu0 %v1590_v51  ;;  %v6657_v51 = vld [vmem:[#allocation10 + $0xf8] sm:$0xff] }
 0x31b   :  { %v4575_v10 = vpop.eup %4574  ;;  %1664 = vmatprep.mubr.f32.mxu1 %v7932_v32  ;;  %1753 = vmatprep.mubr.f32.mxu0 %v7932_v32  ;;  %8050 = vst [vmem:[#allocation27_spill] sm:$0xff] %v6657_v51 }
 0x31c   :  { %v1591_v36 = vmul.f32 %v4575_v10, %v4573_v41  ;;  %1885 = vmatpush1.msra.mxu1 %v6560_v16  ;;  %1974 = vmatpush1.msra.mxu0 %v6563_v2  ;;  %v4577_v46 = vpop.eup %4576  ;;  %v6660_v41 = vld [vmem:[#allocation10 + $0xe0] sm:$0xff]  ;;  %v6663_v10 = vld [vmem:[#allocation10 + $0xf0] sm:$0xff] }
 0x31d   :  { %1886 = vmatprep.subr.mxu1 %v6566_v34  ;;  %1975 = vmatprep.subr.mxu0 %v6569_v19  ;;  %8051 = vst [vmem:[#allocation34_spill] sm:$0xff] %v6660_v41  ;;  %8052 = vst [vmem:[#allocation28_spill] sm:$0xff] %v6663_v10 }
 0x31e   :  { %1665 = vmatmul.mubr.f32.gmra.mxu1 %v1591_v36  ;;  %1754 = vmatmul.mubr.f32.gmra.mxu0 %v1591_v36  ;;  %v6666_v36 = vld [vmem:[#allocation10 + $0xc8] sm:$0xff] }
 0x31f   :  { %v4579_v48 = vpop.eup %4578  ;;  %1670 = vmatprep.mubr.f32.mxu1 %v7932_v32  ;;  %1759 = vmatprep.mubr.f32.mxu0 %v7932_v32  ;;  %8053 = vst [vmem:[#allocation36_spill] sm:$0xff] %v6666_v36 }
 0x320   :  { %v1592_v60 = vmul.f32 %v4579_v48, %v4577_v46  ;;  %1887 = vmatpush1.msra.mxu1 %v6574_v55  ;;  %1976 = vmatpush1.msra.mxu0 %v6577_v59  ;;  %v4581_v8 = vpop.eup %4580  ;;  %v6669_v46 = vld [vmem:[#allocation10 + $0xd8] sm:$0xff]  ;;  %v6672_v48 = vld [vmem:[#allocation10 + $0xc0] sm:$0xff] }
 0x321   :  { %1888 = vmatprep.subr.mxu1 %v6580_v45  ;;  %1977 = vmatprep.subr.mxu0 %v6583_v5  ;;  %8054 = vst [vmem:[#allocation29_spill] sm:$0xff] %v6669_v46  ;;  %8055 = vst [vmem:[#allocation37_spill] sm:$0xff] %v6672_v48 }
 0x322   :  { %1671 = vmatmul.mubr.f32.gmra.mxu1 %v1592_v60  ;;  %1760 = vmatmul.mubr.f32.gmra.mxu0 %v1592_v60  ;;  %v6675_v60 = vld [vmem:[#allocation10 + $0xd0] sm:$0xff] }
 0x323   :  { %v4583_v9 = vpop.eup %4582  ;;  %1676 = vmatprep.mubr.f32.mxu1 %v7932_v32  ;;  %1765 = vmatprep.mubr.f32.mxu0 %v7932_v32  ;;  %8056 = vst [vmem:[#allocation30_spill] sm:$0xff] %v6675_v60 }
 0x324   :  { %v1593_v11 = vmul.f32 %v4583_v9, %v4581_v8  ;;  %1889 = vmatpush1.msra.mxu1 %v6588_v29  ;;  %1978 = vmatpush1.msra.mxu0 %v6591_v52  ;;  %v6678_v8 = vld [vmem:[#allocation10 + $0xa8] sm:$0xff]  ;;  %v6681_v9 = vld [vmem:[#allocation10 + $0xb8] sm:$0xff] }
 0x325   :  { %1890 = vmatprep.subr.mxu1 %v6594_v49  ;;  %1979 = vmatprep.subr.mxu0 %v6597_v4  ;;  %8057 = vst [vmem:[#allocation38_spill] sm:$0xff] %v6678_v8  ;;  %8058 = vst [vmem:[#allocation39_spill] sm:$0xff] %v6681_v9 }
 0x326   :  { %1677 = vmatmul.mubr.f32.gmra.mxu1 %v1593_v11  ;;  %1766 = vmatmul.mubr.f32.gmra.mxu0 %v1593_v11  ;;  %v6684_v11 = vld [vmem:[#allocation10 + $0xa0] sm:$0xff] }
 0x327   :  { %1891 = vmatpush1.msra.mxu1 %v6600_v17  ;;  %1980 = vmatpush1.msra.mxu0 %v6603_v42  ;;  %8059 = vst [vmem:[#allocation31_spill] sm:$0xff] %v6684_v11 }
 0x328   :  { %1892 = vmatprep.subr.mxu1 %v6606_v57  ;;  %1981 = vmatprep.subr.mxu0 %v6609_v3 }
 0x329   :  { %1893 = vmatpush1.msra.mxu1 %v6612_v12  ;;  %1982 = vmatpush1.msra.mxu0 %v6615_v53 }
 0x32a   :  { %1894 = vmatprep.subr.mxu1 %v6618_v63  ;;  %1983 = vmatprep.subr.mxu0 %v6621_v61 }
 0x32b   :  { %1895 = vmatpush1.msra.mxu1 %v6624_v39  ;;  %1984 = vmatpush1.msra.mxu0 %v6627_v21 }
 0x32c   :  { %1896 = vmatprep.subr.mxu1 %v6630_v44  ;;  %1985 = vmatprep.subr.mxu0 %v6633_v54 }
 0x32d   :  { %1897 = vmatpush1.msra.mxu1 %v6636_v30  ;;  %1986 = vmatpush1.msra.mxu0 %v6639_v24 }
 0x32e   :  { %1898 = vmatprep.subr.mxu1 %v6642_v15  ;;  %1987 = vmatprep.subr.mxu0 %v6645_v31 }
 0x32f   :  { %1899 = vmatpush1.msra.mxu1 %v6648_v26  ;;  %1988 = vmatpush1.msra.mxu0 %v6651_v20 }
 0x330   :  { %1900 = vmatprep.subr.mxu1 %v6654_v37  ;;  %1989 = vmatprep.subr.mxu0 %v6657_v51 }
 0x331   :  { %1901 = vmatpush1.msra.mxu1 %v6660_v41  ;;  %1990 = vmatpush1.msra.mxu0 %v6663_v10 }
 0x332   :  { %1902 = vmatprep.subr.mxu1 %v6666_v36  ;;  %1991 = vmatprep.subr.mxu0 %v6669_v46  ;;  %v6687_v46 = vld [vmem:[#allocation10 + $0xb0] sm:$0xff] }
 0x333   :  { %1903 = vmatpush1.msra.mxu1 %v6672_v48  ;;  %1992 = vmatpush1.msra.mxu0 %v6675_v60  ;;  %8060 = vst [vmem:[#allocation40_spill] sm:$0xff] %v6687_v46  ;;  %v6690_v48 = vld [vmem:[#allocation10 + $0x88] sm:$0xff]  ;;  %v6693_v60 = vld [vmem:[#allocation10 + $0x98] sm:$0xff] }
 0x334   :  { %1904 = vmatprep.subr.mxu1 %v6678_v8  ;;  %1993 = vmatprep.subr.mxu0 %v6681_v9  ;;  %8061 = vst [vmem:[#allocation41_spill] sm:$0xff] %v6690_v48  ;;  %8062 = vst [vmem:[#allocation32_spill] sm:$0xff] %v6693_v60  ;;  %v6696_v8 = vld [vmem:[#allocation10 + $0x80] sm:$0xff]  ;;  %v6699_v9 = vld [vmem:[#allocation10 + $0x90] sm:$0xff] }
 0x335   :  { %1905 = vmatpush1.msra.mxu1 %v6684_v11  ;;  %1994 = vmatpush1.msra.mxu0 %v6687_v46  ;;  %8063 = vst [vmem:[#allocation42_spill] sm:$0xff] %v6696_v8  ;;  %8064 = vst [vmem:[#allocation35_spill] sm:$0xff] %v6699_v9  ;;  %v6702_v11 = vld [vmem:[#allocation10 + $0x68] sm:$0xff]  ;;  %v6705_v46 = vld [vmem:[#allocation10 + $0x78] sm:$0xff] }
 0x336   :  { %1906 = vmatprep.subr.mxu1 %v6690_v48  ;;  %1995 = vmatprep.subr.mxu0 %v6693_v60  ;;  %8065 = vst [vmem:[#allocation43_spill] sm:$0xff] %v6702_v11  ;;  %8066 = vst [vmem:[#allocation44_spill] sm:$0xff] %v6705_v46  ;;  %v6708_v48 = vld [vmem:[#allocation10 + $0x60] sm:$0xff]  ;;  %v6711_v60 = vld [vmem:[#allocation10 + $0x70] sm:$0xff] }
 0x337   :  { %1907 = vmatpush1.msra.mxu1 %v6696_v8  ;;  %1996 = vmatpush1.msra.mxu0 %v6699_v9  ;;  %8067 = vst [vmem:[#allocation45_spill] sm:$0xff] %v6708_v48  ;;  %8068 = vst [vmem:[#allocation46_spill] sm:$0xff] %v6711_v60  ;;  %v6714_v8 = vld [vmem:[#allocation10 + $0x48] sm:$0xff]  ;;  %v6717_v9 = vld [vmem:[#allocation10 + $0x58] sm:$0xff] }
 0x338   :  { %1908 = vmatprep.subr.mxu1 %v6702_v11  ;;  %1997 = vmatprep.subr.mxu0 %v6705_v46  ;;  %8069 = vst [vmem:[#allocation47_spill] sm:$0xff] %v6714_v8  ;;  %8070 = vst [vmem:[#allocation48_spill] sm:$0xff] %v6717_v9  ;;  %v6720_v11 = vld [vmem:[#allocation10 + $0x40] sm:$0xff]  ;;  %v6723_v46 = vld [vmem:[#allocation10 + $0x50] sm:$0xff] }
 0x339   :  { %1909 = vmatpush1.msra.mxu1 %v6708_v48  ;;  %1998 = vmatpush1.msra.mxu0 %v6711_v60  ;;  %8071 = vst [vmem:[#allocation49_spill] sm:$0xff] %v6720_v11  ;;  %8072 = vst [vmem:[#allocation50_spill] sm:$0xff] %v6723_v46  ;;  %v6726_v48 = vld [vmem:[#allocation10 + $0x28] sm:$0xff]  ;;  %v6729_v60 = vld [vmem:[#allocation10 + $0x38] sm:$0xff] }
 0x33a   :  { %1910 = vmatprep.subr.mxu1 %v6714_v8  ;;  %1999 = vmatprep.subr.mxu0 %v6717_v9  ;;  %8073 = vst [vmem:[#allocation51_spill] sm:$0xff] %v6726_v48  ;;  %8074 = vst [vmem:[#allocation52_spill] sm:$0xff] %v6729_v60  ;;  %v6732_v8 = vld [vmem:[#allocation10 + $0x20] sm:$0xff]  ;;  %v6735_v9 = vld [vmem:[#allocation10 + $0x30] sm:$0xff] }
 0x33b   :  { %1911 = vmatpush1.msra.mxu1 %v6720_v11  ;;  %2000 = vmatpush1.msra.mxu0 %v6723_v46  ;;  %8075 = vst [vmem:[#allocation53_spill] sm:$0xff] %v6732_v8  ;;  %8076 = vst [vmem:[#allocation54_spill] sm:$0xff] %v6735_v9  ;;  %v6738_v11 = vld [vmem:[#allocation10 + $0x8] sm:$0xff]  ;;  %v6741_v46 = vld [vmem:[#allocation10 + $0x18] sm:$0xff] }
 0x33c   :  { %1912 = vmatprep.subr.mxu1 %v6726_v48  ;;  %2001 = vmatprep.subr.mxu0 %v6729_v60  ;;  %8077 = vst [vmem:[#allocation55_spill] sm:$0xff] %v6738_v11  ;;  %8078 = vst [vmem:[#allocation56_spill] sm:$0xff] %v6741_v46  ;;  %v6744_v48 = vld [vmem:[#allocation10] sm:$0xff]  ;;  %v6748_v60 = vld [vmem:[#allocation10 + $0x10] sm:$0xff] }
 0x33d   :  { %1913 = vmatpush1.msra.mxu1 %v6732_v8  ;;  %2002 = vmatpush1.msra.mxu0 %v6735_v9  ;;  %8079 = vst [vmem:[#allocation57_spill] sm:$0xff] %v6744_v48  ;;  %8080 = vst [vmem:[#allocation58_spill] sm:$0xff] %v6748_v60 }
 0x33e   :  { %1914 = vmatprep.subr.mxu1 %v6738_v11  ;;  %2003 = vmatprep.subr.mxu0 %v6741_v46 }
 0x33f   :  { %1915 = vmatpush1.msra.mxu1 %v6744_v48  ;;  %1948 = vmatprep.mubr.f32.mxu1 %v7932_v32 }
 0x340   :  { %2004 = vmatpush1.msra.mxu0 %v6748_v60  ;;  %2037 = vmatprep.mubr.f32.mxu0 %v7932_v32 }
 0x341   :  { %2174 = vmatprep.subr.mxu1 %v6512_v1  ;;  %2263 = vmatprep.subr.mxu0 %v6515_v22 }
 0x3da   :  { %v1660_v11 = vpop.f32.mrf.mxu1  ;;  %v1749_v9 = vpop.f32.mrf.mxu0 }
 0x3db   :  { %v1772_v46 = vadd.f32 %v1660_v11, %v8029_v28 }
 0x3dc   :  { %v1662_v8 = vpop.f32.mrf.mxu1  ;;  %v1751_v36 = vpop.f32.mrf.mxu0 }
 0x3dd   :  { %v4265_v10 = vmul.f32 -1.442695, %v1772_v46  ;;  %v1773_v48 = vadd.f32 %v1662_v8, %v8030_v58 }
 0x3de   :  { %v1666_v41 = vpop.f32.mrf.mxu1  ;;  %v1755_v51 = vpop.f32.mrf.mxu0 }
 0x3df   :  { %4584 = vpow2.f32 %v4265_v10  ;;  %v4269_v37 = vmul.f32 -1.442695, %v1773_v48  ;;  %v1776_v60 = vadd.f32 %v1666_v41, %v8031_v56  ;;  %v1775_v48 = vadd.f32 %v1751_v36, %v8035_v0 }
 0x3e0   :  { %v1668_v20 = vpop.f32.mrf.mxu1  ;;  %v1757_v26 = vpop.f32.mrf.mxu0  ;;  %v1774_v36 = vadd.f32 %v1749_v9, %v8039_v27 }
 0x3e1   :  { %4586 = vpow2.f32 %v4269_v37  ;;  %v4266_v1 = vmul.f32 -1.442695, %v1776_v60  ;;  %v1777_v22 = vadd.f32 %v1668_v20, %v8032_v47 }
 0x3e2   :  { %v1672_v31 = vpop.f32.mrf.mxu1  ;;  %v1761_v46 = vpop.f32.mrf.mxu0 }
 0x3e3   :  { %4588 = vpow2.f32 %v4266_v1  ;;  %v4270_v11 = vmul.f32 -1.442695, %v1777_v22  ;;  %v1780_v28 = vadd.f32 %v1672_v31, %v8033_v62  ;;  %v4273_v31 = vmul.f32 -1.442695, %v1775_v48 }
 0x3e4   :  { %v1674_v15 = vpop.f32.mrf.mxu1  ;;  %v1763_v37 = vpop.f32.mrf.mxu0  ;;  %v1779_v62 = vadd.f32 %v1757_v26, %v8038_v43  ;;  %v1778_v26 = vadd.f32 %v1755_v51, %v8042_v25 }
 0x3e5   :  { %4590 = vpow2.f32 %v4270_v11  ;;  %v4267_v8 = vmul.f32 -1.442695, %v1780_v28  ;;  %v1781_v10 = vadd.f32 %v1674_v15, %v8034_v50 }
 0x3e6   :  { %v1678_v41 = vpop.f32.mrf.mxu1  ;;  %v1767_v28 = vpop.f32.mrf.mxu0 }
 0x3e7   :  { %4592 = vpow2.f32 %v4267_v8  ;;  %v4271_v56 = vmul.f32 -1.442695, %v1781_v10  ;;  %v1784_v60 = vadd.f32 %v1678_v41, %v8037_v23  ;;  %v4274_v10 = vmul.f32 -1.442695, %v1779_v62 }
 0x3e8   :  { %v1680_v20 = vpop.f32.mrf.mxu1  ;;  %v1783_v41 = vadd.f32 %v1763_v37, %v8040_v38  ;;  %v1782_v62 = vadd.f32 %v1761_v46, %v8043_v35 }
 0x3e9   :  { %4594 = vpow2.f32 %v4271_v56  ;;  %v4268_v1 = vmul.f32 -1.442695, %v1784_v60  ;;  %v1785_v22 = vadd.f32 %v1680_v20, %v6527_v7  ;;  %v1769_v60 = vpop.f32.mrf.mxu0 }
 0x3ea   :  { %v1787_v9 = vadd.f32 %v1769_v60, %v6536_v18 }
 0x3eb   :  { %4596 = vpow2.f32 %v4268_v1  ;;  %v4272_v11 = vmul.f32 -1.442695, %v1785_v22  ;;  %v4275_v22 = vmul.f32 -1.442695, %v1783_v41 }
 0x3ec   :  { %v4585_v15 = vpop.eup %4584 }
 0x3ed   :  { %v1800_v0 = vadd.f32 1.0, %v4585_v15  ;;  %4598 = vpow2.f32 %v4272_v11  ;;  %v4276_v15 = vmul.f32 -1.442695, %v1787_v9 }
 0x3ee   :  { %v4587_v8 = vpop.eup %4586  ;;  %4600 = vpow2.f32 %v4273_v31 }
 0x3ef   :  { %4602 = vrcp.f32 %v1800_v0  ;;  %v1824_v56 = vadd.f32 1.0, %v4587_v8  ;;  %v1786_v8 = vadd.f32 %v1767_v28, %v8044_v40 }
 0x3f0   :  { %v4589_v20 = vpop.eup %4588  ;;  %4604 = vtanh.f32 %v1774_v36 }
 0x3f1   :  { %4606 = vrcp.f32 %v1824_v56  ;;  %v1801_v48 = vadd.f32 1.0, %v4589_v20 }
 0x3f2   :  { %v4591_v1 = vpop.eup %4590  ;;  %4608 = vpow2.f32 %v4274_v10 }
 0x3f3   :  { %4610 = vrcp.f32 %v1801_v48  ;;  %v1825_v11 = vadd.f32 1.0, %v4591_v1 }
 0x3f4   :  { %v4593_v31 = vpop.eup %4592  ;;  %4612 = vtanh.f32 %v1778_v26 }
 0x3f5   :  { %4614 = vrcp.f32 %v1825_v11  ;;  %v1802_v0 = vadd.f32 1.0, %v4593_v31 }
 0x3f6   :  { %v4595_v37 = vpop.eup %4594  ;;  %4616 = vpow2.f32 %v4275_v22 }
 0x3f7   :  { %4618 = vrcp.f32 %v1802_v0  ;;  %v1826_v51 = vadd.f32 1.0, %v4595_v37 }
 0x3f8   :  { %v4597_v36 = vpop.eup %4596  ;;  %4620 = vtanh.f32 %v1782_v62 }
 0x3f9   :  { %4622 = vrcp.f32 %v1826_v51  ;;  %v1803_v10 = vadd.f32 1.0, %v4597_v36 }
 0x3fa   :  { %v4599_v41 = vpop.eup %4598  ;;  %4624 = vpow2.f32 %v4276_v15 }
 0x3fb   :  { %v4601_v56 = vpop.eup %4600  ;;  %4626 = vrcp.f32 %v1803_v10  ;;  %v1827_v60 = vadd.f32 1.0, %v4599_v41 }
 0x3fc   :  { %v4603_v20 = vpop.eup %4602  ;;  %4628 = vtanh.f32 %v1786_v8  ;;  %v1852_v48 = vadd.f32 1.0, %v4601_v56 }
 0x3fd   :  { %v4605_v46 = vpop.eup %4604  ;;  %4630 = vrcp.f32 %v1827_v60 }
 0x3fe   :  { %v4607_v26 = vpop.eup %4606  ;;  %v1868_v22 = vmul.f32 %v4605_v46, %v4603_v20  ;;  %4632 = vrcp.f32 %v1852_v48 }
 0x3ff   :  { %v4609_v1 = vpop.eup %4608  ;;  %v1864_v9 = vmul.f32 %v4607_v26, %v6543_v14 }
 0x400   :  { %v4611_v11 = vpop.eup %4610  ;;  %v1853_v0 = vadd.f32 1.0, %v4609_v1 }
 0x401   :  { %v4613_v31 = vpop.eup %4612  ;;  %v6771_v28 = vadd.f32 %v1868_v22, %v1864_v9 }
 0x402   :  { %v4615_v62 = vpop.eup %4614  ;;  %v1869_v15 = vmul.f32 %v4613_v31, %v4611_v11 }
 0x403   :  { %v4617_v37 = vpop.eup %4616  ;;  %4634 = vtanh.f32 %v6771_v28  ;;  %v1865_v51 = vmul.f32 %v4615_v62, %v6547_v6 }
 0x404   :  { %v4619_v36 = vpop.eup %4618  ;;  %4636 = vrcp.f32 %v1853_v0  ;;  %v1854_v14 = vadd.f32 1.0, %v4617_v37 }
 0x405   :  { %v4621_v8 = vpop.eup %4620  ;;  %v6775_v10 = vadd.f32 %v1869_v15, %v1865_v51 }
 0x406   :  { %v4623_v41 = vpop.eup %4622  ;;  %v1870_v60 = vmul.f32 %v4621_v8, %v4619_v36 }
 0x407   :  { %v4625_v56 = vpop.eup %4624  ;;  %v1866_v20 = vmul.f32 %v4623_v41, %v6551_v33  ;;  %4638 = vtanh.f32 %v6775_v10 }
 0x408   :  { %v4627_v46 = vpop.eup %4626  ;;  %4640 = vrcp.f32 %v1854_v14  ;;  %v1855_v6 = vadd.f32 1.0, %v4625_v56  ;;  %v8081_v56 = vld [vmem:[#allocation75_spill] sm:$0xff] }
 0x409   :  { %v4629_v26 = vpop.eup %4628  ;;  %v6779_v48 = vadd.f32 %v1870_v60, %v1866_v20  ;;  %v8082_v60 = vld [vmem:[#allocation76_spill] sm:$0xff]  ;;  %v8083_v20 = vld [vmem:[#allocation77_spill] sm:$0xff] }
 0x40a   :  { %v4631_v1 = vpop.eup %4630  ;;  %v1871_v22 = vmul.f32 %v4629_v26, %v4627_v46  ;;  %v8084_v46 = vld [vmem:[#allocation26_spill] sm:$0xff]  ;;  %v8085_v26 = vld [vmem:[#allocation33_spill] sm:$0xff] }
 0x40b   :  { %v1867_v9 = vmul.f32 %v4631_v1, %v6555_v13  ;;  %4642 = vtanh.f32 %v6779_v48  ;;  %v4633_v31 = vpop.eup %4632  ;;  %v8086_v1 = vld [vmem:[#allocation27_spill] sm:$0xff] }
 0x40c   :  { %4644 = vrcp.f32 %v1855_v6  ;;  %v8087_v6 = vld [vmem:[#allocation34_spill] sm:$0xff] }
 0x40d   :  { %v6783_v11 = vadd.f32 %v1871_v22, %v1867_v9  ;;  %v8088_v22 = vld [vmem:[#allocation28_spill] sm:$0xff] }
 0x40e   :  { %v8089_v9 = vld [vmem:[#allocation36_spill] sm:$0xff] }
 0x40f   :  { %4646 = vtanh.f32 %v6783_v11 }
 0x410   :  { %v4635_v33 = vpop.eup %4634 }
 0x411   :  { %v1880_v62 = vmul.f32 %v4635_v33, %v4633_v31  ;;  %v4637_v0 = vpop.eup %4636  ;;  %v8090_v31 = vld [vmem:[#allocation29_spill] sm:$0xff] }
 0x412   :  { %v8091_v33 = vld [vmem:[#allocation37_spill] sm:$0xff] }
 0x413   :  { %1949 = vmatmul.mubr.f32.vlgmr.msra.gmra.mxu1 %v1880_v62  ;;  %2038 = vmatmul.mubr.f32.vlgmr.msra.gmra.mxu0 %v1880_v62  ;;  %v8092_v62 = vld [vmem:[#allocation30_spill] sm:$0xff] }
 0x414   :  { %v4639_v37 = vpop.eup %4638  ;;  %1954 = vmatprep.mubr.f32.mxu1 %v7932_v32  ;;  %2043 = vmatprep.mubr.f32.mxu0 %v7932_v32 }
 0x415   :  { %v1881_v15 = vmul.f32 %v4639_v37, %v4637_v0  ;;  %2175 = vmatpush1.msra.mxu1 %v6560_v16  ;;  %2264 = vmatpush1.msra.mxu0 %v6563_v2  ;;  %v4641_v13 = vpop.eup %4640  ;;  %v8093_v0 = vld [vmem:[#allocation38_spill] sm:$0xff]  ;;  %v8094_v37 = vld [vmem:[#allocation39_spill] sm:$0xff] }
 0x416   :  { %2176 = vmatprep.subr.mxu1 %v6566_v34  ;;  %2265 = vmatprep.subr.mxu0 %v6569_v19 }
 0x417   :  { %1955 = vmatmul.mubr.f32.gmra.mxu1 %v1881_v15  ;;  %2044 = vmatmul.mubr.f32.gmra.mxu0 %v1881_v15  ;;  %v8095_v15 = vld [vmem:[#allocation31_spill] sm:$0xff] }
 0x418   :  { %v4643_v51 = vpop.eup %4642  ;;  %1960 = vmatprep.mubr.f32.mxu1 %v7932_v32  ;;  %2049 = vmatprep.mubr.f32.mxu0 %v7932_v32 }
 0x419   :  { %v1882_v36 = vmul.f32 %v4643_v51, %v4641_v13  ;;  %2177 = vmatpush1.msra.mxu1 %v6574_v55  ;;  %2266 = vmatpush1.msra.mxu0 %v6577_v59  ;;  %v4645_v8 = vpop.eup %4644  ;;  %v8096_v13 = vld [vmem:[#allocation40_spill] sm:$0xff]  ;;  %v8097_v51 = vld [vmem:[#allocation41_spill] sm:$0xff] }
 0x41a   :  { %2178 = vmatprep.subr.mxu1 %v6580_v45  ;;  %2267 = vmatprep.subr.mxu0 %v6583_v5 }
 0x41b   :  { %1961 = vmatmul.mubr.f32.gmra.mxu1 %v1882_v36  ;;  %2050 = vmatmul.mubr.f32.gmra.mxu0 %v1882_v36  ;;  %v8098_v36 = vld [vmem:[#allocation32_spill] sm:$0xff] }
 0x41c   :  { %v4647_v41 = vpop.eup %4646  ;;  %1966 = vmatprep.mubr.f32.mxu1 %v7932_v32  ;;  %2055 = vmatprep.mubr.f32.mxu0 %v7932_v32 }
 0x41d   :  { %v1883_v14 = vmul.f32 %v4647_v41, %v4645_v8  ;;  %2179 = vmatpush1.msra.mxu1 %v6588_v29  ;;  %2268 = vmatpush1.msra.mxu0 %v6591_v52  ;;  %v8099_v8 = vld [vmem:[#allocation42_spill] sm:$0xff]  ;;  %v8100_v41 = vld [vmem:[#allocation35_spill] sm:$0xff] }
 0x41e   :  { %2180 = vmatprep.subr.mxu1 %v6594_v49  ;;  %2269 = vmatprep.subr.mxu0 %v6597_v4 }
 0x41f   :  { %1967 = vmatmul.mubr.f32.gmra.mxu1 %v1883_v14  ;;  %2056 = vmatmul.mubr.f32.gmra.mxu0 %v1883_v14  ;;  %v8101_v14 = vld [vmem:[#allocation43_spill] sm:$0xff] }
 0x420   :  { %2181 = vmatpush1.msra.mxu1 %v6600_v17  ;;  %2270 = vmatpush1.msra.mxu0 %v6603_v42 }
 0x421   :  { %2182 = vmatprep.subr.mxu1 %v6606_v57  ;;  %2271 = vmatprep.subr.mxu0 %v6609_v3 }
 0x422   :  { %2183 = vmatpush1.msra.mxu1 %v6612_v12  ;;  %2272 = vmatpush1.msra.mxu0 %v6615_v53 }
 0x423   :  { %2184 = vmatprep.subr.mxu1 %v6618_v63  ;;  %2273 = vmatprep.subr.mxu0 %v6621_v61 }
 0x424   :  { %2185 = vmatpush1.msra.mxu1 %v6624_v39  ;;  %2274 = vmatpush1.msra.mxu0 %v6627_v21 }
 0x425   :  { %2186 = vmatprep.subr.mxu1 %v6630_v44  ;;  %2275 = vmatprep.subr.mxu0 %v6633_v54 }
 0x426   :  { %2187 = vmatpush1.msra.mxu1 %v6636_v30  ;;  %2276 = vmatpush1.msra.mxu0 %v6639_v24 }
 0x427   :  { %2188 = vmatprep.subr.mxu1 %v8081_v56  ;;  %2277 = vmatprep.subr.mxu0 %v8082_v60 }
 0x428   :  { %2189 = vmatpush1.msra.mxu1 %v8083_v20  ;;  %2278 = vmatpush1.msra.mxu0 %v8084_v46 }
 0x429   :  { %2190 = vmatprep.subr.mxu1 %v8085_v26  ;;  %2279 = vmatprep.subr.mxu0 %v8086_v1 }
 0x42a   :  { %2191 = vmatpush1.msra.mxu1 %v8087_v6  ;;  %2280 = vmatpush1.msra.mxu0 %v8088_v22 }
 0x42b   :  { %2192 = vmatprep.subr.mxu1 %v8089_v9  ;;  %2281 = vmatprep.subr.mxu0 %v8090_v31 }
 0x42c   :  { %2193 = vmatpush1.msra.mxu1 %v8091_v33  ;;  %2282 = vmatpush1.msra.mxu0 %v8092_v62  ;;  %v8102_v33 = vld [vmem:[#allocation44_spill] sm:$0xff]  ;;  %v8103_v62 = vld [vmem:[#allocation45_spill] sm:$0xff] }
 0x42d   :  { %2194 = vmatprep.subr.mxu1 %v8093_v0  ;;  %2283 = vmatprep.subr.mxu0 %v8094_v37  ;;  %v8104_v0 = vld [vmem:[#allocation46_spill] sm:$0xff]  ;;  %v8105_v37 = vld [vmem:[#allocation47_spill] sm:$0xff] }
 0x42e   :  { %2195 = vmatpush1.msra.mxu1 %v8095_v15  ;;  %2284 = vmatpush1.msra.mxu0 %v8096_v13  ;;  %v8106_v15 = vld [vmem:[#allocation48_spill] sm:$0xff]  ;;  %v8107_v13 = vld [vmem:[#allocation49_spill] sm:$0xff] }
 0x42f   :  { %2196 = vmatprep.subr.mxu1 %v8097_v51  ;;  %2285 = vmatprep.subr.mxu0 %v8098_v36  ;;  %v8108_v51 = vld [vmem:[#allocation50_spill] sm:$0xff]  ;;  %v8109_v36 = vld [vmem:[#allocation51_spill] sm:$0xff] }
 0x430   :  { %2197 = vmatpush1.msra.mxu1 %v8099_v8  ;;  %2286 = vmatpush1.msra.mxu0 %v8100_v41  ;;  %v8110_v8 = vld [vmem:[#allocation52_spill] sm:$0xff]  ;;  %v8111_v41 = vld [vmem:[#allocation53_spill] sm:$0xff] }
 0x431   :  { %2198 = vmatprep.subr.mxu1 %v8101_v14  ;;  %2287 = vmatprep.subr.mxu0 %v8102_v33  ;;  %v8112_v14 = vld [vmem:[#allocation54_spill] sm:$0xff]  ;;  %v8113_v33 = vld [vmem:[#allocation55_spill] sm:$0xff] }
 0x432   :  { %2199 = vmatpush1.msra.mxu1 %v8103_v62  ;;  %2288 = vmatpush1.msra.mxu0 %v8104_v0  ;;  %v8114_v62 = vld [vmem:[#allocation56_spill] sm:$0xff]  ;;  %v8115_v0 = vld [vmem:[#allocation57_spill] sm:$0xff] }
 0x433   :  { %2200 = vmatprep.subr.mxu1 %v8105_v37  ;;  %2289 = vmatprep.subr.mxu0 %v8106_v15  ;;  %v8116_v15 = vld [vmem:[#allocation58_spill] sm:$0xff] }
 0x434   :  { %2201 = vmatpush1.msra.mxu1 %v8107_v13  ;;  %2290 = vmatpush1.msra.mxu0 %v8108_v51  ;;  %v8117_v51 = vld [vmem:[#allocation74_spill] sm:$0xff]  ;;  %v8119_v13 = vld [vmem:[#allocation79_spill] sm:$0xff] }
 0x435   :  { %2202 = vmatprep.subr.mxu1 %v8109_v36  ;;  %2291 = vmatprep.subr.mxu0 %v8110_v8  ;;  %v8118_v36 = vld [vmem:[#allocation78_spill] sm:$0xff] }
 0x436   :  { %2203 = vmatpush1.msra.mxu1 %v8111_v41  ;;  %2292 = vmatpush1.msra.mxu0 %v8112_v14 }
 0x437   :  { %2204 = vmatprep.subr.mxu1 %v8113_v33  ;;  %2293 = vmatprep.subr.mxu0 %v8114_v62 }
 0x438   :  { %2205 = vmatpush1.msra.mxu1 %v8115_v0  ;;  %2238 = vmatprep.mubr.f32.mxu1 %v7932_v32 }
 0x439   :  { %2294 = vmatpush1.msra.mxu0 %v8116_v15  ;;  %2327 = vmatprep.mubr.f32.mxu0 %v7932_v32  ;;  %v8120_v15 = vld [vmem:[#allocation81_spill] sm:$0xff] }
 0x43a   :  { %2464 = vmatprep.subr.mxu1 %v8117_v51  ;;  %2553 = vmatprep.subr.mxu0 %v8118_v36 }
 0x4d3   :  { %v1950_v8 = vpop.f32.mrf.mxu1  ;;  %v2039_v41 = vpop.f32.mrf.mxu0 }
 0x4d4   :  { %v2062_v14 = vadd.f32 %v1950_v8, %v8119_v13  ;;  %v8121_v13 = vld [vmem:[#allocation83_spill] sm:$0xff] }
 0x4d5   :  { %v1952_v37 = vpop.f32.mrf.mxu1  ;;  %v2041_v33 = vpop.f32.mrf.mxu0 }
 0x4d6   :  { %v4277_v31 = vmul.f32 -1.442695, %v2062_v14  ;;  %v2063_v62 = vadd.f32 %v1952_v37, %v8030_v58 }
 0x4d7   :  { %v1956_v0 = vpop.f32.mrf.mxu1  ;;  %v2045_v9 = vpop.f32.mrf.mxu0 }
 0x4d8   :  { %4648 = vpow2.f32 %v4277_v31  ;;  %v4281_v22 = vmul.f32 -1.442695, %v2063_v62  ;;  %v2066_v6 = vadd.f32 %v1956_v0, %v8120_v15  ;;  %v8122_v62 = vld [vmem:[#allocation87_spill] sm:$0xff] }
 0x4d9   :  { %v1958_v1 = vpop.f32.mrf.mxu1  ;;  %v2047_v26 = vpop.f32.mrf.mxu0  ;;  %v2065_v58 = vadd.f32 %v2041_v33, %v8122_v62  ;;  %v2064_v33 = vadd.f32 %v2039_v41, %v8039_v27 }
 0x4da   :  { %4650 = vpow2.f32 %v4281_v22  ;;  %v4278_v51 = vmul.f32 -1.442695, %v2066_v6  ;;  %v2067_v36 = vadd.f32 %v1958_v1, %v8032_v47 }
 0x4db   :  { %v1962_v46 = vpop.f32.mrf.mxu1  ;;  %v2051_v14 = vpop.f32.mrf.mxu0 }
 0x4dc   :  { %4652 = vpow2.f32 %v4278_v51  ;;  %v4282_v8 = vmul.f32 -1.442695, %v2067_v36  ;;  %v2070_v20 = vadd.f32 %v1962_v46, %v8121_v13  ;;  %v4285_v46 = vmul.f32 -1.442695, %v2065_v58 }
 0x4dd   :  { %v1964_v60 = vpop.f32.mrf.mxu1  ;;  %v2053_v22 = vpop.f32.mrf.mxu0  ;;  %v2069_v13 = vadd.f32 %v2047_v26, %v8038_v43  ;;  %v2068_v58 = vadd.f32 %v2045_v9, %v8042_v25 }
 0x4de   :  { %4654 = vpow2.f32 %v4282_v8  ;;  %v4279_v37 = vmul.f32 -1.442695, %v2070_v20  ;;  %v2071_v31 = vadd.f32 %v1964_v60, %v8034_v50 }
 0x4df   :  { %v1968_v0 = vpop.f32.mrf.mxu1  ;;  %v2057_v20 = vpop.f32.mrf.mxu0 }
 0x4e0   :  { %4656 = vpow2.f32 %v4279_v37  ;;  %v4283_v15 = vmul.f32 -1.442695, %v2071_v31  ;;  %v2074_v6 = vadd.f32 %v1968_v0, %v8037_v23  ;;  %v4286_v31 = vmul.f32 -1.442695, %v2069_v13 }
 0x4e1   :  { %v1970_v1 = vpop.f32.mrf.mxu1  ;;  %v2073_v0 = vadd.f32 %v2053_v22, %v8040_v38  ;;  %v2072_v13 = vadd.f32 %v2051_v14, %v8043_v35 }
 0x4e2   :  { %4658 = vpow2.f32 %v4283_v15  ;;  %v4280_v51 = vmul.f32 -1.442695, %v2074_v6  ;;  %v2075_v36 = vadd.f32 %v1970_v1, %v6527_v7  ;;  %v2059_v6 = vpop.f32.mrf.mxu0 }
 0x4e3   :  { %v2077_v41 = vadd.f32 %v2059_v6, %v6536_v18 }
 0x4e4   :  { %4660 = vpow2.f32 %v4280_v51  ;;  %v4284_v8 = vmul.f32 -1.442695, %v2075_v36  ;;  %v4287_v36 = vmul.f32 -1.442695, %v2073_v0 }
 0x4e5   :  { %v4649_v60 = vpop.eup %4648 }
 0x4e6   :  { %v2090_v62 = vadd.f32 1.0, %v4649_v60  ;;  %4662 = vpow2.f32 %v4284_v8  ;;  %v4288_v60 = vmul.f32 -1.442695, %v2077_v41 }
 0x4e7   :  { %v4651_v37 = vpop.eup %4650  ;;  %4664 = vpow2.f32 %v4285_v46 }
 0x4e8   :  { %4666 = vrcp.f32 %v2090_v62  ;;  %v2114_v15 = vadd.f32 1.0, %v4651_v37  ;;  %v2076_v37 = vadd.f32 %v2057_v20, %v8044_v40 }
 0x4e9   :  { %v4653_v1 = vpop.eup %4652  ;;  %4668 = vtanh.f32 %v2064_v33 }
 0x4ea   :  { %4670 = vrcp.f32 %v2114_v15  ;;  %v2091_v26 = vadd.f32 1.0, %v4653_v1 }
 0x4eb   :  { %v4655_v51 = vpop.eup %4654  ;;  %4672 = vpow2.f32 %v4286_v31 }
 0x4ec   :  { %4674 = vrcp.f32 %v2091_v26  ;;  %v2115_v8 = vadd.f32 1.0, %v4655_v51 }
 0x4ed   :  { %v4657_v46 = vpop.eup %4656  ;;  %4676 = vtanh.f32 %v2068_v58 }
 0x4ee   :  { %4678 = vrcp.f32 %v2115_v8  ;;  %v2092_v62 = vadd.f32 1.0, %v4657_v46 }
 0x4ef   :  { %v4659_v22 = vpop.eup %4658  ;;  %4680 = vpow2.f32 %v4287_v36 }
 0x4f0   :  { %4682 = vrcp.f32 %v2092_v62  ;;  %v2116_v9 = vadd.f32 1.0, %v4659_v22 }
 0x4f1   :  { %v4661_v33 = vpop.eup %4660  ;;  %4684 = vtanh.f32 %v2072_v13 }
 0x4f2   :  { %4686 = vrcp.f32 %v2116_v9  ;;  %v2093_v31 = vadd.f32 1.0, %v4661_v33 }
 0x4f3   :  { %v4663_v0 = vpop.eup %4662  ;;  %4688 = vpow2.f32 %v4288_v60 }
 0x4f4   :  { %v4665_v15 = vpop.eup %4664  ;;  %4690 = vrcp.f32 %v2093_v31  ;;  %v2117_v6 = vadd.f32 1.0, %v4663_v0 }
 0x4f5   :  { %v4667_v1 = vpop.eup %4666  ;;  %4692 = vtanh.f32 %v2076_v37  ;;  %v2142_v26 = vadd.f32 1.0, %v4665_v15 }
 0x4f6   :  { %v4669_v14 = vpop.eup %4668  ;;  %4694 = vrcp.f32 %v2117_v6 }
 0x4f7   :  { %v4671_v58 = vpop.eup %4670  ;;  %v2158_v36 = vmul.f32 %v4669_v14, %v4667_v1  ;;  %4696 = vrcp.f32 %v2142_v26 }
 0x4f8   :  { %v4673_v51 = vpop.eup %4672  ;;  %v2154_v41 = vmul.f32 %v4671_v58, %v6771_v28 }
 0x4f9   :  { %v4675_v8 = vpop.eup %4674  ;;  %v2143_v62 = vadd.f32 1.0, %v4673_v51 }
 0x4fa   :  { %v4677_v46 = vpop.eup %4676  ;;  %v6875_v20 = vadd.f32 %v2158_v36, %v2154_v41 }
 0x4fb   :  { %v4679_v13 = vpop.eup %4678  ;;  %v2159_v60 = vmul.f32 %v4677_v46, %v4675_v8 }
 0x4fc   :  { %v4681_v22 = vpop.eup %4680  ;;  %4698 = vtanh.f32 %v6875_v20  ;;  %v2155_v9 = vmul.f32 %v4679_v13, %v6775_v10 }
 0x4fd   :  { %v4683_v33 = vpop.eup %4682  ;;  %4700 = vrcp.f32 %v2143_v62  ;;  %v2144_v28 = vadd.f32 1.0, %v4681_v22 }
 0x4fe   :  { %v4685_v37 = vpop.eup %4684  ;;  %v6879_v31 = vadd.f32 %v2159_v60, %v2155_v9 }
 0x4ff   :  { %v4687_v0 = vpop.eup %4686  ;;  %v2160_v6 = vmul.f32 %v4685_v37, %v4683_v33  ;;  %v8147_v37 = vld [vmem:[#allocation48_spill] sm:$0xff] }
 0x500   :  { %v4689_v15 = vpop.eup %4688  ;;  %v2156_v1 = vmul.f32 %v4687_v0, %v6779_v48  ;;  %4702 = vtanh.f32 %v6879_v31  ;;  %v8148_v0 = vld [vmem:[#allocation49_spill] sm:$0xff] }
 0x501   :  { %v4691_v14 = vpop.eup %4690  ;;  %4704 = vrcp.f32 %v2144_v28  ;;  %v2145_v10 = vadd.f32 1.0, %v4689_v15  ;;  %v8149_v28 = vld [vmem:[#allocation50_spill] sm:$0xff]  ;;  %v8150_v15 = vld [vmem:[#allocation51_spill] sm:$0xff] }
 0x502   :  { %v4693_v58 = vpop.eup %4692  ;;  %v6883_v26 = vadd.f32 %v2160_v6, %v2156_v1  ;;  %v8151_v6 = vld [vmem:[#allocation52_spill] sm:$0xff]  ;;  %v8152_v1 = vld [vmem:[#allocation53_spill] sm:$0xff] }
 0x503   :  { %v4695_v51 = vpop.eup %4694  ;;  %v2161_v36 = vmul.f32 %v4693_v58, %v4691_v14  ;;  %v8153_v14 = vld [vmem:[#allocation54_spill] sm:$0xff]  ;;  %v8154_v58 = vld [vmem:[#allocation55_spill] sm:$0xff] }
 0x504   :  { %v2157_v41 = vmul.f32 %v4695_v51, %v6783_v11  ;;  %4706 = vtanh.f32 %v6883_v26  ;;  %v4697_v46 = vpop.eup %4696  ;;  %v8155_v51 = vld [vmem:[#allocation56_spill] sm:$0xff] }
 0x505   :  { %4708 = vrcp.f32 %v2145_v10  ;;  %v8156_v10 = vld [vmem:[#allocation57_spill] sm:$0xff] }
 0x506   :  { %v6887_v8 = vadd.f32 %v2161_v36, %v2157_v41  ;;  %v8157_v36 = vld [vmem:[#allocation58_spill] sm:$0xff]  ;;  %v6960_v41 = vld [vmem:[#allocation10 + $0x1e8] sm:$0xff] }
 0x507   :  { %8158 = vst [vmem:[#allocation59_spill] sm:$0xff] %v6960_v41 }
 0x508   :  { %4710 = vtanh.f32 %v6887_v8 }
 0x509   :  { %v4699_v48 = vpop.eup %4698 }
 0x50a   :  { %v2170_v13 = vmul.f32 %v4699_v48, %v4697_v46  ;;  %v4701_v62 = vpop.eup %4700  ;;  %v6963_v46 = vld [vmem:[#allocation10 + $0x1f8] sm:$0xff] }
 0x50b   :  { %8159 = vst [vmem:[#allocation60_spill] sm:$0xff] %v6963_v46 }
 0x50c   :  { %2239 = vmatmul.mubr.f32.vlgmr.msra.gmra.mxu1 %v2170_v13  ;;  %2328 = vmatmul.mubr.f32.vlgmr.msra.gmra.mxu0 %v2170_v13 }
 0x50d   :  { %v4703_v22 = vpop.eup %4702  ;;  %2244 = vmatprep.mubr.f32.mxu1 %v7932_v32  ;;  %2333 = vmatprep.mubr.f32.mxu0 %v7932_v32 }
 0x50e   :  { %v2171_v60 = vmul.f32 %v4703_v22, %v4701_v62  ;;  %2465 = vmatpush1.msra.mxu1 %v6560_v16  ;;  %2554 = vmatpush1.msra.mxu0 %v6563_v2  ;;  %v4705_v11 = vpop.eup %4704  ;;  %v8160_v62 = vld [vmem:[#allocation79_spill] sm:$0xff] }
 0x50f   :  { %2466 = vmatprep.subr.mxu1 %v6566_v34  ;;  %2555 = vmatprep.subr.mxu0 %v6569_v19  ;;  %v8123_v19 = vld [vmem:[#allocation76_spill] sm:$0xff] }
 0x510   :  { %2245 = vmatmul.mubr.f32.gmra.mxu1 %v2171_v60  ;;  %2334 = vmatmul.mubr.f32.gmra.mxu0 %v2171_v60 }
 0x511   :  { %v4707_v9 = vpop.eup %4706  ;;  %2250 = vmatprep.mubr.f32.mxu1 %v7932_v32  ;;  %2339 = vmatprep.mubr.f32.mxu0 %v7932_v32 }
 0x512   :  { %v2172_v33 = vmul.f32 %v4707_v9, %v4705_v11  ;;  %2467 = vmatpush1.msra.mxu1 %v6574_v55  ;;  %2556 = vmatpush1.msra.mxu0 %v6577_v59  ;;  %v4709_v16 = vpop.eup %4708  ;;  %v8124_v55 = vld [vmem:[#allocation77_spill] sm:$0xff]  ;;  %v8125_v59 = vld [vmem:[#allocation26_spill] sm:$0xff] }
 0x513   :  { %2468 = vmatprep.subr.mxu1 %v6580_v45  ;;  %2557 = vmatprep.subr.mxu0 %v6583_v5  ;;  %v8126_v45 = vld [vmem:[#allocation33_spill] sm:$0xff]  ;;  %v8127_v5 = vld [vmem:[#allocation27_spill] sm:$0xff] }
 0x514   :  { %2251 = vmatmul.mubr.f32.gmra.mxu1 %v2172_v33  ;;  %2340 = vmatmul.mubr.f32.gmra.mxu0 %v2172_v33  ;;  %v8161_v33 = vld [vmem:[#allocation80_spill] sm:$0xff] }
 0x515   :  { %v4711_v2 = vpop.eup %4710  ;;  %2256 = vmatprep.mubr.f32.mxu1 %v7932_v32  ;;  %2345 = vmatprep.mubr.f32.mxu0 %v7932_v32 }
 0x516   :  { %v2173_v34 = vmul.f32 %v4711_v2, %v4709_v16  ;;  %2469 = vmatpush1.msra.mxu1 %v6588_v29  ;;  %2558 = vmatpush1.msra.mxu0 %v6591_v52  ;;  %v8128_v29 = vld [vmem:[#allocation34_spill] sm:$0xff]  ;;  %v8129_v52 = vld [vmem:[#allocation28_spill] sm:$0xff] }
 0x517   :  { %2470 = vmatprep.subr.mxu1 %v6594_v49  ;;  %2559 = vmatprep.subr.mxu0 %v6597_v4  ;;  %v8130_v49 = vld [vmem:[#allocation36_spill] sm:$0xff]  ;;  %v8131_v4 = vld [vmem:[#allocation29_spill] sm:$0xff] }
 0x518   :  { %2257 = vmatmul.mubr.f32.gmra.mxu1 %v2173_v34  ;;  %2346 = vmatmul.mubr.f32.gmra.mxu0 %v2173_v34 }
 0x519   :  { %2471 = vmatpush1.msra.mxu1 %v6600_v17  ;;  %2560 = vmatpush1.msra.mxu0 %v6603_v42  ;;  %v8132_v17 = vld [vmem:[#allocation37_spill] sm:$0xff]  ;;  %v8133_v42 = vld [vmem:[#allocation30_spill] sm:$0xff] }
 0x51a   :  { %2472 = vmatprep.subr.mxu1 %v6606_v57  ;;  %2561 = vmatprep.subr.mxu0 %v6609_v3  ;;  %v8134_v57 = vld [vmem:[#allocation38_spill] sm:$0xff]  ;;  %v8135_v3 = vld [vmem:[#allocation39_spill] sm:$0xff] }
 0x51b   :  { %2473 = vmatpush1.msra.mxu1 %v6612_v12  ;;  %2562 = vmatpush1.msra.mxu0 %v6615_v53  ;;  %v8136_v12 = vld [vmem:[#allocation31_spill] sm:$0xff]  ;;  %v8137_v53 = vld [vmem:[#allocation40_spill] sm:$0xff] }
 0x51c   :  { %2474 = vmatprep.subr.mxu1 %v6618_v63  ;;  %2563 = vmatprep.subr.mxu0 %v6621_v61  ;;  %v8138_v63 = vld [vmem:[#allocation41_spill] sm:$0xff]  ;;  %v8139_v61 = vld [vmem:[#allocation32_spill] sm:$0xff] }
 0x51d   :  { %2475 = vmatpush1.msra.mxu1 %v6624_v39  ;;  %2564 = vmatpush1.msra.mxu0 %v6627_v21  ;;  %v8140_v39 = vld [vmem:[#allocation42_spill] sm:$0xff]  ;;  %v8141_v21 = vld [vmem:[#allocation35_spill] sm:$0xff] }
 0x51e   :  { %2476 = vmatprep.subr.mxu1 %v6630_v44  ;;  %2565 = vmatprep.subr.mxu0 %v6633_v54  ;;  %v8142_v44 = vld [vmem:[#allocation43_spill] sm:$0xff]  ;;  %v8143_v54 = vld [vmem:[#allocation44_spill] sm:$0xff] }
 0x51f   :  { %2477 = vmatpush1.msra.mxu1 %v6636_v30  ;;  %2566 = vmatpush1.msra.mxu0 %v6639_v24  ;;  %v8144_v30 = vld [vmem:[#allocation45_spill] sm:$0xff]  ;;  %v8145_v24 = vld [vmem:[#allocation46_spill] sm:$0xff] }
 0x520   :  { %2478 = vmatprep.subr.mxu1 %v8081_v56  ;;  %2567 = vmatprep.subr.mxu0 %v8123_v19  ;;  %v8146_v56 = vld [vmem:[#allocation47_spill] sm:$0xff] }
 0x521   :  { %2479 = vmatpush1.msra.mxu1 %v8124_v55  ;;  %2568 = vmatpush1.msra.mxu0 %v8125_v59  ;;  %v8162_v55 = vld [vmem:[#allocation81_spill] sm:$0xff] }
 0x522   :  { %2480 = vmatprep.subr.mxu1 %v8126_v45  ;;  %2569 = vmatprep.subr.mxu0 %v8127_v5 }
 0x523   :  { %2481 = vmatpush1.msra.mxu1 %v8128_v29  ;;  %2570 = vmatpush1.msra.mxu0 %v8129_v52 }
 0x524   :  { %2482 = vmatprep.subr.mxu1 %v8130_v49  ;;  %2571 = vmatprep.subr.mxu0 %v8131_v4 }
 0x525   :  { %2483 = vmatpush1.msra.mxu1 %v8132_v17  ;;  %2572 = vmatpush1.msra.mxu0 %v8133_v42  ;;  %v8163_v17 = vld [vmem:[#allocation83_spill] sm:$0xff] }
 0x526   :  { %2484 = vmatprep.subr.mxu1 %v8134_v57  ;;  %2573 = vmatprep.subr.mxu0 %v8135_v3 }
 0x527   :  { %2485 = vmatpush1.msra.mxu1 %v8136_v12  ;;  %2574 = vmatpush1.msra.mxu0 %v8137_v53 }
 0x528   :  { %2486 = vmatprep.subr.mxu1 %v8138_v63  ;;  %2575 = vmatprep.subr.mxu0 %v8139_v61  ;;  %v8164_v63 = vld [vmem:[#allocation87_spill] sm:$0xff] }
 0x529   :  { %2487 = vmatpush1.msra.mxu1 %v8140_v39  ;;  %2576 = vmatpush1.msra.mxu0 %v8141_v21 }
 0x52a   :  { %2488 = vmatprep.subr.mxu1 %v8142_v44  ;;  %2577 = vmatprep.subr.mxu0 %v8143_v54 }
 0x52b   :  { %2489 = vmatpush1.msra.mxu1 %v8144_v30  ;;  %2578 = vmatpush1.msra.mxu0 %v8145_v24 }
 0x52c   :  { %2490 = vmatprep.subr.mxu1 %v8146_v56  ;;  %2579 = vmatprep.subr.mxu0 %v8147_v37 }
 0x52d   :  { %2491 = vmatpush1.msra.mxu1 %v8148_v0  ;;  %2580 = vmatpush1.msra.mxu0 %v8149_v28 }
 0x52e   :  { %2492 = vmatprep.subr.mxu1 %v8150_v15  ;;  %2581 = vmatprep.subr.mxu0 %v8151_v6 }
 0x52f   :  { %2493 = vmatpush1.msra.mxu1 %v8152_v1  ;;  %2582 = vmatpush1.msra.mxu0 %v8153_v14 }
 0x530   :  { %2494 = vmatprep.subr.mxu1 %v8154_v58  ;;  %2583 = vmatprep.subr.mxu0 %v8155_v51 }
 0x531   :  { %2495 = vmatpush1.msra.mxu1 %v8156_v10  ;;  %2528 = vmatprep.mubr.f32.mxu1 %v7932_v32 }
 0x532   :  { %2584 = vmatpush1.msra.mxu0 %v8157_v36  ;;  %2617 = vmatprep.mubr.f32.mxu0 %v7932_v32 }
 0x533   :  { %2754 = vmatprep.subr.mxu1 %v6960_v41  ;;  %2843 = vmatprep.subr.mxu0 %v6963_v46 }
 0x5cc   :  { %v2240_v48 = vpop.f32.mrf.mxu1  ;;  %v2329_v13 = vpop.f32.mrf.mxu0 }
 0x5cd   :  { %v2352_v22 = vadd.f32 %v2240_v48, %v8160_v62  ;;  %v2354_v1 = vadd.f32 %v2329_v13, %v8039_v27 }
 0x5ce   :  { %v2242_v60 = vpop.f32.mrf.mxu1  ;;  %v2331_v11 = vpop.f32.mrf.mxu0 }
 0x5cf   :  { %v4289_v9 = vmul.f32 -1.442695, %v2352_v22  ;;  %v2353_v16 = vadd.f32 %v2242_v60, %v8161_v33  ;;  %v2355_v61 = vadd.f32 %v2331_v11, %v8164_v63 }
 0x5d0   :  { %v2246_v2 = vpop.f32.mrf.mxu1  ;;  %v2335_v34 = vpop.f32.mrf.mxu0 }
 0x5d1   :  { %4712 = vpow2.f32 %v4289_v9  ;;  %v4293_v19 = vmul.f32 -1.442695, %v2353_v16  ;;  %v2356_v59 = vadd.f32 %v2246_v2, %v8162_v55  ;;  %v4297_v37 = vmul.f32 -1.442695, %v2355_v61 }
 0x5d2   :  { %v2248_v45 = vpop.f32.mrf.mxu1  ;;  %v2337_v5 = vpop.f32.mrf.mxu0  ;;  %v2358_v60 = vadd.f32 %v2335_v34, %v8042_v25 }
 0x5d3   :  { %4714 = vpow2.f32 %v4293_v19  ;;  %v4290_v29 = vmul.f32 -1.442695, %v2356_v59  ;;  %v2357_v52 = vadd.f32 %v2248_v45, %v8032_v47  ;;  %v2359_v0 = vadd.f32 %v2337_v5, %v8038_v43 }
 0x5d4   :  { %v2252_v49 = vpop.f32.mrf.mxu1  ;;  %v2341_v57 = vpop.f32.mrf.mxu0 }
 0x5d5   :  { %4716 = vpow2.f32 %v4290_v29  ;;  %v4294_v4 = vmul.f32 -1.442695, %v2357_v52  ;;  %v2360_v42 = vadd.f32 %v2252_v49, %v8163_v17  ;;  %v4298_v51 = vmul.f32 -1.442695, %v2359_v0 }
 0x5d6   :  { %v2254_v3 = vpop.f32.mrf.mxu1  ;;  %v2343_v44 = vpop.f32.mrf.mxu0  ;;  %v2362_v59 = vadd.f32 %v2341_v57, %v8043_v35 }
 0x5d7   :  { %4718 = vpow2.f32 %v4294_v4  ;;  %v4291_v12 = vmul.f32 -1.442695, %v2360_v42  ;;  %v2361_v53 = vadd.f32 %v2254_v3, %v8034_v50  ;;  %v2363_v10 = vadd.f32 %v2343_v44, %v8040_v38 }
 0x5d8   :  { %v2258_v39 = vpop.f32.mrf.mxu1  ;;  %v2347_v28 = vpop.f32.mrf.mxu0 }
 0x5d9   :  { %4720 = vpow2.f32 %v4291_v12  ;;  %v4295_v21 = vmul.f32 -1.442695, %v2361_v53  ;;  %v2364_v54 = vadd.f32 %v2258_v39, %v8037_v23  ;;  %v4299_v16 = vmul.f32 -1.442695, %v2363_v10 }
 0x5da   :  { %v2260_v30 = vpop.f32.mrf.mxu1  ;;  %v2349_v48 = vpop.f32.mrf.mxu0  ;;  %v2366_v49 = vadd.f32 %v2347_v28, %v8044_v40 }
 0x5db   :  { %4722 = vpow2.f32 %v4295_v21  ;;  %v4292_v24 = vmul.f32 -1.442695, %v2364_v54  ;;  %v2365_v56 = vadd.f32 %v2260_v30, %v6527_v7  ;;  %v2367_v13 = vadd.f32 %v2349_v48, %v6536_v18 }
 0x5dd   :  { %4724 = vpow2.f32 %v4292_v24  ;;  %v4296_v15 = vmul.f32 -1.442695, %v2365_v56  ;;  %v4300_v29 = vmul.f32 -1.442695, %v2367_v13 }
 0x5de   :  { %v4713_v6 = vpop.eup %4712 }
 0x5df   :  { %v2380_v14 = vadd.f32 1.0, %v4713_v6  ;;  %4726 = vpow2.f32 %v4296_v15 }
 0x5e0   :  { %v4715_v58 = vpop.eup %4714  ;;  %4728 = vpow2.f32 %v4297_v37 }
 0x5e1   :  { %4730 = vrcp.f32 %v2380_v14  ;;  %v2404_v36 = vadd.f32 1.0, %v4715_v58 }
 0x5e2   :  { %v4717_v22 = vpop.eup %4716  ;;  %4732 = vtanh.f32 %v2354_v1 }
 0x5e3   :  { %4734 = vrcp.f32 %v2404_v36  ;;  %v2381_v11 = vadd.f32 1.0, %v4717_v22 }
 0x5e4   :  { %v4719_v9 = vpop.eup %4718  ;;  %4736 = vpow2.f32 %v4298_v51 }
 0x5e5   :  { %4738 = vrcp.f32 %v2381_v11  ;;  %v2405_v2 = vadd.f32 1.0, %v4719_v9 }
 0x5e6   :  { %v4721_v19 = vpop.eup %4720  ;;  %4740 = vtanh.f32 %v2358_v60 }
 0x5e7   :  { %4742 = vrcp.f32 %v2405_v2  ;;  %v2382_v45 = vadd.f32 1.0, %v4721_v19 }
 0x5e8   :  { %v4723_v5 = vpop.eup %4722  ;;  %4744 = vpow2.f32 %v4299_v16 }
 0x5e9   :  { %4746 = vrcp.f32 %v2382_v45  ;;  %v2406_v34 = vadd.f32 1.0, %v4723_v5 }
 0x5ea   :  { %v4725_v52 = vpop.eup %4724  ;;  %4748 = vtanh.f32 %v2362_v59 }
 0x5eb   :  { %4750 = vrcp.f32 %v2406_v34  ;;  %v2383_v4 = vadd.f32 1.0, %v4725_v52  ;;  %v7003_v34 = vld [vmem:[#allocation10 + $0x1f0] sm:$0xff]  ;;  %v7006_v52 = vld [vmem:[#allocation10 + $0x1c8] sm:$0xff] }
 0x5ec   :  { %v4727_v42 = vpop.eup %4726  ;;  %4752 = vpow2.f32 %v4300_v29 }
 0x5ed   :  { %v4729_v3 = vpop.eup %4728  ;;  %4754 = vrcp.f32 %v2383_v4  ;;  %v2407_v12 = vadd.f32 1.0, %v4727_v42 }
 0x5ee   :  { %v4731_v53 = vpop.eup %4730  ;;  %4756 = vtanh.f32 %v2366_v49  ;;  %v2432_v39 = vadd.f32 1.0, %v4729_v3  ;;  %v7009_v49 = vld [vmem:[#allocation10 + $0x1d8] sm:$0xff] }
 0x5ef   :  { %v4733_v57 = vpop.eup %4732  ;;  %4758 = vrcp.f32 %v2407_v12  ;;  %v7014_v12 = vld [vmem:[#allocation10 + $0x1c0] sm:$0xff] }
 0x5f0   :  { %v4735_v61 = vpop.eup %4734  ;;  %v2448_v44 = vmul.f32 %v4733_v57, %v4731_v53  ;;  %4760 = vrcp.f32 %v2432_v39  ;;  %v7017_v53 = vld [vmem:[#allocation10 + $0x1d0] sm:$0xff]  ;;  %v7020_v57 = vld [vmem:[#allocation10 + $0x1a8] sm:$0xff] }
 0x5f1   :  { %v4737_v21 = vpop.eup %4736  ;;  %v2444_v54 = vmul.f32 %v4735_v61, %v6875_v20  ;;  %v7023_v61 = vld [vmem:[#allocation10 + $0x1b8] sm:$0xff] }
 0x5f2   :  { %v4739_v30 = vpop.eup %4738  ;;  %v2433_v0 = vadd.f32 1.0, %v4737_v21 }
 0x5f3   :  { %v4741_v24 = vpop.eup %4740  ;;  %v6983_v56 = vadd.f32 %v2448_v44, %v2444_v54  ;;  %v7028_v54 = vld [vmem:[#allocation10 + $0x1a0] sm:$0xff] }
 0x5f4   :  { %v4743_v37 = vpop.eup %4742  ;;  %v2449_v15 = vmul.f32 %v4741_v24, %v4739_v30  ;;  %v7031_v30 = vld [vmem:[#allocation10 + $0x1b0] sm:$0xff]  ;;  %v7034_v24 = vld [vmem:[#allocation10 + $0x188] sm:$0xff] }
 0x5f5   :  { %v4745_v28 = vpop.eup %4744  ;;  %4762 = vtanh.f32 %v6983_v56  ;;  %v2445_v6 = vmul.f32 %v4743_v37, %v6879_v31  ;;  %v7037_v37 = vld [vmem:[#allocation10 + $0x198] sm:$0xff] }
 0x5f6   :  { %v4747_v1 = vpop.eup %4746  ;;  %4764 = vrcp.f32 %v2433_v0  ;;  %v2434_v20 = vadd.f32 1.0, %v4745_v28  ;;  %v7040_v0 = vld [vmem:[#allocation10 + $0x180] sm:$0xff]  ;;  %v7043_v28 = vld [vmem:[#allocation10 + $0x190] sm:$0xff] }
 0x5f7   :  { %v4749_v14 = vpop.eup %4748  ;;  %v6987_v58 = vadd.f32 %v2449_v15, %v2445_v6  ;;  %v7046_v15 = vld [vmem:[#allocation10 + $0x168] sm:$0xff]  ;;  %v7049_v6 = vld [vmem:[#allocation10 + $0x178] sm:$0xff] }
 0x5f8   :  { %v4751_v51 = vpop.eup %4750  ;;  %v2450_v36 = vmul.f32 %v4749_v14, %v4747_v1  ;;  %v7052_v1 = vld [vmem:[#allocation10 + $0x160] sm:$0xff]  ;;  %v7055_v14 = vld [vmem:[#allocation10 + $0x170] sm:$0xff] }
 0x5f9   :  { %v4753_v10 = vpop.eup %4752  ;;  %v2446_v48 = vmul.f32 %v4751_v51, %v6883_v26  ;;  %4766 = vtanh.f32 %v6987_v58  ;;  %v7058_v51 = vld [vmem:[#allocation10 + $0x148] sm:$0xff] }
 0x5fa   :  { %v4755_v22 = vpop.eup %4754  ;;  %4768 = vrcp.f32 %v2434_v20  ;;  %v2435_v31 = vadd.f32 1.0, %v4753_v10  ;;  %v7061_v20 = vld [vmem:[#allocation10 + $0x158] sm:$0xff]  ;;  %v7064_v10 = vld [vmem:[#allocation10 + $0x140] sm:$0xff] }
 0x5fb   :  { %v4757_v60 = vpop.eup %4756  ;;  %v6991_v11 = vadd.f32 %v2450_v36, %v2446_v48  ;;  %v7067_v36 = vld [vmem:[#allocation10 + $0x150] sm:$0xff]  ;;  %v7070_v48 = vld [vmem:[#allocation10 + $0x128] sm:$0xff] }
 0x5fc   :  { %v4759_v9 = vpop.eup %4758  ;;  %v2451_v16 = vmul.f32 %v4757_v60, %v4755_v22  ;;  %v7073_v22 = vld [vmem:[#allocation10 + $0x138] sm:$0xff]  ;;  %v7076_v60 = vld [vmem:[#allocation10 + $0x120] sm:$0xff] }
 0x5fd   :  { %v2447_v13 = vmul.f32 %v4759_v9, %v6887_v8  ;;  %4770 = vtanh.f32 %v6991_v11  ;;  %v4761_v19 = vpop.eup %4760  ;;  %v7000_v8 = vld [vmem:[#allocation10 + $0x1e0] sm:$0xff]  ;;  %v7079_v9 = vld [vmem:[#allocation10 + $0x130] sm:$0xff] }
 0x5fe   :  { %4772 = vrcp.f32 %v2435_v31  ;;  %v7082_v31 = vld [vmem:[#allocation10 + $0x108] sm:$0xff] }
 0x5ff   :  { %v6995_v2 = vadd.f32 %v2451_v16, %v2447_v13  ;;  %8165 = vst [vmem:[#allocation61_spill] sm:$0xff] %v7082_v31  ;;  %v7085_v16 = vld [vmem:[#allocation10 + $0x118] sm:$0xff]  ;;  %v7088_v13 = vld [vmem:[#allocation10 + $0x100] sm:$0xff] }
 0x600   :  { %8166 = vst [vmem:[#allocation62_spill] sm:$0xff] %v7085_v16  ;;  %8167 = vst [vmem:[#allocation63_spill] sm:$0xff] %v7088_v13 }
 0x601   :  { %4774 = vtanh.f32 %v6995_v2 }
 0x602   :  { %v4763_v26 = vpop.eup %4762 }
 0x603   :  { %v2460_v59 = vmul.f32 %v4763_v26, %v4761_v19  ;;  %v4765_v45 = vpop.eup %4764  ;;  %v7091_v19 = vld [vmem:[#allocation10 + $0x110] sm:$0xff]  ;;  %v7094_v26 = vld [vmem:[#allocation10 + $0xe8] sm:$0xff] }
 0x604   :  { %8168 = vst [vmem:[#allocation64_spill] sm:$0xff] %v7091_v19  ;;  %8169 = vst [vmem:[#allocation65_spill] sm:$0xff] %v7094_v26 }
 0x605   :  { %2529 = vmatmul.mubr.f32.vlgmr.msra.gmra.mxu1 %v2460_v59  ;;  %2618 = vmatmul.mubr.f32.vlgmr.msra.gmra.mxu0 %v2460_v59  ;;  %v7097_v59 = vld [vmem:[#allocation10 + $0xf8] sm:$0xff] }
 0x606   :  { %v4767_v5 = vpop.eup %4766  ;;  %2534 = vmatprep.mubr.f32.mxu1 %v7932_v32  ;;  %2623 = vmatprep.mubr.f32.mxu0 %v7932_v32  ;;  %8170 = vst [vmem:[#allocation66_spill] sm:$0xff] %v7097_v59 }
 0x607   :  { %v2461_v29 = vmul.f32 %v4767_v5, %v4765_v45  ;;  %2755 = vmatpush1.msra.mxu1 %v7000_v8  ;;  %2844 = vmatpush1.msra.mxu0 %v7003_v34  ;;  %v4769_v4 = vpop.eup %4768  ;;  %v7100_v45 = vld [vmem:[#allocation10 + $0xe0] sm:$0xff]  ;;  %v7103_v5 = vld [vmem:[#allocation10 + $0xf0] sm:$0xff] }
 0x608   :  { %2756 = vmatprep.subr.mxu1 %v7006_v52  ;;  %2845 = vmatprep.subr.mxu0 %v7009_v49  ;;  %8171 = vst [vmem:[#allocation67_spill] sm:$0xff] %v7100_v45  ;;  %8172 = vst [vmem:[#allocation68_spill] sm:$0xff] %v7103_v5 }
 0x609   :  { %2535 = vmatmul.mubr.f32.gmra.mxu1 %v2461_v29  ;;  %2624 = vmatmul.mubr.f32.gmra.mxu0 %v2461_v29  ;;  %v7106_v29 = vld [vmem:[#allocation10 + $0xc8] sm:$0xff] }
 0x60a   :  { %v4771_v42 = vpop.eup %4770  ;;  %2540 = vmatprep.mubr.f32.mxu1 %v7932_v32  ;;  %2629 = vmatprep.mubr.f32.mxu0 %v7932_v32  ;;  %8173 = vst [vmem:[#allocation69_spill] sm:$0xff] %v7106_v29 }
 0x60b   :  { %v2462_v3 = vmul.f32 %v4771_v42, %v4769_v4  ;;  %2757 = vmatpush1.msra.mxu1 %v7014_v12  ;;  %2846 = vmatpush1.msra.mxu0 %v7017_v53  ;;  %v4773_v39 = vpop.eup %4772  ;;  %v7109_v4 = vld [vmem:[#allocation10 + $0xd8] sm:$0xff]  ;;  %v7112_v42 = vld [vmem:[#allocation10 + $0xc0] sm:$0xff] }
 0x60c   :  { %2758 = vmatprep.subr.mxu1 %v7020_v57  ;;  %2847 = vmatprep.subr.mxu0 %v7023_v61  ;;  %8174 = vst [vmem:[#allocation70_spill] sm:$0xff] %v7109_v4  ;;  %8175 = vst [vmem:[#allocation71_spill] sm:$0xff] %v7112_v42 }
 0x60d   :  { %2541 = vmatmul.mubr.f32.gmra.mxu1 %v2462_v3  ;;  %2630 = vmatmul.mubr.f32.gmra.mxu0 %v2462_v3  ;;  %v7115_v3 = vld [vmem:[#allocation10 + $0xd0] sm:$0xff] }
 0x60e   :  { %v4775_v21 = vpop.eup %4774  ;;  %2546 = vmatprep.mubr.f32.mxu1 %v7932_v32  ;;  %2635 = vmatprep.mubr.f32.mxu0 %v7932_v32  ;;  %8176 = vst [vmem:[#allocation72_spill] sm:$0xff] %v7115_v3 }
 0x60f   :  { %v2463_v44 = vmul.f32 %v4775_v21, %v4773_v39  ;;  %2759 = vmatpush1.msra.mxu1 %v7028_v54  ;;  %2848 = vmatpush1.msra.mxu0 %v7031_v30  ;;  %v7118_v39 = vld [vmem:[#allocation10 + $0xa8] sm:$0xff]  ;;  %v7121_v21 = vld [vmem:[#allocation10 + $0xb8] sm:$0xff] }
 0x610   :  { %2760 = vmatprep.subr.mxu1 %v7034_v24  ;;  %2849 = vmatprep.subr.mxu0 %v7037_v37  ;;  %8177 = vst [vmem:[#allocation73_spill] sm:$0xff] %v7118_v39  ;;  %8178 = vst [vmem:[#allocation82_spill] sm:$0xff] %v7121_v21 }
 0x611   :  { %2547 = vmatmul.mubr.f32.gmra.mxu1 %v2463_v44  ;;  %2636 = vmatmul.mubr.f32.gmra.mxu0 %v2463_v44  ;;  %v7124_v44 = vld [vmem:[#allocation10 + $0xa0] sm:$0xff] }
 0x612   :  { %2761 = vmatpush1.msra.mxu1 %v7040_v0  ;;  %2850 = vmatpush1.msra.mxu0 %v7043_v28  ;;  %8179 = vst [vmem:[#allocation84_spill] sm:$0xff] %v7124_v44 }
 0x613   :  { %2762 = vmatprep.subr.mxu1 %v7046_v15  ;;  %2851 = vmatprep.subr.mxu0 %v7049_v6 }
 0x614   :  { %2763 = vmatpush1.msra.mxu1 %v7052_v1  ;;  %2852 = vmatpush1.msra.mxu0 %v7055_v14 }
 0x615   :  { %2764 = vmatprep.subr.mxu1 %v7058_v51  ;;  %2853 = vmatprep.subr.mxu0 %v7061_v20 }
 0x616   :  { %2765 = vmatpush1.msra.mxu1 %v7064_v10  ;;  %2854 = vmatpush1.msra.mxu0 %v7067_v36 }
 0x617   :  { %2766 = vmatprep.subr.mxu1 %v7070_v48  ;;  %2855 = vmatprep.subr.mxu0 %v7073_v22 }
 0x618   :  { %2767 = vmatpush1.msra.mxu1 %v7076_v60  ;;  %2856 = vmatpush1.msra.mxu0 %v7079_v9 }
 0x619   :  { %2768 = vmatprep.subr.mxu1 %v7082_v31  ;;  %2857 = vmatprep.subr.mxu0 %v7085_v16 }
 0x61a   :  { %2769 = vmatpush1.msra.mxu1 %v7088_v13  ;;  %2858 = vmatpush1.msra.mxu0 %v7091_v19 }
 0x61b   :  { %2770 = vmatprep.subr.mxu1 %v7094_v26  ;;  %2859 = vmatprep.subr.mxu0 %v7097_v59 }
 0x61c   :  { %2771 = vmatpush1.msra.mxu1 %v7100_v45  ;;  %2860 = vmatpush1.msra.mxu0 %v7103_v5 }
 0x61d   :  { %2772 = vmatprep.subr.mxu1 %v7106_v29  ;;  %2861 = vmatprep.subr.mxu0 %v7109_v4  ;;  %v7127_v4 = vld [vmem:[#allocation10 + $0xb0] sm:$0xff] }
 0x61e   :  { %2773 = vmatpush1.msra.mxu1 %v7112_v42  ;;  %2862 = vmatpush1.msra.mxu0 %v7115_v3  ;;  %8180 = vst [vmem:[#allocation91_spill] sm:$0xff] %v7127_v4  ;;  %v7130_v42 = vld [vmem:[#allocation10 + $0x88] sm:$0xff]  ;;  %v7133_v3 = vld [vmem:[#allocation10 + $0x98] sm:$0xff] }
 0x61f   :  { %2774 = vmatprep.subr.mxu1 %v7118_v39  ;;  %2863 = vmatprep.subr.mxu0 %v7121_v21  ;;  %8181 = vst [vmem:[#allocation85_spill] sm:$0xff] %v7130_v42  ;;  %8182 = vst [vmem:[#allocation25_spill] sm:$0xff] %v7133_v3  ;;  %v7136_v39 = vld [vmem:[#allocation10 + $0x80] sm:$0xff]  ;;  %v7139_v21 = vld [vmem:[#allocation10 + $0x90] sm:$0xff] }
 0x620   :  { %2775 = vmatpush1.msra.mxu1 %v7124_v44  ;;  %2864 = vmatpush1.msra.mxu0 %v7127_v4  ;;  %8183 = vst [vmem:[#allocation86_spill] sm:$0xff] %v7136_v39  ;;  %8184 = vst [vmem:[#allocation89_spill] sm:$0xff] %v7139_v21  ;;  %v7142_v44 = vld [vmem:[#allocation10 + $0x68] sm:$0xff]  ;;  %v7145_v4 = vld [vmem:[#allocation10 + $0x78] sm:$0xff] }
 0x621   :  { %2776 = vmatprep.subr.mxu1 %v7130_v42  ;;  %2865 = vmatprep.subr.mxu0 %v7133_v3  ;;  %8185 = vst [vmem:[#allocation92_spill] sm:$0xff] %v7142_v44  ;;  %8186 = vst [vmem:[#allocation24_spill] sm:$0xff] %v7145_v4  ;;  %v7148_v42 = vld [vmem:[#allocation10 + $0x60] sm:$0xff]  ;;  %v7151_v3 = vld [vmem:[#allocation10 + $0x70] sm:$0xff] }
 0x622   :  { %2777 = vmatpush1.msra.mxu1 %v7136_v39  ;;  %2866 = vmatpush1.msra.mxu0 %v7139_v21  ;;  %8187 = vst [vmem:[#allocation88_spill] sm:$0xff] %v7148_v42  ;;  %8188 = vst [vmem:[#allocation90_spill] sm:$0xff] %v7151_v3  ;;  %v7154_v39 = vld [vmem:[#allocation10 + $0x48] sm:$0xff]  ;;  %v7157_v21 = vld [vmem:[#allocation10 + $0x58] sm:$0xff] }
 0x623   :  { %2778 = vmatprep.subr.mxu1 %v7142_v44  ;;  %2867 = vmatprep.subr.mxu0 %v7145_v4  ;;  %8189 = vst [vmem:[#allocation75_spill] sm:$0xff] %v7154_v39  ;;  %8190 = vst [vmem:[#allocation74_spill] sm:$0xff] %v7157_v21  ;;  %v7160_v44 = vld [vmem:[#allocation10 + $0x40] sm:$0xff]  ;;  %v7163_v4 = vld [vmem:[#allocation10 + $0x50] sm:$0xff] }
 0x624   :  { %2779 = vmatpush1.msra.mxu1 %v7148_v42  ;;  %2868 = vmatpush1.msra.mxu0 %v7151_v3  ;;  %8191 = vst [vmem:[#allocation78_spill] sm:$0xff] %v7160_v44  ;;  %8192 = vst [vmem:[#allocation76_spill] sm:$0xff] %v7163_v4  ;;  %v7166_v42 = vld [vmem:[#allocation10 + $0x28] sm:$0xff]  ;;  %v7169_v3 = vld [vmem:[#allocation10 + $0x38] sm:$0xff] }
 0x625   :  { %2780 = vmatprep.subr.mxu1 %v7154_v39  ;;  %2869 = vmatprep.subr.mxu0 %v7157_v21  ;;  %8193 = vst [vmem:[#allocation77_spill] sm:$0xff] %v7166_v42  ;;  %8194 = vst [vmem:[#allocation26_spill] sm:$0xff] %v7169_v3  ;;  %v7172_v39 = vld [vmem:[#allocation10 + $0x20] sm:$0xff]  ;;  %v7175_v21 = vld [vmem:[#allocation10 + $0x30] sm:$0xff] }
 0x626   :  { %2781 = vmatpush1.msra.mxu1 %v7160_v44  ;;  %2870 = vmatpush1.msra.mxu0 %v7163_v4  ;;  %8195 = vst [vmem:[#allocation33_spill] sm:$0xff] %v7172_v39  ;;  %8196 = vst [vmem:[#allocation27_spill] sm:$0xff] %v7175_v21  ;;  %v7178_v44 = vld [vmem:[#allocation10 + $0x8] sm:$0xff]  ;;  %v7181_v4 = vld [vmem:[#allocation10 + $0x18] sm:$0xff] }
 0x627   :  { %2782 = vmatprep.subr.mxu1 %v7166_v42  ;;  %2871 = vmatprep.subr.mxu0 %v7169_v3  ;;  %8197 = vst [vmem:[#allocation34_spill] sm:$0xff] %v7178_v44  ;;  %8198 = vst [vmem:[#allocation28_spill] sm:$0xff] %v7181_v4  ;;  %v7184_v42 = vld [vmem:[#allocation10] sm:$0xff]  ;;  %v7188_v3 = vld [vmem:[#allocation10 + $0x10] sm:$0xff] }
 0x628   :  { %2783 = vmatpush1.msra.mxu1 %v7172_v39  ;;  %2872 = vmatpush1.msra.mxu0 %v7175_v21  ;;  %8199 = vst [vmem:[#allocation36_spill] sm:$0xff] %v7184_v42  ;;  %8200 = vst [vmem:[#allocation29_spill] sm:$0xff] %v7188_v3 }
 0x629   :  { %2784 = vmatprep.subr.mxu1 %v7178_v44  ;;  %2873 = vmatprep.subr.mxu0 %v7181_v4 }
 0x62a   :  { %2785 = vmatpush1.msra.mxu1 %v7184_v42  ;;  %2818 = vmatprep.mubr.f32.mxu1 %v7932_v32 }
 0x62b   :  { %2874 = vmatpush1.msra.mxu0 %v7188_v3  ;;  %2907 = vmatprep.mubr.f32.mxu0 %v7932_v32 }
 0x62c   :  { %3044 = vmatprep.subr.mxu1 %v6960_v41  ;;  %3133 = vmatprep.subr.mxu0 %v6963_v46 }
 0x6c5   :  { %v2530_v44 = vpop.f32.mrf.mxu1  ;;  %v2619_v21 = vpop.f32.mrf.mxu0 }
 0x6c6   :  { %v2642_v4 = vadd.f32 %v2530_v44, %v8160_v62 }
 0x6c7   :  { %v2532_v39 = vpop.f32.mrf.mxu1  ;;  %v2621_v29 = vpop.f32.mrf.mxu0 }
 0x6c8   :  { %v4301_v5 = vmul.f32 -1.442695, %v2642_v4  ;;  %v2643_v42 = vadd.f32 %v2532_v39, %v8161_v33 }
 0x6c9   :  { %v2536_v45 = vpop.f32.mrf.mxu1  ;;  %v2625_v59 = vpop.f32.mrf.mxu0 }
 0x6ca   :  { %4776 = vpow2.f32 %v4301_v5  ;;  %v4305_v26 = vmul.f32 -1.442695, %v2643_v42  ;;  %v2646_v3 = vadd.f32 %v2536_v45, %v8162_v55  ;;  %v2645_v42 = vadd.f32 %v2621_v29, %v8164_v63 }
 0x6cb   :  { %v2538_v19 = vpop.f32.mrf.mxu1  ;;  %v2627_v13 = vpop.f32.mrf.mxu0  ;;  %v2644_v29 = vadd.f32 %v2619_v21, %v8039_v27 }
 0x6cc   :  { %4778 = vpow2.f32 %v4305_v26  ;;  %v4302_v41 = vmul.f32 -1.442695, %v2646_v3  ;;  %v2647_v46 = vadd.f32 %v2538_v19, %v8032_v47 }
 0x6cd   :  { %v2542_v16 = vpop.f32.mrf.mxu1  ;;  %v2631_v4 = vpop.f32.mrf.mxu0 }
 0x6ce   :  { %4780 = vpow2.f32 %v4302_v41  ;;  %v4306_v44 = vmul.f32 -1.442695, %v2647_v46  ;;  %v2650_v62 = vadd.f32 %v2542_v16, %v8163_v17  ;;  %v4309_v16 = vmul.f32 -1.442695, %v2645_v42 }
 0x6cf   :  { %v2544_v31 = vpop.f32.mrf.mxu1  ;;  %v2633_v26 = vpop.f32.mrf.mxu0  ;;  %v2649_v17 = vadd.f32 %v2627_v13, %v8038_v43  ;;  %v2648_v13 = vadd.f32 %v2625_v59, %v8042_v25 }
 0x6d0   :  { %4782 = vpow2.f32 %v4306_v44  ;;  %v4303_v39 = vmul.f32 -1.442695, %v2650_v62  ;;  %v2651_v5 = vadd.f32 %v2544_v31, %v8034_v50 }
 0x6d1   :  { %v2548_v45 = vpop.f32.mrf.mxu1  ;;  %v2637_v62 = vpop.f32.mrf.mxu0 }
 0x6d2   :  { %4784 = vpow2.f32 %v4303_v39  ;;  %v4307_v55 = vmul.f32 -1.442695, %v2651_v5  ;;  %v2654_v3 = vadd.f32 %v2548_v45, %v8037_v23  ;;  %v4310_v5 = vmul.f32 -1.442695, %v2649_v17 }
 0x6d3   :  { %v2550_v19 = vpop.f32.mrf.mxu1  ;;  %v2653_v45 = vadd.f32 %v2633_v26, %v8040_v38  ;;  %v2652_v17 = vadd.f32 %v2631_v4, %v8043_v35 }
 0x6d4   :  { %4786 = vpow2.f32 %v4307_v55  ;;  %v4304_v41 = vmul.f32 -1.442695, %v2654_v3  ;;  %v2655_v46 = vadd.f32 %v2550_v19, %v6527_v7  ;;  %v2639_v3 = vpop.f32.mrf.mxu0 }
 0x6d5   :  { %v2657_v21 = vadd.f32 %v2639_v3, %v6536_v18 }
 0x6d6   :  { %4788 = vpow2.f32 %v4304_v41  ;;  %v4308_v44 = vmul.f32 -1.442695, %v2655_v46  ;;  %v4311_v46 = vmul.f32 -1.442695, %v2653_v45 }
 0x6d7   :  { %v4777_v31 = vpop.eup %4776 }
 0x6d8   :  { %v2670_v63 = vadd.f32 1.0, %v4777_v31  ;;  %4790 = vpow2.f32 %v4308_v44  ;;  %v4312_v31 = vmul.f32 -1.442695, %v2657_v21 }
 0x6d9   :  { %v4779_v39 = vpop.eup %4778  ;;  %4792 = vpow2.f32 %v4309_v16 }
 0x6da   :  { %4794 = vrcp.f32 %v2670_v63  ;;  %v2694_v55 = vadd.f32 1.0, %v4779_v39  ;;  %v2656_v39 = vadd.f32 %v2637_v62, %v8044_v40 }
 0x6db   :  { %v4781_v19 = vpop.eup %4780  ;;  %4796 = vtanh.f32 %v2644_v29 }
 0x6dc   :  { %4798 = vrcp.f32 %v2694_v55  ;;  %v2671_v42 = vadd.f32 1.0, %v4781_v19 }
 0x6dd   :  { %v4783_v41 = vpop.eup %4782  ;;  %4800 = vpow2.f32 %v4310_v5 }
 0x6de   :  { %4802 = vrcp.f32 %v2671_v42  ;;  %v2695_v44 = vadd.f32 1.0, %v4783_v41 }
 0x6df   :  { %v4785_v16 = vpop.eup %4784  ;;  %4804 = vtanh.f32 %v2648_v13 }
 0x6e0   :  { %4806 = vrcp.f32 %v2695_v44  ;;  %v2672_v63 = vadd.f32 1.0, %v4785_v16 }
 0x6e1   :  { %v4787_v26 = vpop.eup %4786  ;;  %4808 = vpow2.f32 %v4311_v46 }
 0x6e2   :  { %4810 = vrcp.f32 %v2672_v63  ;;  %v2696_v59 = vadd.f32 1.0, %v4787_v26 }
 0x6e3   :  { %v4789_v29 = vpop.eup %4788  ;;  %4812 = vtanh.f32 %v2652_v17 }
 0x6e4   :  { %4814 = vrcp.f32 %v2696_v59  ;;  %v2673_v5 = vadd.f32 1.0, %v4789_v29 }
 0x6e5   :  { %v4791_v45 = vpop.eup %4790  ;;  %4816 = vpow2.f32 %v4312_v31 }
 0x6e6   :  { %v4793_v55 = vpop.eup %4792  ;;  %4818 = vrcp.f32 %v2673_v5  ;;  %v2697_v3 = vadd.f32 1.0, %v4791_v45 }
 0x6e7   :  { %v4795_v19 = vpop.eup %4794  ;;  %4820 = vtanh.f32 %v2656_v39  ;;  %v2722_v42 = vadd.f32 1.0, %v4793_v55 }
 0x6e8   :  { %v4797_v4 = vpop.eup %4796  ;;  %4822 = vrcp.f32 %v2697_v3 }
 0x6e9   :  { %v4799_v13 = vpop.eup %4798  ;;  %v2738_v46 = vmul.f32 %v4797_v4, %v4795_v19  ;;  %4824 = vrcp.f32 %v2722_v42 }
 0x6ea   :  { %v4801_v41 = vpop.eup %4800  ;;  %v2734_v21 = vmul.f32 %v4799_v13, %v6983_v56 }
 0x6eb   :  { %v4803_v44 = vpop.eup %4802  ;;  %v2723_v63 = vadd.f32 1.0, %v4801_v41 }
 0x6ec   :  { %v4805_v16 = vpop.eup %4804  ;;  %v7211_v62 = vadd.f32 %v2738_v46, %v2734_v21 }
 0x6ed   :  { %v4807_v17 = vpop.eup %4806  ;;  %v2739_v31 = vmul.f32 %v4805_v16, %v4803_v44 }
 0x6ee   :  { %v4809_v26 = vpop.eup %4808  ;;  %4826 = vtanh.f32 %v7211_v62  ;;  %v2735_v59 = vmul.f32 %v4807_v17, %v6987_v58 }
 0x6ef   :  { %v4811_v29 = vpop.eup %4810  ;;  %4828 = vrcp.f32 %v2723_v63  ;;  %v2724_v56 = vadd.f32 1.0, %v4809_v26 }
 0x6f0   :  { %v4813_v39 = vpop.eup %4812  ;;  %v7215_v5 = vadd.f32 %v2739_v31, %v2735_v59 }
 0x6f1   :  { %v4815_v45 = vpop.eup %4814  ;;  %v2740_v3 = vmul.f32 %v4813_v39, %v4811_v29 }
 0x6f2   :  { %v4817_v55 = vpop.eup %4816  ;;  %v2736_v19 = vmul.f32 %v4815_v45, %v6991_v11  ;;  %4830 = vtanh.f32 %v7215_v5 }
 0x6f3   :  { %v4819_v4 = vpop.eup %4818  ;;  %4832 = vrcp.f32 %v2724_v56  ;;  %v2725_v58 = vadd.f32 1.0, %v4817_v55  ;;  %v8201_v55 = vld [vmem:[#allocation61_spill] sm:$0xff] }
 0x6f4   :  { %v4821_v13 = vpop.eup %4820  ;;  %v7219_v42 = vadd.f32 %v2740_v3, %v2736_v19  ;;  %v8202_v3 = vld [vmem:[#allocation62_spill] sm:$0xff]  ;;  %v8203_v19 = vld [vmem:[#allocation63_spill] sm:$0xff] }
 0x6f5   :  { %v4823_v41 = vpop.eup %4822  ;;  %v2741_v46 = vmul.f32 %v4821_v13, %v4819_v4  ;;  %v8204_v4 = vld [vmem:[#allocation64_spill] sm:$0xff]  ;;  %v8205_v13 = vld [vmem:[#allocation65_spill] sm:$0xff] }
 0x6f6   :  { %v2737_v21 = vmul.f32 %v4823_v41, %v6995_v2  ;;  %4834 = vtanh.f32 %v7219_v42  ;;  %v4825_v16 = vpop.eup %4824  ;;  %v8206_v41 = vld [vmem:[#allocation66_spill] sm:$0xff] }
 0x6f7   :  { %4836 = vrcp.f32 %v2725_v58  ;;  %v8207_v58 = vld [vmem:[#allocation67_spill] sm:$0xff] }
 0x6f8   :  { %v7223_v44 = vadd.f32 %v2741_v46, %v2737_v21  ;;  %v8208_v46 = vld [vmem:[#allocation68_spill] sm:$0xff]  ;;  %v8209_v21 = vld [vmem:[#allocation69_spill] sm:$0xff] }
 0x6fa   :  { %4838 = vtanh.f32 %v7223_v44 }
 0x6fb   :  { %v4827_v11 = vpop.eup %4826 }
 0x6fc   :  { %v2750_v17 = vmul.f32 %v4827_v11, %v4825_v16  ;;  %v4829_v63 = vpop.eup %4828  ;;  %v8210_v16 = vld [vmem:[#allocation70_spill] sm:$0xff]  ;;  %v8211_v11 = vld [vmem:[#allocation71_spill] sm:$0xff] }
 0x6fe   :  { %2819 = vmatmul.mubr.f32.vlgmr.msra.gmra.mxu1 %v2750_v17  ;;  %2908 = vmatmul.mubr.f32.vlgmr.msra.gmra.mxu0 %v2750_v17  ;;  %v8212_v17 = vld [vmem:[#allocation72_spill] sm:$0xff] }
 0x6ff   :  { %v4831_v26 = vpop.eup %4830  ;;  %2824 = vmatprep.mubr.f32.mxu1 %v7932_v32  ;;  %2913 = vmatprep.mubr.f32.mxu0 %v7932_v32 }
 0x700   :  { %v2751_v31 = vmul.f32 %v4831_v26, %v4829_v63  ;;  %3045 = vmatpush1.msra.mxu1 %v7000_v8  ;;  %3134 = vmatpush1.msra.mxu0 %v7003_v34  ;;  %v4833_v2 = vpop.eup %4832  ;;  %v8213_v63 = vld [vmem:[#allocation73_spill] sm:$0xff]  ;;  %v8214_v26 = vld [vmem:[#allocation82_spill] sm:$0xff] }
 0x701   :  { %3046 = vmatprep.subr.mxu1 %v7006_v52  ;;  %3135 = vmatprep.subr.mxu0 %v7009_v49 }
 0x702   :  { %2825 = vmatmul.mubr.f32.gmra.mxu1 %v2751_v31  ;;  %2914 = vmatmul.mubr.f32.gmra.mxu0 %v2751_v31  ;;  %v8215_v31 = vld [vmem:[#allocation84_spill] sm:$0xff] }
 0x703   :  { %v4835_v59 = vpop.eup %4834  ;;  %2830 = vmatprep.mubr.f32.mxu1 %v7932_v32  ;;  %2919 = vmatprep.mubr.f32.mxu0 %v7932_v32 }
 0x704   :  { %v2752_v29 = vmul.f32 %v4835_v59, %v4833_v2  ;;  %3047 = vmatpush1.msra.mxu1 %v7014_v12  ;;  %3136 = vmatpush1.msra.mxu0 %v7017_v53  ;;  %v4837_v39 = vpop.eup %4836  ;;  %v8216_v2 = vld [vmem:[#allocation91_spill] sm:$0xff]  ;;  %v8217_v59 = vld [vmem:[#allocation85_spill] sm:$0xff] }
 0x705   :  { %3048 = vmatprep.subr.mxu1 %v7020_v57  ;;  %3137 = vmatprep.subr.mxu0 %v7023_v61 }
 0x706   :  { %2831 = vmatmul.mubr.f32.gmra.mxu1 %v2752_v29  ;;  %2920 = vmatmul.mubr.f32.gmra.mxu0 %v2752_v29  ;;  %v8218_v29 = vld [vmem:[#allocation25_spill] sm:$0xff] }
 0x707   :  { %v4839_v45 = vpop.eup %4838  ;;  %2836 = vmatprep.mubr.f32.mxu1 %v7932_v32  ;;  %2925 = vmatprep.mubr.f32.mxu0 %v7932_v32 }
 0x708   :  { %v2753_v56 = vmul.f32 %v4839_v45, %v4837_v39  ;;  %3049 = vmatpush1.msra.mxu1 %v7028_v54  ;;  %3138 = vmatpush1.msra.mxu0 %v7031_v30  ;;  %v8219_v39 = vld [vmem:[#allocation86_spill] sm:$0xff]  ;;  %v8220_v45 = vld [vmem:[#allocation89_spill] sm:$0xff] }
 0x709   :  { %3050 = vmatprep.subr.mxu1 %v7034_v24  ;;  %3139 = vmatprep.subr.mxu0 %v7037_v37 }
 0x70a   :  { %2837 = vmatmul.mubr.f32.gmra.mxu1 %v2753_v56  ;;  %2926 = vmatmul.mubr.f32.gmra.mxu0 %v2753_v56  ;;  %v8221_v56 = vld [vmem:[#allocation92_spill] sm:$0xff] }
 0x70b   :  { %3051 = vmatpush1.msra.mxu1 %v7040_v0  ;;  %3140 = vmatpush1.msra.mxu0 %v7043_v28 }
 0x70c   :  { %3052 = vmatprep.subr.mxu1 %v7046_v15  ;;  %3141 = vmatprep.subr.mxu0 %v7049_v6 }
 0x70d   :  { %3053 = vmatpush1.msra.mxu1 %v7052_v1  ;;  %3142 = vmatpush1.msra.mxu0 %v7055_v14 }
 0x70e   :  { %3054 = vmatprep.subr.mxu1 %v7058_v51  ;;  %3143 = vmatprep.subr.mxu0 %v7061_v20 }
 0x70f   :  { %3055 = vmatpush1.msra.mxu1 %v7064_v10  ;;  %3144 = vmatpush1.msra.mxu0 %v7067_v36 }
 0x710   :  { %3056 = vmatprep.subr.mxu1 %v7070_v48  ;;  %3145 = vmatprep.subr.mxu0 %v7073_v22 }
 0x711   :  { %3057 = vmatpush1.msra.mxu1 %v7076_v60  ;;  %3146 = vmatpush1.msra.mxu0 %v7079_v9 }
 0x712   :  { %3058 = vmatprep.subr.mxu1 %v8201_v55  ;;  %3147 = vmatprep.subr.mxu0 %v8202_v3 }
 0x713   :  { %3059 = vmatpush1.msra.mxu1 %v8203_v19  ;;  %3148 = vmatpush1.msra.mxu0 %v8204_v4 }
 0x714   :  { %3060 = vmatprep.subr.mxu1 %v8205_v13  ;;  %3149 = vmatprep.subr.mxu0 %v8206_v41 }
 0x715   :  { %3061 = vmatpush1.msra.mxu1 %v8207_v58  ;;  %3150 = vmatpush1.msra.mxu0 %v8208_v46 }
 0x716   :  { %3062 = vmatprep.subr.mxu1 %v8209_v21  ;;  %3151 = vmatprep.subr.mxu0 %v8210_v16 }
 0x717   :  { %3063 = vmatpush1.msra.mxu1 %v8211_v11  ;;  %3152 = vmatpush1.msra.mxu0 %v8212_v17  ;;  %v8222_v11 = vld [vmem:[#allocation24_spill] sm:$0xff] }
 0x718   :  { %3064 = vmatprep.subr.mxu1 %v8213_v63  ;;  %3153 = vmatprep.subr.mxu0 %v8214_v26  ;;  %v8223_v17 = vld [vmem:[#allocation88_spill] sm:$0xff]  ;;  %v8224_v63 = vld [vmem:[#allocation90_spill] sm:$0xff]  ;;  %v8225_v26 = vld [vmem:[#allocation75_spill] sm:$0xff] }
 0x719   :  { %3065 = vmatpush1.msra.mxu1 %v8215_v31  ;;  %3154 = vmatpush1.msra.mxu0 %v8216_v2  ;;  %v8226_v31 = vld [vmem:[#allocation74_spill] sm:$0xff] }
 0x71a   :  { %3066 = vmatprep.subr.mxu1 %v8217_v59  ;;  %3155 = vmatprep.subr.mxu0 %v8218_v29  ;;  %v8227_v2 = vld [vmem:[#allocation78_spill] sm:$0xff]  ;;  %v8228_v59 = vld [vmem:[#allocation76_spill] sm:$0xff]  ;;  %v8229_v29 = vld [vmem:[#allocation77_spill] sm:$0xff] }
 0x71b   :  { %3067 = vmatpush1.msra.mxu1 %v8219_v39  ;;  %3156 = vmatpush1.msra.mxu0 %v8220_v45  ;;  %v8230_v39 = vld [vmem:[#allocation26_spill] sm:$0xff]  ;;  %v8231_v45 = vld [vmem:[#allocation33_spill] sm:$0xff] }
 0x71c   :  { %3068 = vmatprep.subr.mxu1 %v8221_v56  ;;  %3157 = vmatprep.subr.mxu0 %v8222_v11  ;;  %v8232_v56 = vld [vmem:[#allocation27_spill] sm:$0xff]  ;;  %v8233_v11 = vld [vmem:[#allocation34_spill] sm:$0xff] }
 0x71d   :  { %3069 = vmatpush1.msra.mxu1 %v8223_v17  ;;  %3158 = vmatpush1.msra.mxu0 %v8224_v63  ;;  %v8234_v17 = vld [vmem:[#allocation28_spill] sm:$0xff] }
 0x71e   :  { %3070 = vmatprep.subr.mxu1 %v8225_v26  ;;  %3159 = vmatprep.subr.mxu0 %v8226_v31  ;;  %v8235_v63 = vld [vmem:[#allocation36_spill] sm:$0xff]  ;;  %v8236_v31 = vld [vmem:[#allocation29_spill] sm:$0xff] }
 0x71f   :  { %3071 = vmatpush1.msra.mxu1 %v8227_v2  ;;  %3160 = vmatpush1.msra.mxu0 %v8228_v59  ;;  %v8237_v59 = vld [vmem:[#allocation59_spill] sm:$0xff] }
 0x720   :  { %3072 = vmatprep.subr.mxu1 %v8229_v29  ;;  %3161 = vmatprep.subr.mxu0 %v8230_v39  ;;  %v8238_v29 = vld [vmem:[#allocation60_spill] sm:$0xff]  ;;  %v8239_v2 = vld [vmem:[#allocation79_spill] sm:$0xff] }
 0x721   :  { %3073 = vmatpush1.msra.mxu1 %v8231_v45  ;;  %3162 = vmatpush1.msra.mxu0 %v8232_v56 }
 0x722   :  { %3074 = vmatprep.subr.mxu1 %v8233_v11  ;;  %3163 = vmatprep.subr.mxu0 %v8234_v17 }
 0x723   :  { %3075 = vmatpush1.msra.mxu1 %v8235_v63  ;;  %3108 = vmatprep.mubr.f32.mxu1 %v7932_v32 }
 0x724   :  { %3164 = vmatpush1.msra.mxu0 %v8236_v31  ;;  %3197 = vmatprep.mubr.f32.mxu0 %v7932_v32  ;;  %v8240_v31 = vld [vmem:[#allocation81_spill] sm:$0xff] }
 0x725   :  { %3334 = vmatprep.subr.mxu1 %v8237_v59  ;;  %3423 = vmatprep.subr.mxu0 %v8238_v29 }
 0x7be   :  { %v2820_v39 = vpop.f32.mrf.mxu1  ;;  %v2909_v45 = vpop.f32.mrf.mxu0 }
 0x7bf   :  { %v2932_v56 = vadd.f32 %v2820_v39, %v8239_v2  ;;  %v8241_v2 = vld [vmem:[#allocation83_spill] sm:$0xff] }
 0x7c0   :  { %v2822_v26 = vpop.f32.mrf.mxu1  ;;  %v2911_v11 = vpop.f32.mrf.mxu0 }
 0x7c1   :  { %v4313_v16 = vmul.f32 -1.442695, %v2932_v56  ;;  %v2933_v17 = vadd.f32 %v2822_v26, %v8161_v33 }
 0x7c2   :  { %v2826_v63 = vpop.f32.mrf.mxu1  ;;  %v2915_v21 = vpop.f32.mrf.mxu0 }
 0x7c3   :  { %4840 = vpow2.f32 %v4313_v16  ;;  %v4317_v46 = vmul.f32 -1.442695, %v2933_v17  ;;  %v2936_v58 = vadd.f32 %v2826_v63, %v8240_v31  ;;  %v8242_v17 = vld [vmem:[#allocation87_spill] sm:$0xff] }
 0x7c4   :  { %v2828_v41 = vpop.f32.mrf.mxu1  ;;  %v2917_v13 = vpop.f32.mrf.mxu0  ;;  %v2935_v33 = vadd.f32 %v2911_v11, %v8242_v17  ;;  %v2934_v11 = vadd.f32 %v2909_v45, %v8039_v27 }
 0x7c5   :  { %4842 = vpow2.f32 %v4317_v46  ;;  %v4314_v59 = vmul.f32 -1.442695, %v2936_v58  ;;  %v2937_v29 = vadd.f32 %v2828_v41, %v8032_v47 }
 0x7c6   :  { %v2832_v4 = vpop.f32.mrf.mxu1  ;;  %v2921_v56 = vpop.f32.mrf.mxu0 }
 0x7c7   :  { %4844 = vpow2.f32 %v4314_v59  ;;  %v4318_v39 = vmul.f32 -1.442695, %v2937_v29  ;;  %v2940_v19 = vadd.f32 %v2832_v4, %v8241_v2  ;;  %v4321_v4 = vmul.f32 -1.442695, %v2935_v33 }
 0x7c8   :  { %v2834_v3 = vpop.f32.mrf.mxu1  ;;  %v2923_v46 = vpop.f32.mrf.mxu0  ;;  %v2939_v2 = vadd.f32 %v2917_v13, %v8038_v43  ;;  %v2938_v33 = vadd.f32 %v2915_v21, %v8042_v25 }
 0x7c9   :  { %4846 = vpow2.f32 %v4318_v39  ;;  %v4315_v26 = vmul.f32 -1.442695, %v2940_v19  ;;  %v2941_v16 = vadd.f32 %v2834_v3, %v8034_v50 }
 0x7ca   :  { %v2838_v63 = vpop.f32.mrf.mxu1  ;;  %v2927_v19 = vpop.f32.mrf.mxu0 }
 0x7cb   :  { %4848 = vpow2.f32 %v4315_v26  ;;  %v4319_v31 = vmul.f32 -1.442695, %v2941_v16  ;;  %v2944_v58 = vadd.f32 %v2838_v63, %v8037_v23  ;;  %v4322_v16 = vmul.f32 -1.442695, %v2939_v2 }
 0x7cc   :  { %v2840_v41 = vpop.f32.mrf.mxu1  ;;  %v2943_v63 = vadd.f32 %v2923_v46, %v8040_v38  ;;  %v2942_v2 = vadd.f32 %v2921_v56, %v8043_v35 }
 0x7cd   :  { %4850 = vpow2.f32 %v4319_v31  ;;  %v4316_v59 = vmul.f32 -1.442695, %v2944_v58  ;;  %v2945_v29 = vadd.f32 %v2840_v41, %v6527_v7  ;;  %v2929_v58 = vpop.f32.mrf.mxu0 }
 0x7ce   :  { %v2947_v45 = vadd.f32 %v2929_v58, %v6536_v18 }
 0x7cf   :  { %4852 = vpow2.f32 %v4316_v59  ;;  %v4320_v39 = vmul.f32 -1.442695, %v2945_v29  ;;  %v4323_v29 = vmul.f32 -1.442695, %v2943_v63 }
 0x7d0   :  { %v4841_v3 = vpop.eup %4840 }
 0x7d1   :  { %v2960_v17 = vadd.f32 1.0, %v4841_v3  ;;  %4854 = vpow2.f32 %v4320_v39  ;;  %v4324_v3 = vmul.f32 -1.442695, %v2947_v45 }
 0x7d2   :  { %v4843_v26 = vpop.eup %4842  ;;  %4856 = vpow2.f32 %v4321_v4 }
 0x7d3   :  { %4858 = vrcp.f32 %v2960_v17  ;;  %v2984_v31 = vadd.f32 1.0, %v4843_v26  ;;  %v2946_v26 = vadd.f32 %v2927_v19, %v8044_v40 }
 0x7d4   :  { %v4845_v41 = vpop.eup %4844  ;;  %4860 = vtanh.f32 %v2934_v11 }
 0x7d5   :  { %4862 = vrcp.f32 %v2984_v31  ;;  %v2961_v13 = vadd.f32 1.0, %v4845_v41 }
 0x7d6   :  { %v4847_v59 = vpop.eup %4846  ;;  %4864 = vpow2.f32 %v4322_v16 }
 0x7d7   :  { %4866 = vrcp.f32 %v2961_v13  ;;  %v2985_v39 = vadd.f32 1.0, %v4847_v59 }
 0x7d8   :  { %v4849_v4 = vpop.eup %4848  ;;  %4868 = vtanh.f32 %v2938_v33 }
 0x7d9   :  { %4870 = vrcp.f32 %v2985_v39  ;;  %v2962_v17 = vadd.f32 1.0, %v4849_v4 }
 0x7da   :  { %v4851_v46 = vpop.eup %4850  ;;  %4872 = vpow2.f32 %v4323_v29 }
 0x7db   :  { %4874 = vrcp.f32 %v2962_v17  ;;  %v2986_v21 = vadd.f32 1.0, %v4851_v46 }
 0x7dc   :  { %v4853_v11 = vpop.eup %4852  ;;  %4876 = vtanh.f32 %v2942_v2 }
 0x7dd   :  { %4878 = vrcp.f32 %v2986_v21  ;;  %v2963_v16 = vadd.f32 1.0, %v4853_v11 }
 0x7de   :  { %v4855_v63 = vpop.eup %4854  ;;  %4880 = vpow2.f32 %v4324_v3 }
 0x7df   :  { %v4857_v31 = vpop.eup %4856  ;;  %4882 = vrcp.f32 %v2963_v16  ;;  %v2987_v58 = vadd.f32 1.0, %v4855_v63 }
 0x7e0   :  { %v4859_v41 = vpop.eup %4858  ;;  %4884 = vtanh.f32 %v2946_v26  ;;  %v3012_v13 = vadd.f32 1.0, %v4857_v31 }
 0x7e1   :  { %v4861_v56 = vpop.eup %4860  ;;  %4886 = vrcp.f32 %v2987_v58 }
 0x7e2   :  { %v4863_v33 = vpop.eup %4862  ;;  %v3028_v29 = vmul.f32 %v4861_v56, %v4859_v41  ;;  %4888 = vrcp.f32 %v3012_v13 }
 0x7e3   :  { %v4865_v59 = vpop.eup %4864  ;;  %v3024_v45 = vmul.f32 %v4863_v33, %v7211_v62 }
 0x7e4   :  { %v4867_v39 = vpop.eup %4866  ;;  %v3013_v17 = vadd.f32 1.0, %v4865_v59 }
 0x7e5   :  { %v4869_v4 = vpop.eup %4868  ;;  %v7315_v19 = vadd.f32 %v3028_v29, %v3024_v45 }
 0x7e6   :  { %v4871_v2 = vpop.eup %4870  ;;  %v3029_v3 = vmul.f32 %v4869_v4, %v4867_v39 }
 0x7e7   :  { %v4873_v46 = vpop.eup %4872  ;;  %4890 = vtanh.f32 %v7315_v19  ;;  %v3025_v21 = vmul.f32 %v4871_v2, %v7215_v5 }
 0x7e8   :  { %v4875_v11 = vpop.eup %4874  ;;  %4892 = vrcp.f32 %v3013_v17  ;;  %v3014_v62 = vadd.f32 1.0, %v4873_v46 }
 0x7e9   :  { %v4877_v26 = vpop.eup %4876  ;;  %v7319_v16 = vadd.f32 %v3029_v3, %v3025_v21 }
 0x7ea   :  { %v4879_v63 = vpop.eup %4878  ;;  %v3030_v58 = vmul.f32 %v4877_v26, %v4875_v11  ;;  %v8267_v26 = vld [vmem:[#allocation74_spill] sm:$0xff] }
 0x7eb   :  { %v4881_v31 = vpop.eup %4880  ;;  %v3026_v41 = vmul.f32 %v4879_v63, %v7219_v42  ;;  %4894 = vtanh.f32 %v7319_v16  ;;  %v8268_v63 = vld [vmem:[#allocation78_spill] sm:$0xff] }
 0x7ec   :  { %v4883_v56 = vpop.eup %4882  ;;  %4896 = vrcp.f32 %v3014_v62  ;;  %v3015_v5 = vadd.f32 1.0, %v4881_v31  ;;  %v8269_v62 = vld [vmem:[#allocation76_spill] sm:$0xff]  ;;  %v8270_v31 = vld [vmem:[#allocation77_spill] sm:$0xff] }
 0x7ed   :  { %v4885_v33 = vpop.eup %4884  ;;  %v7323_v13 = vadd.f32 %v3030_v58, %v3026_v41  ;;  %v8271_v58 = vld [vmem:[#allocation26_spill] sm:$0xff]  ;;  %v8272_v41 = vld [vmem:[#allocation33_spill] sm:$0xff] }
 0x7ee   :  { %v4887_v59 = vpop.eup %4886  ;;  %v3031_v29 = vmul.f32 %v4885_v33, %v4883_v56  ;;  %v8273_v56 = vld [vmem:[#allocation27_spill] sm:$0xff]  ;;  %v8274_v33 = vld [vmem:[#allocation34_spill] sm:$0xff] }
 0x7ef   :  { %v3027_v45 = vmul.f32 %v4887_v59, %v7223_v44  ;;  %4898 = vtanh.f32 %v7323_v13  ;;  %v4889_v4 = vpop.eup %4888  ;;  %v8275_v59 = vld [vmem:[#allocation28_spill] sm:$0xff] }
 0x7f0   :  { %4900 = vrcp.f32 %v3015_v5  ;;  %v8276_v5 = vld [vmem:[#allocation36_spill] sm:$0xff] }
 0x7f1   :  { %v7327_v39 = vadd.f32 %v3031_v29, %v3027_v45  ;;  %v8277_v29 = vld [vmem:[#allocation29_spill] sm:$0xff]  ;;  %v5264_v45 = vld [vmem:[#allocation10 + $0x1e8] sm:$0xff] }
 0x7f3   :  { %4902 = vtanh.f32 %v7327_v39 }
 0x7f4   :  { %v4891_v42 = vpop.eup %4890 }
 0x7f5   :  { %v3040_v2 = vmul.f32 %v4891_v42, %v4889_v4  ;;  %v4893_v17 = vpop.eup %4892  ;;  %v5265_v4 = vld [vmem:[#allocation10 + $0x1f8] sm:$0xff] }
 0x7f7   :  { %3109 = vmatmul.mubr.f32.vlgmr.msra.gmra.mxu1 %v3040_v2  ;;  %3198 = vmatmul.mubr.f32.vlgmr.msra.gmra.mxu0 %v3040_v2 }
 0x7f8   :  { %v4895_v46 = vpop.eup %4894  ;;  %3114 = vmatprep.mubr.f32.mxu1 %v7932_v32  ;;  %3203 = vmatprep.mubr.f32.mxu0 %v7932_v32 }
 0x7f9   :  { %v3041_v3 = vmul.f32 %v4895_v46, %v4893_v17  ;;  %3335 = vmatpush1.msra.mxu1 %v7000_v8  ;;  %3424 = vmatpush1.msra.mxu0 %v7003_v34  ;;  %v4897_v44 = vpop.eup %4896  ;;  %v8278_v17 = vld [vmem:[#allocation79_spill] sm:$0xff] }
 0x7fa   :  { %3336 = vmatprep.subr.mxu1 %v7006_v52  ;;  %3425 = vmatprep.subr.mxu0 %v7009_v49  ;;  %v8243_v49 = vld [vmem:[#allocation62_spill] sm:$0xff] }
 0x7fb   :  { %3115 = vmatmul.mubr.f32.gmra.mxu1 %v3041_v3  ;;  %3204 = vmatmul.mubr.f32.gmra.mxu0 %v3041_v3 }
 0x7fc   :  { %v4899_v21 = vpop.eup %4898  ;;  %3120 = vmatprep.mubr.f32.mxu1 %v7932_v32  ;;  %3209 = vmatprep.mubr.f32.mxu0 %v7932_v32 }
 0x7fd   :  { %v3042_v11 = vmul.f32 %v4899_v21, %v4897_v44  ;;  %3337 = vmatpush1.msra.mxu1 %v7014_v12  ;;  %3426 = vmatpush1.msra.mxu0 %v7017_v53  ;;  %v4901_v8 = vpop.eup %4900  ;;  %v8244_v12 = vld [vmem:[#allocation63_spill] sm:$0xff]  ;;  %v8245_v53 = vld [vmem:[#allocation64_spill] sm:$0xff] }
 0x7fe   :  { %3338 = vmatprep.subr.mxu1 %v7020_v57  ;;  %3427 = vmatprep.subr.mxu0 %v7023_v61  ;;  %v8246_v57 = vld [vmem:[#allocation65_spill] sm:$0xff]  ;;  %v8247_v61 = vld [vmem:[#allocation66_spill] sm:$0xff] }
 0x7ff   :  { %3121 = vmatmul.mubr.f32.gmra.mxu1 %v3042_v11  ;;  %3210 = vmatmul.mubr.f32.gmra.mxu0 %v3042_v11  ;;  %v8279_v11 = vld [vmem:[#allocation80_spill] sm:$0xff] }
 0x800   :  { %v4903_v34 = vpop.eup %4902  ;;  %3126 = vmatprep.mubr.f32.mxu1 %v7932_v32  ;;  %3215 = vmatprep.mubr.f32.mxu0 %v7932_v32 }
 0x801   :  { %v3043_v52 = vmul.f32 %v4903_v34, %v4901_v8  ;;  %3339 = vmatpush1.msra.mxu1 %v7028_v54  ;;  %3428 = vmatpush1.msra.mxu0 %v7031_v30  ;;  %v8248_v54 = vld [vmem:[#allocation67_spill] sm:$0xff]  ;;  %v8249_v30 = vld [vmem:[#allocation68_spill] sm:$0xff] }
 0x802   :  { %3340 = vmatprep.subr.mxu1 %v7034_v24  ;;  %3429 = vmatprep.subr.mxu0 %v7037_v37  ;;  %v8250_v24 = vld [vmem:[#allocation69_spill] sm:$0xff]  ;;  %v8251_v37 = vld [vmem:[#allocation70_spill] sm:$0xff] }
 0x803   :  { %3127 = vmatmul.mubr.f32.gmra.mxu1 %v3043_v52  ;;  %3216 = vmatmul.mubr.f32.gmra.mxu0 %v3043_v52 }
 0x804   :  { %3341 = vmatpush1.msra.mxu1 %v7040_v0  ;;  %3430 = vmatpush1.msra.mxu0 %v7043_v28  ;;  %v8252_v0 = vld [vmem:[#allocation71_spill] sm:$0xff]  ;;  %v8253_v28 = vld [vmem:[#allocation72_spill] sm:$0xff] }
 0x805   :  { %3342 = vmatprep.subr.mxu1 %v7046_v15  ;;  %3431 = vmatprep.subr.mxu0 %v7049_v6  ;;  %v8254_v15 = vld [vmem:[#allocation73_spill] sm:$0xff]  ;;  %v8255_v6 = vld [vmem:[#allocation82_spill] sm:$0xff] }
 0x806   :  { %3343 = vmatpush1.msra.mxu1 %v7052_v1  ;;  %3432 = vmatpush1.msra.mxu0 %v7055_v14  ;;  %v8256_v1 = vld [vmem:[#allocation84_spill] sm:$0xff]  ;;  %v8257_v14 = vld [vmem:[#allocation91_spill] sm:$0xff] }
 0x807   :  { %3344 = vmatprep.subr.mxu1 %v7058_v51  ;;  %3433 = vmatprep.subr.mxu0 %v7061_v20  ;;  %v8258_v51 = vld [vmem:[#allocation85_spill] sm:$0xff] }
 0x808   :  { %3345 = vmatpush1.msra.mxu1 %v7064_v10  ;;  %3434 = vmatpush1.msra.mxu0 %v7067_v36  ;;  %v8259_v20 = vld [vmem:[#allocation25_spill] sm:$0xff]  ;;  %v8260_v10 = vld [vmem:[#allocation86_spill] sm:$0xff] }
 0x809   :  { %3346 = vmatprep.subr.mxu1 %v7070_v48  ;;  %3435 = vmatprep.subr.mxu0 %v7073_v22  ;;  %v8261_v36 = vld [vmem:[#allocation89_spill] sm:$0xff]  ;;  %v8262_v48 = vld [vmem:[#allocation92_spill] sm:$0xff] }
 0x80a   :  { %3347 = vmatpush1.msra.mxu1 %v7076_v60  ;;  %3436 = vmatpush1.msra.mxu0 %v7079_v9  ;;  %v8263_v22 = vld [vmem:[#allocation24_spill] sm:$0xff]  ;;  %v8265_v9 = vld [vmem:[#allocation90_spill] sm:$0xff] }
 0x80b   :  { %3348 = vmatprep.subr.mxu1 %v8201_v55  ;;  %3437 = vmatprep.subr.mxu0 %v8243_v49  ;;  %v8264_v60 = vld [vmem:[#allocation88_spill] sm:$0xff]  ;;  %v8266_v55 = vld [vmem:[#allocation75_spill] sm:$0xff] }
 0x80c   :  { %3349 = vmatpush1.msra.mxu1 %v8244_v12  ;;  %3438 = vmatpush1.msra.mxu0 %v8245_v53  ;;  %v8280_v12 = vld [vmem:[#allocation81_spill] sm:$0xff] }
 0x80d   :  { %3350 = vmatprep.subr.mxu1 %v8246_v57  ;;  %3439 = vmatprep.subr.mxu0 %v8247_v61 }
 0x80e   :  { %3351 = vmatpush1.msra.mxu1 %v8248_v54  ;;  %3440 = vmatpush1.msra.mxu0 %v8249_v30 }
 0x80f   :  { %3352 = vmatprep.subr.mxu1 %v8250_v24  ;;  %3441 = vmatprep.subr.mxu0 %v8251_v37 }
 0x810   :  { %3353 = vmatpush1.msra.mxu1 %v8252_v0  ;;  %3442 = vmatpush1.msra.mxu0 %v8253_v28  ;;  %v8281_v0 = vld [vmem:[#allocation83_spill] sm:$0xff] }
 0x811   :  { %3354 = vmatprep.subr.mxu1 %v8254_v15  ;;  %3443 = vmatprep.subr.mxu0 %v8255_v6 }
 0x812   :  { %3355 = vmatpush1.msra.mxu1 %v8256_v1  ;;  %3444 = vmatpush1.msra.mxu0 %v8257_v14 }
 0x813   :  { %3356 = vmatprep.subr.mxu1 %v8258_v51  ;;  %3445 = vmatprep.subr.mxu0 %v8259_v20  ;;  %v8282_v51 = vld [vmem:[#allocation87_spill] sm:$0xff] }
 0x814   :  { %3357 = vmatpush1.msra.mxu1 %v8260_v10  ;;  %3446 = vmatpush1.msra.mxu0 %v8261_v36 }
 0x815   :  { %3358 = vmatprep.subr.mxu1 %v8262_v48  ;;  %3447 = vmatprep.subr.mxu0 %v8263_v22 }
 0x816   :  { %3359 = vmatpush1.msra.mxu1 %v8264_v60  ;;  %3448 = vmatpush1.msra.mxu0 %v8265_v9 }
 0x817   :  { %3360 = vmatprep.subr.mxu1 %v8266_v55  ;;  %3449 = vmatprep.subr.mxu0 %v8267_v26 }
 0x818   :  { %3361 = vmatpush1.msra.mxu1 %v8268_v63  ;;  %3450 = vmatpush1.msra.mxu0 %v8269_v62 }
 0x819   :  { %3362 = vmatprep.subr.mxu1 %v8270_v31  ;;  %3451 = vmatprep.subr.mxu0 %v8271_v58 }
 0x81a   :  { %3363 = vmatpush1.msra.mxu1 %v8272_v41  ;;  %3452 = vmatpush1.msra.mxu0 %v8273_v56 }
 0x81b   :  { %3364 = vmatprep.subr.mxu1 %v8274_v33  ;;  %3453 = vmatprep.subr.mxu0 %v8275_v59 }
 0x81c   :  { %3365 = vmatpush1.msra.mxu1 %v8276_v5  ;;  %3398 = vmatprep.mubr.f32.mxu1 %v7932_v32 }
 0x81d   :  { %3454 = vmatpush1.msra.mxu0 %v8277_v29  ;;  %3487 = vmatprep.mubr.f32.mxu0 %v7932_v32 }
 0x81e   :  { %3624 = vmatprep.subr.mxu1 %v5264_v45  ;;  %3713 = vmatprep.subr.mxu0 %v5265_v4 }
 0x8b7   :  { %v3110_v42 = vpop.f32.mrf.mxu1  ;;  %v3199_v2 = vpop.f32.mrf.mxu0 }
 0x8b8   :  { %v3222_v46 = vadd.f32 %v3110_v42, %v8278_v17  ;;  %v3224_v41 = vadd.f32 %v3199_v2, %v8039_v27 }
 0x8b9   :  { %v3112_v3 = vpop.f32.mrf.mxu1  ;;  %v3201_v44 = vpop.f32.mrf.mxu0 }
 0x8ba   :  { %v4325_v21 = vmul.f32 -1.442695, %v3222_v46  ;;  %v3223_v8 = vadd.f32 %v3112_v3, %v8279_v11  ;;  %v3225_v20 = vadd.f32 %v3201_v44, %v8282_v51 }
 0x8bb   :  { %v3116_v34 = vpop.f32.mrf.mxu1  ;;  %v3205_v52 = vpop.f32.mrf.mxu0 }
 0x8bc   :  { %4904 = vpow2.f32 %v4325_v21  ;;  %v4329_v49 = vmul.f32 -1.442695, %v3223_v8  ;;  %v3226_v53 = vadd.f32 %v3116_v34, %v8280_v12  ;;  %v4333_v26 = vmul.f32 -1.442695, %v3225_v20 }
 0x8bd   :  { %v3118_v57 = vpop.f32.mrf.mxu1  ;;  %v3207_v61 = vpop.f32.mrf.mxu0  ;;  %v3228_v42 = vadd.f32 %v3205_v52, %v8042_v25 }
 0x8be   :  { %4906 = vpow2.f32 %v4329_v49  ;;  %v4326_v54 = vmul.f32 -1.442695, %v3226_v53  ;;  %v3227_v30 = vadd.f32 %v3118_v57, %v8032_v47  ;;  %v3229_v63 = vadd.f32 %v3207_v61, %v8038_v43 }
 0x8bf   :  { %v3122_v24 = vpop.f32.mrf.mxu1  ;;  %v3211_v15 = vpop.f32.mrf.mxu0 }
 0x8c0   :  { %4908 = vpow2.f32 %v4326_v54  ;;  %v4330_v37 = vmul.f32 -1.442695, %v3227_v30  ;;  %v3230_v28 = vadd.f32 %v3122_v24, %v8281_v0  ;;  %v4334_v59 = vmul.f32 -1.442695, %v3229_v63 }
 0x8c1   :  { %v3124_v6 = vpop.f32.mrf.mxu1  ;;  %v3213_v48 = vpop.f32.mrf.mxu0  ;;  %v3232_v34 = vadd.f32 %v3211_v15, %v8043_v35 }
 0x8c2   :  { %4910 = vpow2.f32 %v4330_v37  ;;  %v4327_v1 = vmul.f32 -1.442695, %v3230_v28  ;;  %v3231_v14 = vadd.f32 %v3124_v6, %v8034_v50  ;;  %v3233_v5 = vadd.f32 %v3213_v48, %v8040_v38 }
 0x8c3   :  { %v3128_v10 = vpop.f32.mrf.mxu1  ;;  %v3217_v62 = vpop.f32.mrf.mxu0 }
 0x8c4   :  { %4912 = vpow2.f32 %v4327_v1  ;;  %v4331_v36 = vmul.f32 -1.442695, %v3231_v14  ;;  %v3234_v22 = vadd.f32 %v3128_v10, %v8037_v23  ;;  %v4335_v44 = vmul.f32 -1.442695, %v3233_v5 }
 0x8c5   :  { %v3130_v60 = vpop.f32.mrf.mxu1  ;;  %v3219_v45 = vpop.f32.mrf.mxu0  ;;  %v3236_v54 = vadd.f32 %v3217_v62, %v8044_v40 }
 0x8c6   :  { %4914 = vpow2.f32 %v4331_v36  ;;  %v4328_v9 = vmul.f32 -1.442695, %v3234_v22  ;;  %v3235_v55 = vadd.f32 %v3130_v60, %v6527_v7  ;;  %v3237_v2 = vadd.f32 %v3219_v45, %v6536_v18 }
 0x8c8   :  { %4916 = vpow2.f32 %v4328_v9  ;;  %v4332_v31 = vmul.f32 -1.442695, %v3235_v55  ;;  %v4336_v57 = vmul.f32 -1.442695, %v3237_v2 }
 0x8c9   :  { %v4905_v58 = vpop.eup %4904 }
 0x8ca   :  { %v3250_v56 = vadd.f32 1.0, %v4905_v58  ;;  %4918 = vpow2.f32 %v4332_v31 }
 0x8cb   :  { %v4907_v33 = vpop.eup %4906  ;;  %4920 = vpow2.f32 %v4333_v26 }
 0x8cc   :  { %4922 = vrcp.f32 %v3250_v56  ;;  %v3274_v29 = vadd.f32 1.0, %v4907_v33 }
 0x8cd   :  { %v4909_v4 = vpop.eup %4908  ;;  %4924 = vtanh.f32 %v3224_v41 }
 0x8ce   :  { %4926 = vrcp.f32 %v3274_v29  ;;  %v3251_v46 = vadd.f32 1.0, %v4909_v4 }
 0x8cf   :  { %v4911_v3 = vpop.eup %4910  ;;  %4928 = vpow2.f32 %v4334_v59 }
 0x8d0   :  { %4930 = vrcp.f32 %v3251_v46  ;;  %v3275_v21 = vadd.f32 1.0, %v4911_v3 }
 0x8d1   :  { %v4913_v8 = vpop.eup %4912  ;;  %4932 = vtanh.f32 %v3228_v42 }
 0x8d2   :  { %4934 = vrcp.f32 %v3275_v21  ;;  %v3252_v49 = vadd.f32 1.0, %v4913_v8 }
 0x8d3   :  { %v4915_v53 = vpop.eup %4914  ;;  %4936 = vpow2.f32 %v4335_v44 }
 0x8d4   :  { %4938 = vrcp.f32 %v3252_v49  ;;  %v3276_v52 = vadd.f32 1.0, %v4915_v53  ;;  %v5267_v53 = vld [vmem:[#allocation10 + $0x1f0] sm:$0xff] }
 0x8d5   :  { %v4917_v61 = vpop.eup %4916  ;;  %4940 = vtanh.f32 %v3232_v34 }
 0x8d6   :  { %4942 = vrcp.f32 %v3276_v52  ;;  %v3253_v30 = vadd.f32 1.0, %v4917_v61  ;;  %v5269_v52 = vld [vmem:[#allocation10 + $0x1d8] sm:$0xff] }
 0x8d7   :  { %v4919_v24 = vpop.eup %4918  ;;  %4944 = vpow2.f32 %v4336_v57  ;;  %v5268_v57 = vld [vmem:[#allocation10 + $0x1c8] sm:$0xff] }
 0x8d8   :  { %v4921_v37 = vpop.eup %4920  ;;  %4946 = vrcp.f32 %v3253_v30  ;;  %v3277_v28 = vadd.f32 1.0, %v4919_v24  ;;  %v5270_v24 = vld [vmem:[#allocation10 + $0x1c0] sm:$0xff] }
 0x8d9   :  { %v4923_v6 = vpop.eup %4922  ;;  %4948 = vtanh.f32 %v3236_v54  ;;  %v3302_v14 = vadd.f32 1.0, %v4921_v37  ;;  %v5271_v37 = vld [vmem:[#allocation10 + $0x1d0] sm:$0xff] }
 0x8da   :  { %v4925_v15 = vpop.eup %4924  ;;  %4950 = vrcp.f32 %v3277_v28  ;;  %v5272_v28 = vld [vmem:[#allocation10 + $0x1a8] sm:$0xff] }
 0x8db   :  { %v4927_v1 = vpop.eup %4926  ;;  %v3318_v10 = vmul.f32 %v4925_v15, %v4923_v6  ;;  %4952 = vrcp.f32 %v3302_v14  ;;  %v5273_v6 = vld [vmem:[#allocation10 + $0x1b8] sm:$0xff] }
 0x8dc   :  { %v4929_v20 = vpop.eup %4928  ;;  %v3314_v36 = vmul.f32 %v4927_v1, %v7315_v19 }
 0x8dd   :  { %v4931_v48 = vpop.eup %4930  ;;  %v3303_v55 = vadd.f32 1.0, %v4929_v20  ;;  %v5274_v20 = vld [vmem:[#allocation10 + $0x1a0] sm:$0xff] }
 0x8de   :  { %v4933_v22 = vpop.eup %4932  ;;  %v7417_v60 = vadd.f32 %v3318_v10, %v3314_v36  ;;  %v5275_v10 = vld [vmem:[#allocation10 + $0x1b0] sm:$0xff]  ;;  %v5276_v36 = vld [vmem:[#allocation10 + $0x188] sm:$0xff] }
 0x8df   :  { %v4935_v9 = vpop.eup %4934  ;;  %v3319_v63 = vmul.f32 %v4933_v22, %v4931_v48  ;;  %v5277_v48 = vld [vmem:[#allocation10 + $0x198] sm:$0xff]  ;;  %v5278_v22 = vld [vmem:[#allocation10 + $0x180] sm:$0xff] }
 0x8e0   :  { %v4937_v26 = vpop.eup %4936  ;;  %4954 = vtanh.f32 %v7417_v60  ;;  %v3315_v62 = vmul.f32 %v4935_v9, %v7319_v16  ;;  %v5279_v9 = vld [vmem:[#allocation10 + $0x190] sm:$0xff] }
 0x8e1   :  { %v4939_v31 = vpop.eup %4938  ;;  %4956 = vrcp.f32 %v3303_v55  ;;  %v3304_v19 = vadd.f32 1.0, %v4937_v26  ;;  %v5280_v55 = vld [vmem:[#allocation10 + $0x168] sm:$0xff]  ;;  %v5281_v26 = vld [vmem:[#allocation10 + $0x178] sm:$0xff] }
 0x8e2   :  { %v4941_v58 = vpop.eup %4940  ;;  %v7421_v41 = vadd.f32 %v3319_v63, %v3315_v62  ;;  %v5282_v63 = vld [vmem:[#allocation10 + $0x160] sm:$0xff]  ;;  %v5283_v62 = vld [vmem:[#allocation10 + $0x170] sm:$0xff] }
 0x8e3   :  { %v4943_v56 = vpop.eup %4942  ;;  %v3320_v59 = vmul.f32 %v4941_v58, %v4939_v31  ;;  %v5284_v31 = vld [vmem:[#allocation10 + $0x148] sm:$0xff]  ;;  %v5285_v58 = vld [vmem:[#allocation10 + $0x158] sm:$0xff] }
 0x8e4   :  { %v4945_v33 = vpop.eup %4944  ;;  %v3316_v5 = vmul.f32 %v4943_v56, %v7323_v13  ;;  %4958 = vtanh.f32 %v7421_v41  ;;  %v5286_v56 = vld [vmem:[#allocation10 + $0x140] sm:$0xff] }
 0x8e5   :  { %v4947_v29 = vpop.eup %4946  ;;  %4960 = vrcp.f32 %v3304_v19  ;;  %v3305_v16 = vadd.f32 1.0, %v4945_v33  ;;  %v5287_v19 = vld [vmem:[#allocation10 + $0x150] sm:$0xff]  ;;  %v5288_v33 = vld [vmem:[#allocation10 + $0x128] sm:$0xff] }
 0x8e6   :  { %v4949_v45 = vpop.eup %4948  ;;  %v7425_v4 = vadd.f32 %v3320_v59, %v3316_v5  ;;  %v5289_v59 = vld [vmem:[#allocation10 + $0x138] sm:$0xff]  ;;  %v5290_v5 = vld [vmem:[#allocation10 + $0x120] sm:$0xff] }
 0x8e7   :  { %v4951_v42 = vpop.eup %4950  ;;  %v3321_v46 = vmul.f32 %v4949_v45, %v4947_v29  ;;  %v5291_v29 = vld [vmem:[#allocation10 + $0x130] sm:$0xff]  ;;  %v5292_v45 = vld [vmem:[#allocation10 + $0x108] sm:$0xff] }
 0x8e8   :  { %v3317_v3 = vmul.f32 %v4951_v42, %v7327_v39  ;;  %4962 = vtanh.f32 %v7425_v4  ;;  %v4953_v2 = vpop.eup %4952  ;;  %v5266_v39 = vld [vmem:[#allocation10 + $0x1e0] sm:$0xff]  ;;  %v5293_v42 = vld [vmem:[#allocation10 + $0x118] sm:$0xff] }
 0x8e9   :  { %4964 = vrcp.f32 %v3305_v16  ;;  %v5294_v16 = vld [vmem:[#allocation10 + $0x100] sm:$0xff] }
 0x8ea   :  { %v7429_v44 = vadd.f32 %v3321_v46, %v3317_v3  ;;  %v5295_v46 = vld [vmem:[#allocation10 + $0x110] sm:$0xff]  ;;  %v5296_v3 = vld [vmem:[#allocation10 + $0xe8] sm:$0xff] }
 0x8ec   :  { %4966 = vtanh.f32 %v7429_v44 }
 0x8ed   :  { %v4955_v13 = vpop.eup %4954 }
 0x8ee   :  { %v3330_v21 = vmul.f32 %v4955_v13, %v4953_v2  ;;  %v4957_v8 = vpop.eup %4956  ;;  %v5297_v2 = vld [vmem:[#allocation10 + $0xf8] sm:$0xff]  ;;  %v5298_v13 = vld [vmem:[#allocation10 + $0xe0] sm:$0xff] }
 0x8f0   :  { %3399 = vmatmul.mubr.f32.vlgmr.msra.gmra.mxu1 %v3330_v21  ;;  %3488 = vmatmul.mubr.f32.vlgmr.msra.gmra.mxu0 %v3330_v21  ;;  %v5299_v21 = vld [vmem:[#allocation10 + $0xf0] sm:$0xff] }
 0x8f1   :  { %v4959_v34 = vpop.eup %4958  ;;  %3404 = vmatprep.mubr.f32.mxu1 %v7932_v32  ;;  %3493 = vmatprep.mubr.f32.mxu0 %v7932_v32 }
 0x8f2   :  { %v3331_v49 = vmul.f32 %v4959_v34, %v4957_v8  ;;  %3625 = vmatpush1.msra.mxu1 %v5266_v39  ;;  %3714 = vmatpush1.msra.mxu0 %v5267_v53  ;;  %v4961_v61 = vpop.eup %4960  ;;  %v5300_v8 = vld [vmem:[#allocation10 + $0xc8] sm:$0xff]  ;;  %v5301_v34 = vld [vmem:[#allocation10 + $0xd8] sm:$0xff]  ;;  %v5303_v39 = vld [vmem:[#allocation10 + $0xd0] sm:$0xff] }
 0x8f3   :  { %3626 = vmatprep.subr.mxu1 %v5268_v57  ;;  %3715 = vmatprep.subr.mxu0 %v5269_v52  ;;  %v5304_v53 = vld [vmem:[#allocation10 + $0xa8] sm:$0xff]  ;;  %v5305_v57 = vld [vmem:[#allocation10 + $0xb8] sm:$0xff]  ;;  %v5306_v52 = vld [vmem:[#allocation10 + $0xa0] sm:$0xff] }
 0x8f4   :  { %3405 = vmatmul.mubr.f32.gmra.mxu1 %v3331_v49  ;;  %3494 = vmatmul.mubr.f32.gmra.mxu0 %v3331_v49  ;;  %v5302_v49 = vld [vmem:[#allocation10 + $0xc0] sm:$0xff] }
 0x8f5   :  { %v4963_v54 = vpop.eup %4962  ;;  %3410 = vmatprep.mubr.f32.mxu1 %v7932_v32  ;;  %3499 = vmatprep.mubr.f32.mxu0 %v7932_v32 }
 0x8f6   :  { %v3332_v30 = vmul.f32 %v4963_v54, %v4961_v61  ;;  %3627 = vmatpush1.msra.mxu1 %v5270_v24  ;;  %3716 = vmatpush1.msra.mxu0 %v5271_v37  ;;  %v4965_v15 = vpop.eup %4964  ;;  %v5307_v61 = vld [vmem:[#allocation10 + $0xb0] sm:$0xff]  ;;  %v5308_v54 = vld [vmem:[#allocation10 + $0x88] sm:$0xff]  ;;  %v5310_v24 = vld [vmem:[#allocation10 + $0x80] sm:$0xff] }
 0x8f7   :  { %3628 = vmatprep.subr.mxu1 %v5272_v28  ;;  %3717 = vmatprep.subr.mxu0 %v5273_v6  ;;  %v5311_v37 = vld [vmem:[#allocation10 + $0x90] sm:$0xff]  ;;  %v5312_v28 = vld [vmem:[#allocation10 + $0x68] sm:$0xff]  ;;  %v5313_v6 = vld [vmem:[#allocation10 + $0x78] sm:$0xff] }
 0x8f8   :  { %3411 = vmatmul.mubr.f32.gmra.mxu1 %v3332_v30  ;;  %3500 = vmatmul.mubr.f32.gmra.mxu0 %v3332_v30  ;;  %v5309_v30 = vld [vmem:[#allocation10 + $0x98] sm:$0xff] }
 0x8f9   :  { %v4967_v1 = vpop.eup %4966  ;;  %3416 = vmatprep.mubr.f32.mxu1 %v7932_v32  ;;  %3505 = vmatprep.mubr.f32.mxu0 %v7932_v32 }
 0x8fa   :  { %v3333_v14 = vmul.f32 %v4967_v1, %v4965_v15  ;;  %3629 = vmatpush1.msra.mxu1 %v5274_v20  ;;  %3718 = vmatpush1.msra.mxu0 %v5275_v10  ;;  %v5314_v15 = vld [vmem:[#allocation10 + $0x60] sm:$0xff]  ;;  %v5315_v1 = vld [vmem:[#allocation10 + $0x70] sm:$0xff]  ;;  %v5317_v20 = vld [vmem:[#allocation10 + $0x58] sm:$0xff] }
 0x8fb   :  { %3630 = vmatprep.subr.mxu1 %v5276_v36  ;;  %3719 = vmatprep.subr.mxu0 %v5277_v48  ;;  %v5318_v10 = vld [vmem:[#allocation10 + $0x40] sm:$0xff]  ;;  %v5319_v36 = vld [vmem:[#allocation10 + $0x50] sm:$0xff]  ;;  %v5320_v48 = vld [vmem:[#allocation10 + $0x28] sm:$0xff] }
 0x8fc   :  { %3417 = vmatmul.mubr.f32.gmra.mxu1 %v3333_v14  ;;  %3506 = vmatmul.mubr.f32.gmra.mxu0 %v3333_v14  ;;  %v5316_v14 = vld [vmem:[#allocation10 + $0x48] sm:$0xff] }
 0x8fd   :  { %3631 = vmatpush1.msra.mxu1 %v5278_v22  ;;  %3720 = vmatpush1.msra.mxu0 %v5279_v9  ;;  %v5321_v22 = vld [vmem:[#allocation10 + $0x38] sm:$0xff]  ;;  %v5322_v9 = vld [vmem:[#allocation10 + $0x20] sm:$0xff] }
 0x8fe   :  { %3632 = vmatprep.subr.mxu1 %v5280_v55  ;;  %3721 = vmatprep.subr.mxu0 %v5281_v26  ;;  %v5323_v55 = vld [vmem:[#allocation10 + $0x30] sm:$0xff]  ;;  %v5324_v26 = vld [vmem:[#allocation10 + $0x8] sm:$0xff] }
 0x8ff   :  { %3633 = vmatpush1.msra.mxu1 %v5282_v63  ;;  %3722 = vmatpush1.msra.mxu0 %v5283_v62  ;;  %v5325_v63 = vld [vmem:[#allocation10 + $0x18] sm:$0xff]  ;;  %v5326_v62 = vld [vmem:[#allocation10] sm:$0xff] }
 0x900   :  { %3634 = vmatprep.subr.mxu1 %v5284_v31  ;;  %3723 = vmatprep.subr.mxu0 %v5285_v58  ;;  %v5327_v31 = vld [vmem:[#allocation10 + $0x10] sm:$0xff] }
 0x901   :  { %3635 = vmatpush1.msra.mxu1 %v5286_v56  ;;  %3724 = vmatpush1.msra.mxu0 %v5287_v19 }
 0x902   :  { %3636 = vmatprep.subr.mxu1 %v5288_v33  ;;  %3725 = vmatprep.subr.mxu0 %v5289_v59 }
 0x903   :  { %3637 = vmatpush1.msra.mxu1 %v5290_v5  ;;  %3726 = vmatpush1.msra.mxu0 %v5291_v29 }
 0x904   :  { %3638 = vmatprep.subr.mxu1 %v5292_v45  ;;  %3727 = vmatprep.subr.mxu0 %v5293_v42 }
 0x905   :  { %3639 = vmatpush1.msra.mxu1 %v5294_v16  ;;  %3728 = vmatpush1.msra.mxu0 %v5295_v46 }
 0x906   :  { %3640 = vmatprep.subr.mxu1 %v5296_v3  ;;  %3729 = vmatprep.subr.mxu0 %v5297_v2 }
 0x907   :  { %3641 = vmatpush1.msra.mxu1 %v5298_v13  ;;  %3730 = vmatpush1.msra.mxu0 %v5299_v21 }
 0x908   :  { %3642 = vmatprep.subr.mxu1 %v5300_v8  ;;  %3731 = vmatprep.subr.mxu0 %v5301_v34 }
 0x909   :  { %3643 = vmatpush1.msra.mxu1 %v5302_v49  ;;  %3732 = vmatpush1.msra.mxu0 %v5303_v39 }
 0x90a   :  { %3644 = vmatprep.subr.mxu1 %v5304_v53  ;;  %3733 = vmatprep.subr.mxu0 %v5305_v57 }
 0x90b   :  { %3645 = vmatpush1.msra.mxu1 %v5306_v52  ;;  %3734 = vmatpush1.msra.mxu0 %v5307_v61 }
 0x90c   :  { %3646 = vmatprep.subr.mxu1 %v5308_v54  ;;  %3735 = vmatprep.subr.mxu0 %v5309_v30 }
 0x90d   :  { %3647 = vmatpush1.msra.mxu1 %v5310_v24  ;;  %3736 = vmatpush1.msra.mxu0 %v5311_v37 }
 0x90e   :  { %3648 = vmatprep.subr.mxu1 %v5312_v28  ;;  %3737 = vmatprep.subr.mxu0 %v5313_v6 }
 0x90f   :  { %3649 = vmatpush1.msra.mxu1 %v5314_v15  ;;  %3738 = vmatpush1.msra.mxu0 %v5315_v1 }
 0x910   :  { %3650 = vmatprep.subr.mxu1 %v5316_v14  ;;  %3739 = vmatprep.subr.mxu0 %v5317_v20 }
 0x911   :  { %3651 = vmatpush1.msra.mxu1 %v5318_v10  ;;  %3740 = vmatpush1.msra.mxu0 %v5319_v36 }
 0x912   :  { %3652 = vmatprep.subr.mxu1 %v5320_v48  ;;  %3741 = vmatprep.subr.mxu0 %v5321_v22 }
 0x913   :  { %3653 = vmatpush1.msra.mxu1 %v5322_v9  ;;  %3742 = vmatpush1.msra.mxu0 %v5323_v55 }
 0x914   :  { %3654 = vmatprep.subr.mxu1 %v5324_v26  ;;  %3743 = vmatprep.subr.mxu0 %v5325_v63 }
 0x915   :  { %3655 = vmatpush1.msra.mxu1 %v5326_v62  ;;  %3688 = vmatprep.mubr.f32.mxu1 %v7932_v32 }
 0x916   :  { %3744 = vmatpush1.msra.mxu0 %v5327_v31  ;;  %3777 = vmatprep.mubr.f32.mxu0 %v7932_v32 }
 0x9b0   :  { %v3400_v58 = vpop.f32.mrf.mxu1  ;;  %v3489_v56 = vpop.f32.mrf.mxu0 }
 0x9b1   :  { %v3512_v19 = vadd.f32 %v3400_v58, %v8278_v17  ;;  %v3514_v48 = vadd.f32 %v3489_v56, %v8039_v27 }
 0x9b2   :  { %v3402_v33 = vpop.f32.mrf.mxu1  ;;  %v3491_v59 = vpop.f32.mrf.mxu0 }
 0x9b3   :  { %v4337_v5 = vmul.f32 -1.442695, %v3512_v19  ;;  %v3513_v29 = vadd.f32 %v3402_v33, %v8279_v11  ;;  %v3515_v61 = vadd.f32 %v3491_v59, %v8282_v51 }
 0x9b4   :  { %v3406_v45 = vpop.f32.mrf.mxu1  ;;  %v3495_v42 = vpop.f32.mrf.mxu0 }
 0x9b5   :  { %4968 = vpow2.f32 %v4337_v5  ;;  %v4341_v16 = vmul.f32 -1.442695, %v3513_v29  ;;  %v3516_v46 = vadd.f32 %v3406_v45, %v8280_v12  ;;  %v4345_v1 = vmul.f32 -1.442695, %v3515_v61 }
 0x9b6   :  { %v3408_v3 = vpop.f32.mrf.mxu1  ;;  %v3497_v2 = vpop.f32.mrf.mxu0  ;;  %v3518_v58 = vadd.f32 %v3495_v42, %v8042_v25 }
 0x9b7   :  { %4970 = vpow2.f32 %v4341_v16  ;;  %v4338_v13 = vmul.f32 -1.442695, %v3516_v46  ;;  %v3517_v21 = vadd.f32 %v3408_v3, %v8032_v47  ;;  %v3519_v14 = vadd.f32 %v3497_v2, %v8038_v43 }
 0x9b8   :  { %v3412_v8 = vpop.f32.mrf.mxu1  ;;  %v3501_v39 = vpop.f32.mrf.mxu0 }
 0x9b9   :  { %4972 = vpow2.f32 %v4338_v13  ;;  %v4342_v34 = vmul.f32 -1.442695, %v3517_v21  ;;  %v3520_v49 = vadd.f32 %v3412_v8, %v8281_v0  ;;  %v4346_v55 = vmul.f32 -1.442695, %v3519_v14 }
 0x9ba   :  { %v3414_v53 = vpop.f32.mrf.mxu1  ;;  %v3503_v24 = vpop.f32.mrf.mxu0  ;;  %v3522_v45 = vadd.f32 %v3501_v39, %v8043_v35 }
 0x9bb   :  { %4974 = vpow2.f32 %v4342_v34  ;;  %v4339_v57 = vmul.f32 -1.442695, %v3520_v49  ;;  %v3521_v52 = vadd.f32 %v3414_v53, %v8034_v50  ;;  %v3523_v26 = vadd.f32 %v3503_v24, %v8040_v38 }
 0x9bc   :  { %v3418_v54 = vpop.f32.mrf.mxu1  ;;  %v3507_v20 = vpop.f32.mrf.mxu0 }
 0x9bd   :  { %4976 = vpow2.f32 %v4339_v57  ;;  %v4343_v30 = vmul.f32 -1.442695, %v3521_v52  ;;  %v3524_v37 = vadd.f32 %v3418_v54, %v8037_v23  ;;  %v4347_v59 = vmul.f32 -1.442695, %v3523_v26 }
 0x9be   :  { %v3420_v28 = vpop.f32.mrf.mxu1  ;;  %v3509_v62 = vpop.f32.mrf.mxu0  ;;  %v3526_v13 = vadd.f32 %v3507_v20, %v8044_v40 }
 0x9bf   :  { %4978 = vpow2.f32 %v4343_v30  ;;  %v4340_v6 = vmul.f32 -1.442695, %v3524_v37  ;;  %v3525_v15 = vadd.f32 %v3420_v28, %v6527_v7  ;;  %v3527_v56 = vadd.f32 %v3509_v62, %v6536_v18 }
 0x9c1   :  { %4980 = vpow2.f32 %v4340_v6  ;;  %v4344_v10 = vmul.f32 -1.442695, %v3525_v15  ;;  %v4348_v3 = vmul.f32 -1.442695, %v3527_v56 }
 0x9c2   :  { %v4969_v36 = vpop.eup %4968 }
 0x9c3   :  { %v3540_v22 = vadd.f32 1.0, %v4969_v36  ;;  %4982 = vpow2.f32 %v4344_v10 }
 0x9c4   :  { %v4971_v9 = vpop.eup %4970  ;;  %4984 = vpow2.f32 %v4345_v1 }
 0x9c5   :  { %4986 = vrcp.f32 %v3540_v22  ;;  %v3564_v63 = vadd.f32 1.0, %v4971_v9 }
 0x9c6   :  { %v4973_v31 = vpop.eup %4972  ;;  %4988 = vtanh.f32 %v3514_v48 }
 0x9c7   :  { %4990 = vrcp.f32 %v3564_v63  ;;  %v3541_v19 = vadd.f32 1.0, %v4973_v31 }
 0x9c8   :  { %v4975_v33 = vpop.eup %4974  ;;  %4992 = vpow2.f32 %v4346_v55 }
 0x9c9   :  { %4994 = vrcp.f32 %v3541_v19  ;;  %v3565_v5 = vadd.f32 1.0, %v4975_v33 }
 0x9ca   :  { %v4977_v29 = vpop.eup %4976  ;;  %4996 = vtanh.f32 %v3518_v58 }
 0x9cb   :  { %4998 = vrcp.f32 %v3565_v5  ;;  %v3542_v16 = vadd.f32 1.0, %v4977_v29 }
 0x9cc   :  { %v4979_v46 = vpop.eup %4978  ;;  %5000 = vpow2.f32 %v4347_v59 }
 0x9cd   :  { %5002 = vrcp.f32 %v3542_v16  ;;  %v3566_v42 = vadd.f32 1.0, %v4979_v46 }
 0x9ce   :  { %v4981_v2 = vpop.eup %4980  ;;  %5004 = vtanh.f32 %v3522_v45 }
 0x9cf   :  { %5006 = vrcp.f32 %v3566_v42  ;;  %v3543_v21 = vadd.f32 1.0, %v4981_v2 }
 0x9d0   :  { %v4983_v8 = vpop.eup %4982  ;;  %5008 = vpow2.f32 %v4348_v3 }
 0x9d1   :  { %v4985_v34 = vpop.eup %4984  ;;  %5010 = vrcp.f32 %v3543_v21  ;;  %v3567_v49 = vadd.f32 1.0, %v4983_v8  ;;  %v3937_v21 = vld [vmem:[#allocation11 + $0x78] sm:$0xff]  ;;  %v3936_v8 = vld [vmem:[#allocation11 + $0x70] sm:$0xff] }
 0x9d2   :  { %v4987_v53 = vpop.eup %4986  ;;  %5012 = vtanh.f32 %v3526_v13  ;;  %v3592_v52 = vadd.f32 1.0, %v4985_v34  ;;  %4382 = vmatprep.subr.mxu1 %v3937_v21  ;;  %v3935_v34 = vld [vmem:[#allocation11 + $0x68] sm:$0xff] }
 0x9d3   :  { %v4989_v39 = vpop.eup %4988  ;;  %5014 = vrcp.f32 %v3567_v49  ;;  %v3934_v49 = vld [vmem:[#allocation11 + $0x60] sm:$0xff] }
 0x9d4   :  { %v4991_v57 = vpop.eup %4990  ;;  %v3608_v54 = vmul.f32 %v4989_v39, %v4987_v53  ;;  %5016 = vrcp.f32 %v3592_v52  ;;  %v3933_v53 = vld [vmem:[#allocation11 + $0x58] sm:$0xff]  ;;  %v3932_v39 = vld [vmem:[#allocation11 + $0x50] sm:$0xff] }
 0x9d5   :  { %v4993_v61 = vpop.eup %4992  ;;  %v3604_v30 = vmul.f32 %v4991_v57, %v7417_v60  ;;  %v3930_v57 = vld [vmem:[#allocation11 + $0x40] sm:$0xff]  ;;  %v3929_v52 = vld [vmem:[#allocation11 + $0x38] sm:$0xff] }
 0x9d6   :  { %v4995_v24 = vpop.eup %4994  ;;  %v3593_v15 = vadd.f32 1.0, %v4993_v61  ;;  %v3928_v61 = vld [vmem:[#allocation11 + $0x30] sm:$0xff] }
 0x9d7   :  { %v4997_v37 = vpop.eup %4996  ;;  %v7457_v28 = vadd.f32 %v3608_v54, %v3604_v30  ;;  %v3927_v54 = vld [vmem:[#allocation11 + $0x28] sm:$0xff]  ;;  %v3926_v30 = vld [vmem:[#allocation11 + $0x20] sm:$0xff] }
 0x9d8   :  { %v4999_v6 = vpop.eup %4998  ;;  %v3609_v14 = vmul.f32 %v4997_v37, %v4995_v24  ;;  %v3925_v24 = vld [vmem:[#allocation11 + $0x18] sm:$0xff]  ;;  %v3924_v37 = vld [vmem:[#allocation11 + $0x10] sm:$0xff] }
 0x9d9   :  { %v5001_v1 = vpop.eup %5000  ;;  %5018 = vtanh.f32 %v7457_v28  ;;  %v3605_v20 = vmul.f32 %v4999_v6, %v7421_v41  ;;  %v3923_v6 = vld [vmem:[#allocation11 + $0x8] sm:$0xff] }
 0x9da   :  { %v5003_v10 = vpop.eup %5002  ;;  %5020 = vrcp.f32 %v3593_v15  ;;  %v3594_v60 = vadd.f32 1.0, %v5001_v1  ;;  %v3922_v15 = vld [vmem:[#allocation11] sm:$0xff] }
 0x9db   :  { %v5005_v36 = vpop.eup %5004  ;;  %v7461_v48 = vadd.f32 %v3609_v14, %v3605_v20 }
 0x9dc   :  { %v5007_v22 = vpop.eup %5006  ;;  %v3610_v55 = vmul.f32 %v5005_v36, %v5003_v10 }
 0x9dd   :  { %v5009_v9 = vpop.eup %5008  ;;  %v3606_v26 = vmul.f32 %v5007_v22, %v7425_v4  ;;  %5022 = vtanh.f32 %v7461_v48 }
 0x9de   :  { %v5011_v63 = vpop.eup %5010  ;;  %5024 = vrcp.f32 %v3594_v60  ;;  %v3595_v41 = vadd.f32 1.0, %v5009_v9 }
 0x9df   :  { %v5013_v62 = vpop.eup %5012  ;;  %v7465_v31 = vadd.f32 %v3610_v55, %v3606_v26 }
 0x9e0   :  { %v5015_v58 = vpop.eup %5014  ;;  %v3611_v19 = vmul.f32 %v5013_v62, %v5011_v63 }
 0x9e1   :  { %v3607_v33 = vmul.f32 %v5015_v58, %v7429_v44  ;;  %5026 = vtanh.f32 %v7465_v31  ;;  %v5017_v56 = vpop.eup %5016 }
 0x9e2   :  { %5028 = vrcp.f32 %v3595_v41 }
 0x9e3   :  { %v7469_v59 = vadd.f32 %v3611_v19, %v3607_v33 }
 0x9e5   :  { %5030 = vtanh.f32 %v7469_v59 }
 0x9e6   :  { %v5019_v4 = vpop.eup %5018 }
 0x9e7   :  { %v3620_v5 = vmul.f32 %v5019_v4, %v5017_v56  ;;  %v5021_v29 = vpop.eup %5020 }
 0x9e9   :  { %3689 = vmatmul.mubr.f32.vlgmr.msra.gmra.mxu1 %v3620_v5  ;;  %3778 = vmatmul.mubr.f32.vlgmr.msra.gmra.mxu0 %v3620_v5 }
 0x9ea   :  { %v5023_v45 = vpop.eup %5022  ;;  %3694 = vmatprep.mubr.f32.mxu1 %v7932_v32  ;;  %3783 = vmatprep.mubr.f32.mxu0 %v7932_v32 }
 0x9eb   :  { %v3621_v16 = vmul.f32 %v5023_v45, %v5021_v29  ;;  %v5025_v44 = vpop.eup %5024  ;;  %4383 = vmatpush3.msra.mxu1 %v3937_v21 }
 0x9ec   :  { %4384 = vmatprep.subr.mxu1 %v3936_v8 }
 0x9ed   :  { %3695 = vmatmul.mubr.f32.gmra.mxu1 %v3621_v16  ;;  %3784 = vmatmul.mubr.f32.gmra.mxu0 %v3621_v16 }
 0x9ee   :  { %v5027_v46 = vpop.eup %5026  ;;  %3700 = vmatprep.mubr.f32.mxu1 %v7932_v32  ;;  %3789 = vmatprep.mubr.f32.mxu0 %v7932_v32 }
 0x9ef   :  { %v3622_v3 = vmul.f32 %v5027_v46, %v5025_v44  ;;  %v5029_v42 = vpop.eup %5028  ;;  %4385 = vmatpush3.msra.mxu1 %v3936_v8 }
 0x9f0   :  { %4386 = vmatprep.subr.mxu1 %v3935_v34 }
 0x9f1   :  { %3701 = vmatmul.mubr.f32.gmra.mxu1 %v3622_v3  ;;  %3790 = vmatmul.mubr.f32.gmra.mxu0 %v3622_v3 }
 0x9f2   :  { %v5031_v2 = vpop.eup %5030  ;;  %3706 = vmatprep.mubr.f32.mxu1 %v7932_v32  ;;  %3795 = vmatprep.mubr.f32.mxu0 %v7932_v32  ;;  %v3931_v32 = vld [vmem:[#allocation11 + $0x48] sm:$0xff] }
 0x9f3   :  { %v3623_v13 = vmul.f32 %v5031_v2, %v5029_v42  ;;  %4387 = vmatpush3.msra.mxu1 %v3935_v34 }
 0x9f4   :  { %4388 = vmatprep.subr.mxu1 %v3934_v49 }
 0x9f5   :  { %3707 = vmatmul.mubr.f32.gmra.mxu1 %v3623_v13  ;;  %3796 = vmatmul.mubr.f32.gmra.mxu0 %v3623_v13 }
 0x9f6   :  { %4389 = vmatpush3.msra.mxu1 %v3934_v49 }
 0x9f7   :  { %4390 = vmatprep.subr.mxu1 %v3933_v53 }
 0x9f8   :  { %4391 = vmatpush3.msra.mxu1 %v3933_v53 }
 0x9f9   :  { %4392 = vmatprep.subr.mxu1 %v3932_v39 }
 0x9fa   :  { %4393 = vmatpush3.msra.mxu1 %v3932_v39 }
 0x9fb   :  { %4394 = vmatprep.subr.mxu1 %v3931_v32 }
 0x9fc   :  { %4395 = vmatpush3.msra.mxu1 %v3931_v32 }
 0x9fd   :  { %4396 = vmatprep.subr.mxu1 %v3930_v57 }
 0x9fe   :  { %4397 = vmatpush3.msra.mxu1 %v3930_v57 }
 0x9ff   :  { %4398 = vmatprep.subr.mxu1 %v3929_v52 }
 0xa00   :  { %4399 = vmatpush3.msra.mxu1 %v3929_v52 }
 0xa01   :  { %4400 = vmatprep.subr.mxu1 %v3928_v61 }
 0xa02   :  { %4401 = vmatpush3.msra.mxu1 %v3928_v61 }
 0xa03   :  { %4402 = vmatprep.subr.mxu1 %v3927_v54 }
 0xa04   :  { %4403 = vmatpush3.msra.mxu1 %v3927_v54 }
 0xa05   :  { %4404 = vmatprep.subr.mxu1 %v3926_v30 }
 0xa06   :  { %4405 = vmatpush3.msra.mxu1 %v3926_v30 }
 0xa07   :  { %4406 = vmatprep.subr.mxu1 %v3925_v24 }
 0xa08   :  { %4407 = vmatpush3.msra.mxu1 %v3925_v24 }
 0xa09   :  { %4408 = vmatprep.subr.mxu1 %v3924_v37 }
 0xa0a   :  { %4409 = vmatpush3.msra.mxu1 %v3924_v37 }
 0xa0b   :  { %4410 = vmatprep.subr.mxu1 %v3923_v6 }
 0xa0c   :  { %4411 = vmatpush3.msra.mxu1 %v3923_v6 }
 0xa0d   :  { %4412 = vmatprep.subr.mxu1 %v3922_v15 }
 0xa0e   :  { %4413 = vmatpush3.msra.mxu1 %v3922_v15 }
 0xaa9   :  { %v3690_v1 = vpop.f32.mrf.mxu1  ;;  %v3779_v14 = vpop.f32.mrf.mxu0 }
 0xaaa   :  { %v3802_v20 = vadd.f32 %v3690_v1, %v8278_v17 }
 0xaab   :  { %v3692_v10 = vpop.f32.mrf.mxu1  ;;  %v3781_v36 = vpop.f32.mrf.mxu0 }
 0xaac   :  { %v4349_v22 = vmul.f32 -1.442695, %v3802_v20  ;;  %v3803_v60 = vadd.f32 %v3692_v10, %v8279_v11  ;;  %v3805_v45 = vadd.f32 %v3781_v36, %v8282_v51  ;;  %v3804_v51 = vadd.f32 %v3779_v14, %v8039_v27 }
 0xaad   :  { %v3696_v9 = vpop.f32.mrf.mxu1  ;;  %v3785_v55 = vpop.f32.mrf.mxu0 }
 0xaae   :  { %5032 = vpow2.f32 %v4349_v22  ;;  %v4353_v26 = vmul.f32 -1.442695, %v3803_v60  ;;  %v3806_v63 = vadd.f32 %v3696_v9, %v8280_v12 }
 0xaaf   :  { %v3698_v62 = vpop.f32.mrf.mxu1  ;;  %v3787_v58 = vpop.f32.mrf.mxu0 }
 0xab0   :  { %5034 = vpow2.f32 %v4353_v26  ;;  %v4350_v41 = vmul.f32 -1.442695, %v3806_v63  ;;  %v3807_v19 = vadd.f32 %v3698_v62, %v8032_v47  ;;  %v3809_v2 = vadd.f32 %v3787_v58, %v8038_v43 }
 0xab1   :  { %v3702_v33 = vpop.f32.mrf.mxu1  ;;  %v3791_v4 = vpop.f32.mrf.mxu0  ;;  %v3808_v43 = vadd.f32 %v3785_v55, %v8042_v25 }
 0xab2   :  { %5036 = vpow2.f32 %v4350_v41  ;;  %v4354_v17 = vmul.f32 -1.442695, %v3807_v19  ;;  %v3810_v56 = vadd.f32 %v3702_v33, %v8281_v0  ;;  %v4357_v0 = vmul.f32 -1.442695, %v3805_v45 }
 0xab3   :  { %v3704_v5 = vpop.f32.mrf.mxu1  ;;  %v3793_v44 = vpop.f32.mrf.mxu0  ;;  %v4358_v49 = vmul.f32 -1.442695, %v3809_v2 }
 0xab4   :  { %5038 = vpow2.f32 %v4354_v17  ;;  %v4351_v11 = vmul.f32 -1.442695, %v3810_v56  ;;  %v3811_v29 = vadd.f32 %v3704_v5, %v8034_v50 }
 0xab5   :  { %v3708_v12 = vpop.f32.mrf.mxu1  ;;  %v3797_v13 = vpop.f32.mrf.mxu0 }
 0xab6   :  { %5040 = vpow2.f32 %v4351_v11  ;;  %v4355_v16 = vmul.f32 -1.442695, %v3811_v29  ;;  %v3814_v46 = vadd.f32 %v3708_v12, %v8037_v23  ;;  %v3813_v23 = vadd.f32 %v3793_v44, %v8040_v38 }
 0xab7   :  { %v3710_v47 = vpop.f32.mrf.mxu1  ;;  %v3799_v39 = vpop.f32.mrf.mxu0  ;;  %v3812_v38 = vadd.f32 %v3791_v4, %v8043_v35  ;;  %v3816_v15 = vadd.f32 %v3797_v13, %v8044_v40 }
 0xab8   :  { %5042 = vpow2.f32 %v4355_v16  ;;  %v4352_v3 = vmul.f32 -1.442695, %v3814_v46  ;;  %v3815_v42 = vadd.f32 %v3710_v47, %v6527_v7  ;;  %v4359_v52 = vmul.f32 -1.442695, %v3813_v23 }
 0xab9   :  { %v3817_v27 = vadd.f32 %v3799_v39, %v6536_v18  ;;  %v4361_v39 = vld [vmem:[%s7632_s8] ss:$0 sm:$0xff]  ;;  %s5533_s8 = smov [#allocation14]  }
 0xaba   :  { %5044 = vpow2.f32 %v4352_v3  ;;  %v4356_v21 = vmul.f32 -1.442695, %v3815_v42  ;;  %s4175_s13 = sshll.u32 %s5533_s8, 4  ;;  %s4176_s13 = int_to_ptr.vmem [resolvable:$true] %s4175_s13 }
 0xabb   :  { %v5033_v50 = vpop.eup %5032  ;;  %v4360_v37 = vmul.f32 -1.442695, %v3817_v27  ;;  %s5448_s3 = scalar_lea.vmem %s4176_s13, 512  ;;  %p5453_p3 = scmp.lt.s32.totalorder %s4176_s13, %s4176_s13 }
 0xabc   :  { %v3830_v8 = vadd.f32 1.0, %v5033_v50  ;;  %5046 = vpow2.f32 %v4356_v21  ;;  %p5449_p2 = scmp.ne.s32.totalorder %s4176_s13, %s5448_s3  ;;  %p5454_p4 = scmp.lt.s32.totalorder %s5448_s3, %s5448_s3 }
 0xabd   :  { %v5035_v34 = vpop.eup %5034  ;;  %5048 = vpow2.f32 %v4357_v0 }
 0xabe   :  { %5050 = vrcp.f32 %v3830_v8  ;;  %v3854_v53 = vadd.f32 1.0, %v5035_v34  ;;  %p5455_p5 = por %p5454_p4, %p5453_p3 }
 0xabf   :  { %v5037_v7 = vpop.eup %5036  ;;  %5052 = vtanh.f32 %v3804_v51 }
 0xac0   :  { %5054 = vrcp.f32 %v3854_v53  ;;  %v3831_v32 = vadd.f32 1.0, %v5037_v7  ;;  %p5456_p6 = pnand %p5455_p5, %p5449_p2 }
 0xac1   :  { %v5039_v57 = vpop.eup %5038  ;;  %5056 = vpow2.f32 %v4358_v49 }
 0xac2   :  { %5058 = vrcp.f32 %v3831_v32  ;;  %v3855_v61 = vadd.f32 1.0, %v5039_v57  ;;  %v8283_v57 = vld [vmem:[#allocation23_spill] sm:$0xff] }
 0xac3   :  { %v5041_v54 = vpop.eup %5040  ;;  %5060 = vtanh.f32 %v3808_v43  ;;  %vm4047_vm6 = vcmp.ge.s32.totalorder %v8283_v57, 60  ;;  %vm4048_vm7 = vcmp.lt.s32.totalorder %v8283_v57, 63 }
 0xac4   :  { %5062 = vrcp.f32 %v3855_v61  ;;  %v3832_v30 = vadd.f32 1.0, %v5041_v54  ;;  %vm7508_vm8 = vmand %vm4047_vm6, %vm4048_vm7 }
 0xac5   :  { %v5043_v24 = vpop.eup %5042  ;;  %5064 = vpow2.f32 %v4359_v52 }
 0xac6   :  { %5066 = vrcp.f32 %v3832_v30  ;;  %v3856_v25 = vadd.f32 1.0, %v5043_v24 }
 0xac7   :  { %v5045_v6 = vpop.eup %5044  ;;  %5068 = vtanh.f32 %v3812_v38 }
 0xac8   :  { %5070 = vrcp.f32 %v3856_v25  ;;  %v3833_v1 = vadd.f32 1.0, %v5045_v6 }
 0xac9   :  { %v5047_v18 = vpop.eup %5046  ;;  %5072 = vpow2.f32 %v4360_v37 }
 0xaca   :  { %v5049_v14 = vpop.eup %5048  ;;  %5074 = vrcp.f32 %v3833_v1  ;;  %v3857_v20 = vadd.f32 1.0, %v5047_v18 }
 0xacb   :  { %v5051_v10 = vpop.eup %5050  ;;  %5076 = vtanh.f32 %v3816_v15  ;;  %v3882_v22 = vadd.f32 1.0, %v5049_v14 }
 0xacc   :  { %v5053_v35 = vpop.eup %5052  ;;  %5078 = vrcp.f32 %v3857_v20 }
 0xacd   :  { %v5055_v36 = vpop.eup %5054  ;;  %v3898_v9 = vmul.f32 %v5053_v35, %v5051_v10  ;;  %5080 = vrcp.f32 %v3882_v22 }
 0xace   :  { %v5057_v60 = vpop.eup %5056  ;;  %v3894_v55 = vmul.f32 %v5055_v36, %v7457_v28 }
 0xacf   :  { %v5059_v26 = vpop.eup %5058  ;;  %v3883_v58 = vadd.f32 1.0, %v5057_v60 }
 0xad0   :  { %v5061_v63 = vpop.eup %5060  ;;  %v3902_v40 = vadd.f32 %v3898_v9, %v3894_v55 }
 0xad1   :  { %v5063_v62 = vpop.eup %5062  ;;  %v3899_v19 = vmul.f32 %v5061_v63, %v5059_v26 }
 0xad2   :  { %v5065_v41 = vpop.eup %5064  ;;  %v3895_v33 = vmul.f32 %v5063_v62, %v7461_v48  ;;  %5082 = vtanh.f32 %v3902_v40  ;;  %3918 = vst [vmem:[#allocation14] sm:$0xff] %v3902_v40 }
 0xad3   :  { %v5067_v17 = vpop.eup %5066  ;;  %5084 = vrcp.f32 %v3883_v58  ;;  %v3884_v11 = vadd.f32 1.0, %v5065_v41 }
 0xad4   :  { %v5069_v56 = vpop.eup %5068  ;;  %v3903_v4 = vadd.f32 %v3899_v19, %v3895_v33 }
 0xad5   :  { %v5071_v5 = vpop.eup %5070  ;;  %v3900_v28 = vmul.f32 %v5069_v56, %v5067_v17 }
 0xad6   :  { %v5073_v29 = vpop.eup %5072  ;;  %5086 = vtanh.f32 %v3903_v4  ;;  %3919 = vst [vmem:[#allocation14 + $0x8] sm:$0xff] %v3903_v4  ;;  %v3896_v45 = vmul.f32 %v5071_v5, %v7465_v31 }
 0xad7   :  { %v5075_v12 = vpop.eup %5074  ;;  %5088 = vrcp.f32 %v3884_v11  ;;  %v3885_v48 = vadd.f32 1.0, %v5073_v29 }
 0xad8   :  { %v5077_v16 = vpop.eup %5076  ;;  %v3904_v44 = vadd.f32 %v3900_v28, %v3896_v45 }
 0xad9   :  { %v5079_v46 = vpop.eup %5078  ;;  %v3901_v47 = vmul.f32 %v5077_v16, %v5075_v12 }
 0xada   :  { %v3897_v3 = vmul.f32 %v5079_v46, %v7469_v59  ;;  %5090 = vtanh.f32 %v3904_v44  ;;  %3920 = vst [vmem:[#allocation14 + $0x10] sm:$0xff] %v3904_v44  ;;  %v5081_v0 = vpop.eup %5080 }
 0xadb   :  { %5092 = vrcp.f32 %v3885_v48 }
 0xadc   :  { %v3905_v42 = vadd.f32 %v3901_v47, %v3897_v3 }
 0xade   :  { %5094 = vtanh.f32 %v3905_v42  ;;  %3921 = vst [vmem:[#allocation14 + $0x18] sm:$0xff] %v3905_v42 }
 0xadf   :  { %v5083_v2 = vpop.eup %5082 }
 0xae0   :  { %v3910_v13 = vmul.f32 %v5083_v2, %v5081_v0  ;;  %v5085_v21 = vpop.eup %5084 }
 0xae2   :  { %3914 = vst [vmem:[#allocation13] sm:$0xff] %v3910_v13  ;;  %4414 = vmatprep.mubr.f32.mxu1 %v3910_v13 }
 0xae3   :  { %v5087_v31 = vpop.eup %5086 }
 0xae4   :  { %v3911_v50 = vmul.f32 %v5087_v31, %v5085_v21  ;;  %v5089_v51 = vpop.eup %5088 }
 0xae6   :  { %4415 = vmatmul.mubr.f32.vlgmr.msra.gmra.mxu1 %v3911_v50  ;;  %3915 = vst [vmem:[#allocation13 + $0x8] sm:$0xff] %v3911_v50 }
 0xae7   :  { %v5091_v8 = vpop.eup %5090 }
 0xae8   :  { %v3912_v34 = vmul.f32 %v5091_v8, %v5089_v51  ;;  %v5093_v59 = vpop.eup %5092 }
 0xaea   :  { %3916 = vst [vmem:[#allocation13 + $0x10] sm:$0xff] %v3912_v34  ;;  %4417 = vmatprep.mubr.f32.mxu1 %v3912_v34 }
 0xaeb   :  { %v5095_v49 = vpop.eup %5094 }
 0xaec   :  { %v3913_v23 = vmul.f32 %v5095_v49, %v5093_v59 }
 0xaee   :  { %3917 = vst [vmem:[#allocation13 + $0x18] sm:$0xff] %v3913_v23  ;;  %4418 = vmatmul.mubr.f32.gmra.mxu1 %v3913_v23 }
 0xba6   :  { %v4416_v53 = vpop.f32.mrf.mxu1 }
 0xba7   :  { %v7501_v43 = vadd.f32 %v4416_v53, %v4361_v39 }
 0xba8   :  { %v4011_v7 = vpop.f32.mrf.mxu1 }
 0xba9   :  { %v7503_v32 = vadd.f32 %v4361_v39, %v4011_v7  ;;  %v4100_v54 = vmul.f32 2.0, %v7501_v43 }
 0xbab   :  { %v4099_v52 = vmul.f32 2.0, %v7503_v32  ;;  %v4104_v25 = vsel %vm7508_vm8, %v4100_v54, -inf }
 0xbad   :  { %v4103_v61 = vsel %vm7508_vm8, %v4099_v52, -inf }
 0xbae   :  { %4107 = vmax.xlane.f32.xlu0 %v4103_v61  ;;  %v4419_v38 = vpop.f32.mrf.mxu1 }
 0xbaf   :  { %v7515_v24 = vadd.f32 %v4419_v38, %v4361_v39 }
 0xbb0   :  { %v4021_v30 = vpop.f32.mrf.mxu1 }
 0xbb1   :  { %v7517_v37 = vadd.f32 %v4361_v39, %v4021_v30  ;;  %v4102_v1 = vmul.f32 2.0, %v7515_v24 }
 0xbb2   :  { %4109 = vmax.xlane.f32.xlu0 %v4104_v25 }
 0xbb3   :  { %v4101_v6 = vmul.f32 2.0, %v7517_v37  ;;  %v4106_v18 = vsel %vm7508_vm8, %v4102_v1, -inf }
 0xbb5   :  { %v4105_v15 = vsel %vm7508_vm8, %v4101_v6, -inf }
 0xbb6   :  { %4111 = vmax.xlane.f32.xlu1 %v4105_v15 }
 0xbba   :  { %4113 = vmax.xlane.f32.xlu1 %v4106_v18 }
 0xc37   :  { %v4108_v14 = vpop.xlane.xlu0 %4107 }
 0xc38   :  { %v4115_v20 = vsub.f32 %v4103_v61, %v4108_v14 }
 0xc3a   :  { %v4119_v10 = vmul.f32 1.442695, %v4115_v20 }
 0xc3b   :  { %v4110_v35 = vpop.xlane.xlu0 %4109 }
 0xc3c   :  { %5096 = vpow2.f32 %v4119_v10  ;;  %v4116_v36 = vsub.f32 %v4104_v25, %v4110_v35 }
 0xc3e   :  { %v4121_v22 = vmul.f32 1.442695, %v4116_v36 }
 0xc3f   :  { %v4112_v60 = vpop.xlane.xlu1 %4111 }
 0xc40   :  { %5098 = vpow2.f32 %v4121_v22  ;;  %v4117_v9 = vsub.f32 %v4105_v15, %v4112_v60 }
 0xc42   :  { %v4123_v55 = vmul.f32 1.442695, %v4117_v9 }
 0xc43   :  { %v4114_v26 = vpop.xlane.xlu1 %4113 }
 0xc44   :  { %5100 = vpow2.f32 %v4123_v55  ;;  %v4118_v63 = vsub.f32 %v4106_v18, %v4114_v26 }
 0xc46   :  { %v4125_v40 = vmul.f32 1.442695, %v4118_v63 }
 0xc48   :  { %5102 = vpow2.f32 %v4125_v40 }
 0xc49   :  { %v5097_v62 = vpop.eup %5096 }
 0xc4a   :  { %v7529_v58 = vsel %vm7508_vm8, %v5097_v62, 0.0 }
 0xc4b   :  { %4131 = vadd.xlane.f32.xlu0 %v7529_v58 }
 0xc4d   :  { %v5099_v41 = vpop.eup %5098 }
 0xc4e   :  { %v7534_v19 = vsel %vm7508_vm8, %v5099_v41, 0.0 }
 0xc4f   :  { %4133 = vadd.xlane.f32.xlu1 %v7534_v19 }
 0xc51   :  { %v5101_v33 = vpop.eup %5100 }
 0xc52   :  { %v7539_v17 = vsel %vm7508_vm8, %v5101_v33, 0.0 }
 0xc53   :  { %4135 = vadd.xlane.f32.xlu0 %v7539_v17 }
 0xc55   :  { %v5103_v56 = vpop.eup %5102 }
 0xc56   :  { %v7544_v4 = vsel %vm7508_vm8, %v5103_v56, 0.0 }
 0xc57   :  { %4137 = vadd.xlane.f32.xlu1 %v7544_v4 }
 0xc58   :  { %5459 = shalt.err (!%p5456_p6)
}
 0xc59   :  { %4181 = dma.vmem_to_hbm [thread:$0]  %s4176_s13, 512, %s7635_s11, [#allocation15], %s5525_s1, %s5525_s1, %s5526_s18  }
 0xc5a   :  { %s5468_s7 = scalar_lea.vmem %s4164_s15, 512  ;;  %p5473_p8 = scmp.lt.s32.totalorder %s4164_s15, %s4164_s15 }
 0xc5b   :  { %p5469_p7 = scmp.ne.s32.totalorder %s4164_s15, %s5468_s7  ;;  %p5474_p9 = scmp.lt.s32.totalorder %s5468_s7, %s5468_s7 }
 0xc5d   :  { %p5475_p10 = por %p5474_p9, %p5473_p8 }
 0xc5f   :  { %p5476_p11 = pnand %p5475_p10, %p5469_p7 }
 0xc61   :  { %5479 = shalt.err (!%p5476_p11)
}
 0xc62   :  { %4169 = dma.vmem_to_hbm [thread:$0]  %s4164_s15, 512, %s7634_s10, [#allocation4], %s5525_s1, %s5525_s1, %s5526_s18   ;;  %v4050_v5 = vmul.f32 1.442695, %v7503_v32  ;;  %v4052_v11 = vmul.f32 1.442695, %v7501_v43 }
 0xc63   :  { %v4054_v29 = vmul.f32 1.442695, %v7517_v37  ;;  %v4056_v28 = vmul.f32 1.442695, %v7515_v24  ;;  %v7564_v12 = vmul.u32.u64.low 2863311531, %v8283_v57  ;;  %v7565_v16 = vmul.u32.u64.high 2863311531, %v8283_v57, %v7564_v12 }
 0xc64   :  { %5104 = vpow2.f32 %v4050_v5  ;;  %vm4046_vm15 = vcmp.lt.s32.totalorder %v8283_v57, 60  ;;  %vm4151_vm1 = vcmask 515072   ;;  %s5535_s10 = smov [#allocation16]  }
 0xc65   :  { %5106 = vpow2.f32 %v4052_v11  ;;  %v4036_v42 = vshrl.u32 %v7565_v16, 2  ;;  %s4187_s11 = sshll.u32 %s5535_s10, 4  ;;  %s4188_s11 = int_to_ptr.vmem [resolvable:$true] %s4187_s11 }
 0xc66   :  { %5108 = vpow2.f32 %v4054_v29  ;;  %s5488_s20 = scalar_lea.vmem %s4188_s11, 512  ;;  %p5493_p13 = scmp.lt.s32.totalorder %s4188_s11, %s4188_s11 }
 0xc67   :  { %5110 = vpow2.f32 %v4056_v28  ;;  %v4037_v21 = vmul.u32 6, %v4036_v42  ;;  %p5489_p12 = scmp.ne.s32.totalorder %s4188_s11, %s5488_s20  ;;  %p5494_p0 = scmp.lt.s32.totalorder %s5488_s20, %s5488_s20 }
 0xc69   :  { %v4038_v51 = vsub.s32 %v8283_v57, %v4037_v21  ;;  %p5495_p1 = por %p5494_p0, %p5493_p13 }
 0xc6b   :  { %vm4041_vm9 = vcmp.ne.s32.totalorder %v4038_v51, 0  ;;  %vm4042_vm10 = vcmp.lt.s32.totalorder %v4038_v51, 0  ;;  %v4044_v59 = vadd.s32 6, %v4038_v51  ;;  %p5496_p2 = pnand %p5495_p1, %p5489_p12 }
 0xc6c   :  { %vm4043_vm11 = vmand %vm4042_vm10, %vm4041_vm9 }
 0xc6d   :  { %v4045_v53 = vsel %vm4043_vm11, %v4044_v59, %v4038_v51 }
 0xc6e   :  { %vm4081_vm12 = vcmp.eq.s32.totalorder %v4045_v53, 5  ;;  %vm4080_vm13 = vcmp.eq.s32.totalorder %v4045_v53, 4  ;;  %vm4079_vm14 = vcmp.eq.s32.totalorder %v4045_v53, 3  ;;  %vm4078_vm0 = vcmp.eq.s32.totalorder %v4045_v53, 0 }
 0xc71   :  { %v5105_v45 = vpop.eup %5104 }
 0xc72   :  { %v4058_v44 = vmul.f32 0.70710677, %v5105_v45  ;;  %v5107_v46 = vpop.eup %5106 }
 0xc73   :  { %v4059_v48 = vmul.f32 0.70710677, %v5107_v46  ;;  %v5109_v3 = vpop.eup %5108 }
 0xc74   :  { %v4062_v47 = vmul.f32 1.442695, %v4058_v44  ;;  %v7568_v2 = vmul.f32 0.70710677, %v5109_v3  ;;  %v5111_v13 = vpop.eup %5110 }
 0xc75   :  { %v4064_v0 = vmul.f32 1.442695, %v4059_v48  ;;  %v7571_v31 = vmul.f32 0.70710677, %v5111_v13 }
 0xc76   :  { %5112 = vpow2.f32 %v4062_v47  ;;  %v4066_v50 = vmul.f32 1.442695, %v7568_v2 }
 0xc77   :  { %5114 = vtanh.f32 %v7503_v32  ;;  %v4068_v8 = vmul.f32 1.442695, %v7571_v31 }
 0xc78   :  { %5116 = vpow2.f32 %v4064_v0 }
 0xc79   :  { %5118 = vtanh.f32 %v7501_v43 }
 0xc7a   :  { %5120 = vpow2.f32 %v4066_v50 }
 0xc7b   :  { %5122 = vtanh.f32 %v7517_v37 }
 0xc83   :  { %v5113_v49 = vpop.eup %5112 }
 0xc84   :  { %v5115_v39 = vpop.eup %5114  ;;  %v4070_v7 = vmul.f32 0.70710677, %v5113_v49 }
 0xc85   :  { %v5117_v52 = vpop.eup %5116  ;;  %v4082_v61 = vsel %vm4081_vm12, %v5115_v39, %v7503_v32 }
 0xc86   :  { %v5119_v54 = vpop.eup %5118  ;;  %v4071_v38 = vmul.f32 0.70710677, %v5117_v52  ;;  %v4086_v30 = vsel %vm4080_vm13, %v4070_v7, %v4082_v61 }
 0xc87   :  { %v5121_v25 = vpop.eup %5120  ;;  %v4083_v1 = vsel %vm4081_vm12, %v5119_v54, %v7501_v43  ;;  %v4090_v18 = vsel %vm4079_vm14, %v4058_v44, %v4086_v30 }
 0xc88   :  { %v5123_v15 = vpop.eup %5122  ;;  %v4087_v20 = vsel %vm4080_vm13, %v4071_v38, %v4083_v1  ;;  %v4072_v10 = vmul.f32 0.70710677, %v5121_v25  ;;  %v4094_v36 = vsel %vm4078_vm0, 1.0, %v4090_v18 }
 0xc89   :  { %v4091_v60 = vsel %vm4079_vm14, %v4059_v48, %v4087_v20  ;;  %v4084_v43 = vsel %vm4081_vm12, %v5123_v15, %v7517_v37 }
 0xc8a   :  { %v4088_v63 = vsel %vm4080_vm13, %v4072_v10, %v4084_v43  ;;  %v4095_v62 = vsel %vm4078_vm0, 1.0, %v4091_v60 }
 0xc8b   :  { %v4092_v41 = vsel %vm4079_vm14, %v7568_v2, %v4088_v63 }
 0xcd4   :  { %v4132_v34 = vpop.xlane.xlu0 %4131 }
 0xcd5   :  { %5124 = vrcp.f32 %v4132_v34 }
 0xcd6   :  { %5126 = vpow2.f32 %v4068_v8 }
 0xcd7   :  { %5128 = vtanh.f32 %v7515_v24 }
 0xcd8   :  { %v4134_v23 = vpop.xlane.xlu1 %4133 }
 0xcd9   :  { %5130 = vrcp.f32 %v4134_v23 }
 0xcdc   :  { %v4136_v27 = vpop.xlane.xlu0 %4135 }
 0xcdd   :  { %5132 = vrcp.f32 %v4136_v27 }
 0xce0   :  { %v4138_v6 = vpop.xlane.xlu1 %4137 }
 0xce1   :  { %5134 = vrcp.f32 %v4138_v6 }
 0xce2   :  { %v5125_v14 = vpop.eup %5124 }
 0xce3   :  { %v5127_v32 = vpop.eup %5126  ;;  %v4140_v35 = vmul.f32 %v5125_v14, %v7529_v58 }
 0xce4   :  { %v5129_v22 = vpop.eup %5128  ;;  %v4073_v26 = vmul.f32 0.70710677, %v5127_v32 }
 0xce5   :  { %v4147_v9 = vsel %vm4046_vm15, %v4094_v36, %v4140_v35  ;;  %v4085_v58 = vsel %vm4081_vm12, %v5129_v22, %v7515_v24 }
 0xce6   :  { %v5131_v55 = vpop.eup %5130  ;;  %4152 = vst.msk [vmem:[#allocation16] sm:$0xff] %vm4151_vm1, %v4147_v9  ;;  %v4089_v56 = vsel %vm4080_vm13, %v4073_v26, %v4085_v58 }
 0xce7   :  { %v4142_v40 = vmul.f32 %v5131_v55, %v7534_v19  ;;  %v4096_v19 = vsel %vm4078_vm0, 1.0, %v4092_v41  ;;  %v4093_v11 = vsel %vm4079_vm14, %v7571_v31, %v4089_v56 }
 0xce8   :  { %v4097_v45 = vsel %vm4078_vm0, 1.0, %v4093_v11 }
 0xce9   :  { %v4148_v37 = vsel %vm4046_vm15, %v4095_v62, %v4142_v40 }
 0xcea   :  { %v5133_v33 = vpop.eup %5132  ;;  %4153 = vst.msk [vmem:[#allocation16 + $0x8] sm:$0xff] %vm4151_vm1, %v4148_v37 }
 0xceb   :  { %v4144_v5 = vmul.f32 %v5133_v33, %v7539_v17 }
 0xced   :  { %v4149_v24 = vsel %vm4046_vm15, %v4096_v19, %v4144_v5 }
 0xcee   :  { %v5135_v29 = vpop.eup %5134  ;;  %4154 = vst.msk [vmem:[#allocation16 + $0x10] sm:$0xff] %vm4151_vm1, %v4149_v24 }
 0xcef   :  { %v4146_v28 = vmul.f32 %v5135_v29, %v7544_v4 }
 0xcf1   :  { %v4150_v17 = vsel %vm4046_vm15, %v4097_v45, %v4146_v28 }
 0xcf2   :  { %4155 = vst.msk [vmem:[#allocation16 + $0x18] sm:$0xff] %vm4151_vm1, %v4150_v17 }
 0xcf3   :  { %5499 = shalt.err (!%p5496_p2)
}
 0xcf4   :  { %4193 = dma.vmem_to_hbm [thread:$0]  %s4188_s11, 512, %s7636_s12, [#allocation15], %s5525_s1, %s5525_s1, %s5526_s18  }
 0xcf5   :  { %5516 = dma.done.wait [#allocation4], 512  }
 0xcf6   :  { %5517 = vsyncadd [#allocation4], 4294966784 }
 0xcf7   :  { %5518 = dma.done.wait [#allocation15], 1024  }
 0xcf8   :  { %5519 = vsyncadd [#allocation15], 4294966272 }
 0xcf9   :  { %4205 = vsyncpa [#allocation3], 1 }
 0xcfa   :  { %4206 = vsyncpa [#allocation6], 1 }
 0xcfb   :  { %4207 = vsyncpa [#allocation9], 1 }
 0xcfc   :  { %4208 = vsyncpa [#allocation12], 1 }
 0xcfd   :  { %4209 = vsyncpa [#allocation4], 1 }
 0xcfe   :  { %4210 = vsyncpa [#allocation15], 1 }

</bundles_post_ra>
